<compile_context>
chip_gen: v7x
topology: tpu7x:2x2x1
jax: 0.10.0
libtpu: 0.0.40
codegen_flags: <defaults>
</compile_context>

<pallas_src>
import functools

import jax
import jax.numpy as jnp
from jax.experimental import pallas as pl
from jax.experimental.pallas import tpu as pltpu

_VMEM_LIMIT = 64 * 1024 * 1024


def _round_up(x, m):
    return ((x + m - 1) // m) * m


def _pick_tile(n, target):
    # n is a multiple of 128; return the largest multiple of 128 <= target dividing n
    t = min(target, n)
    while n % t:
        t -= 128
    return t


def _cat(pieces):
    return pieces[0] if len(pieces) == 1 else jnp.concatenate(pieces, axis=1)


# ---------------------------------------------------------------------------
# Kernel 1: fused projection  [z | s_src | s_dst] = h @ [W_all(pad) | w_src | w_dst]
#   (per-head attention vectors folded into the weight matrix as 2H extra columns)
# ---------------------------------------------------------------------------
def _proj_kernel(h_ref, w_ref, z_ref, ssrc_ref, sdst_ref, *, hf_pad, num_heads):
    o = jnp.dot(h_ref[...], w_ref[...], preferred_element_type=jnp.float32)
    z_ref[...] = o[:, :hf_pad].astype(z_ref.dtype)              # lane-dense bf16 features
    ssrc_ref[...] = o[:, hf_pad:hf_pad + num_heads]              # per-head src scores (f32)
    sdst_ref[...] = o[:, hf_pad + num_heads:]                    # per-head dst scores (f32)


# ---------------------------------------------------------------------------
# Kernel 2: masked-softmax attention, flash-style over (dst_tile, src_tile)
#   using a precomputed per-(dst,head) max bound (no online max / rescaling).
# ---------------------------------------------------------------------------
def _attn_kernel(z_ref, ssrc_ref, sdst_ref, mbnd_ref, adj_ref, out_ref,
                 l_scr, acc_scr, *, num_heads, fout, hf_pad, apply_elu):
    j = pl.program_id(1)

    @pl.when(j == 0)
    def _init():
        l_scr[...] = jnp.zeros_like(l_scr)
        acc_scr[...] = jnp.zeros_like(acc_scr)

    adjf = adj_ref[...].astype(jnp.float32)     # [TD, TS] 0/1 edge mask (int8 in HBM)
    sdst = sdst_ref[...]                        # [TD, H]
    mbnd = mbnd_ref[...]                        # [TD, H] per-(dst,head) upper bound on e
    ssrc = ssrc_ref[...]                        # [H, TS]

    l_pieces, acc_pieces = [], []
    # Static loop over heads (H is small, 1-8); nothing is carried between iterations so
    # each head's [TD,TS] temporaries can die before the next head's are materialized.
    # TODO(synk): switch to lax.fori_loop + pl.ds column slices if H grows large.
    for h in range(num_heads):
        # e[dst, src] = leaky_relu(a_dst . z_dst + a_src . z_src)  (slope 0.01, F.leaky_relu)
        e = sdst[:, h:h + 1] + ssrc[h:h + 1, :]                  # [TD, TS]
        e = jnp.maximum(e, 0.01 * e)                             # leaky_relu via one max
        # mbnd >= max_src e  =>  exp(e - mbnd) <= 1; multiply-mask keeps non-edges at 0
        p = jnp.exp(e - mbnd[:, h:h + 1]) * adjf                 # [TD, TS]
        l_pieces.append(jnp.sum(p, axis=-1, keepdims=True))      # [TD, 1]
        acc_pieces.append(jnp.dot(p.astype(jnp.bfloat16),
                                  z_ref[:, h * fout:(h + 1) * fout],
                                  preferred_element_type=jnp.float32))

    l_scr[...] += _cat(l_pieces)                                  # one (TD, H) update
    pad = hf_pad - num_heads * fout
    if pad:
        acc_pieces.append(jnp.zeros((adjf.shape[0], pad), jnp.float32))
    acc_scr[...] += _cat(acc_pieces)                              # one lane-dense (TD, HFp) update

    @pl.when(j == pl.num_programs(1) - 1)
    def _finalize():
        # guard: zero in-degree rows (e.g. padding) -> denom 0 -> output 0, not NaN
        inv = 1.0 / jnp.maximum(l_scr[...], 1e-20)                # [TD, H], exact reciprocal
        acc = acc_scr[...]                                        # [TD, HFp]
        pieces = [acc[:, h * fout:(h + 1) * fout] * inv[:, h:h + 1]
                  for h in range(num_heads)]
        if pad:
            pieces.append(acc[:, num_heads * fout:])              # zero pad lanes stay zero
        res = _cat(pieces)                                        # [TD, HFp]
        if apply_elu:                                             # F.elu (alpha=1) fused
            res = jnp.where(res > 0, res, jnp.exp(res) - 1.0)
        out_ref[...] = res.astype(out_ref.dtype)                  # ONE lane-dense store


# ---------------------------------------------------------------------------
# Wrappers
# ---------------------------------------------------------------------------
def gat_layer(h, W, a, adj_i8, *, apply_elu_out, td_target=512, ts_target=1024):
    """One MultiHeadGATLayer (merge='cat').

    h: [Np, Fin] (Fin may include zero pad columns), adj_i8: [Np, Np] int8.
    Returns [Np, HFp] where columns [:H*Fout] == torch.cat(head_outs, dim=1), rest zero.
    """
    H, Fin_w, Fout = W.shape
    Np, Fin = h.shape
    HF = H * Fout
    HFp = _round_up(HF, 128)

    if Fin > Fin_w:                      # input carries zero pad columns -> pad W rows
        W = jnp.pad(W, ((0, 0), (0, Fin - Fin_w), (0, 0)))

    # Fold per-head attention vectors into the projection as 2H extra columns; pad the
    # feature columns to HFp so z / acc / out are lane-dense.
    W_all = jnp.transpose(W, (1, 0, 2)).reshape(Fin, HF)
    W_all = jnp.pad(W_all, ((0, 0), (0, HFp - HF)))               # [Fin, HFp]
    w_src = jnp.einsum("hif,hf->ih", W, a[:, :Fout])              # [Fin, H]
    w_dst = jnp.einsum("hif,hf->ih", W, a[:, Fout:])              # [Fin, H]
    W_cat = jnp.concatenate([W_all, w_src, w_dst], axis=1).astype(jnp.bfloat16)
    h_bf = h.astype(jnp.bfloat16)

    tm = _pick_tile(Np, 512)
    z, s_src, s_dst = pl.pallas_call(
        functools.partial(_proj_kernel, hf_pad=HFp, num_heads=H),
        out_shape=(jax.ShapeDtypeStruct((Np, HFp), jnp.bfloat16),
                   jax.ShapeDtypeStruct((Np, H), jnp.float32),
                   jax.ShapeDtypeStruct((Np, H), jnp.float32)),
        grid=(Np // tm,),
        in_specs=[pl.BlockSpec((tm, Fin), lambda i: (i, 0)),
                  pl.BlockSpec((Fin, HFp + 2 * H), lambda i: (0, 0))],
        out_specs=(pl.BlockSpec((tm, HFp), lambda i: (i, 0)),
                   pl.BlockSpec((tm, H), lambda i: (i, 0)),
                   pl.BlockSpec((tm, H), lambda i: (i, 0))),
        compiler_params=pltpu.CompilerParams(dimension_semantics=("parallel",),
                                             vmem_limit_bytes=_VMEM_LIMIT),
    )(h_bf, W_cat)

    # Tiny wrapper-side prep ([Np,H] arrays only): transposed src scores + per-(dst,head)
    # softmax upper bound m = leaky_relu(s_dst + max_src s_src) >= max_src e.
    s_src_t = s_src.T                                             # [H, Np]
    t = s_dst + jnp.max(s_src, axis=0, keepdims=True)             # [Np, H]
    m_bound = jnp.maximum(t, 0.01 * t)

    td = _pick_tile(Np, td_target)
    ts = _pick_tile(Np, ts_target)
    kernel = functools.partial(_attn_kernel, num_heads=H, fout=Fout,
                               hf_pad=HFp, apply_elu=apply_elu_out)
    out = pl.pallas_call(
        kernel,
        out_shape=jax.ShapeDtypeStruct((Np, HFp), jnp.float32),
        grid=(Np // td, Np // ts),
        in_specs=[
            pl.BlockSpec((ts, HFp), lambda i, j: (j, 0)),         # z rows of the src tile (bf16)
            pl.BlockSpec((H, ts), lambda i, j: (0, j)),           # s_src^T
            pl.BlockSpec((td, H), lambda i, j: (i, 0)),           # s_dst
            pl.BlockSpec((td, H), lambda i, j: (i, 0)),           # softmax max bound
            pl.BlockSpec((td, ts), lambda i, j: (i, j)),          # adj mask tile (int8)
        ],
        out_specs=pl.BlockSpec((td, HFp), lambda i, j: (i, 0)),
        scratch_shapes=[
            pltpu.VMEM((td, H), jnp.float32),                     # running denom
            pltpu.VMEM((td, HFp), jnp.float32),                   # running weighted sum
        ],
        compiler_params=pltpu.CompilerParams(
            dimension_semantics=("parallel", "arbitrary"),
            vmem_limit_bytes=_VMEM_LIMIT),
    )(z, s_src_t, s_dst, m_bound, adj_i8)
    return out, HF


@jax.jit
def gat_forward(h, params, adj):
    N = h.shape[0]
    Np = _round_up(max(N, 128), 128)     # pad nodes so tiles satisfy TPU layout constraints
    h_pad = jnp.pad(h, ((0, Np - N), (0, 0)))
    adj_i8 = jnp.pad(adj, ((0, Np - N), (0, Np - N))).astype(jnp.int8)

    # layer1: num_heads heads, merge='cat'; F.elu fused into its store epilogue
    h1, _ = gat_layer(h_pad, params["W1"], params["a1"], adj_i8, apply_elu_out=True)
    # layer2: single head, merge='cat' of one head (pad columns of h1 are zero)
    h2, hf2 = gat_layer(h1, params["W2"], params["a2"], adj_i8, apply_elu_out=False)
    return h2[:N, :hf2]                  # [N, out_dim]


def init_params(key, in_dim, hidden_dim, out_dim, num_heads):
    ks = jax.random.split(key, 4)
    # nn.Linear(in, out, bias=False).weight has shape [out, in]; we store W = weight.T
    W1 = jax.random.normal(ks[0], (num_heads, in_dim, hidden_dim), jnp.float32) * 0.1
    a1 = jax.random.normal(ks[1], (num_heads, 2 * hidden_dim), jnp.float32) * 0.1
    W2 = jax.random.normal(ks[2], (1, hidden_dim * num_heads, out_dim), jnp.float32) * 0.1
    a2 = jax.random.normal(ks[3], (1, 2 * out_dim), jnp.float32) * 0.1
    return dict(W1=W1, a1=a1, W2=W2, a2=a2)


if __name__ == "__main__":
    key = jax.random.PRNGKey(0)
    N, in_dim, hidden_dim, out_dim, num_heads = 8, 16, 8, 4, 2
    k_h, k_p = jax.random.split(key, 2)

    h = jax.random.normal(k_h, (N, in_dim), jnp.float32)

    # deterministic graph: ring + self-loops (every node has in-degree 3)
    # adj[dst, src] = 1 iff edge src -> dst exists
    idx = jnp.arange(N)
    adj = jnp.zeros((N, N), jnp.float32)
    adj = adj.at[idx, idx].set(1.0)
    adj = adj.at[idx, (idx + 1) % N].set(1.0)
    adj = adj.at[idx, (idx - 1) % N].set(1.0)

    params = init_params(k_p, in_dim, hidden_dim, out_dim, num_heads)

    out = gat_forward(h, params, adj)
    jax.block_until_ready(out)
    assert out.shape == (N, out_dim)
    print("KERNEL_OK")
</pallas_src>

<mosaic_0001>
module attributes {stable_mosaic.version = 11 : i64} {
  func.func @_proj_kernel(%arg0: i32, %arg1: memref<128x16xbf16, #tpu.memory_space<vmem>>, %arg2: memref<16x132xbf16, #tpu.memory_space<vmem>>, %arg3: memref<128x128xbf16, #tpu.memory_space<vmem>>, %arg4: memref<128x2xf32, #tpu.memory_space<vmem>>, %arg5: memref<128x2xf32, #tpu.memory_space<vmem>>) attributes {dimension_semantics = [#tpu.dimension_semantics<parallel>], iteration_bounds = array<i64: 1>, scalar_prefetch = 0 : i64, scratch_operands = 0 : i64, tpu.core_type = #tpu.core_type<tc>, window_params = [{transform_indices = @transform_0, window_bounds = array<i64: 128, 16>}, {pipeline_mode = #tpu.pipeline_mode<synchronous>, transform_indices = @transform_1, window_bounds = array<i64: 16, 132>}, {transform_indices = @transform_2, window_bounds = array<i64: 128, 128>}, {transform_indices = @transform_3, window_bounds = array<i64: 128, 2>}, {transform_indices = @transform_4, window_bounds = array<i64: 128, 2>}]} {
    %c0 = arith.constant 0 : index
    %c0_0 = arith.constant 0 : index
    %0 = vector.load %arg1[%c0, %c0_0] : memref<128x16xbf16, #tpu.memory_space<vmem>>, vector<128x16xbf16>
    %c0_1 = arith.constant 0 : index
    %c0_2 = arith.constant 0 : index
    %1 = vector.load %arg2[%c0_1, %c0_2] : memref<16x132xbf16, #tpu.memory_space<vmem>>, vector<16x132xbf16>
    %cst = arith.constant dense<0.000000e+00> : vector<128x132xf32>
    %2 = tpu.matmul %0, %1, %cst {dimension_numbers = #tpu.dot_dimension_numbers<[1], [0], [0], [1], [0, 0, 1, 1], [], []>} : vector<128x16xbf16>, vector<16x132xbf16>, vector<128x132xf32> -> vector<128x132xf32>
    %3 = vector.extract_strided_slice %2 {offsets = [0, 0], sizes = [128, 128], strides = [1, 1]} : vector<128x132xf32> to vector<128x128xf32>
    %4 = arith.truncf %3 : vector<128x128xf32> to vector<128x128xbf16>
    %c0_3 = arith.constant 0 : index
    %c0_4 = arith.constant 0 : index
    %5 = vector.load %arg3[%c0_3, %c0_4] : memref<128x128xbf16, #tpu.memory_space<vmem>>, vector<128x128xbf16>
    tpu.vector_store %arg3[%c0_3, %c0_4], %4 {strides = array<i32>} : memref<128x128xbf16, #tpu.memory_space<vmem>>, vector<128x128xbf16>,
    %6 = vector.extract_strided_slice %2 {offsets = [0, 128], sizes = [128, 2], strides = [1, 1]} : vector<128x132xf32> to vector<128x2xf32>
    %c0_5 = arith.constant 0 : index
    %c0_6 = arith.constant 0 : index
    %7 = vector.load %arg4[%c0_5, %c0_6] : memref<128x2xf32, #tpu.memory_space<vmem>>, vector<128x2xf32>
    tpu.vector_store %arg4[%c0_5, %c0_6], %6 {strides = array<i32>} : memref<128x2xf32, #tpu.memory_space<vmem>>, vector<128x2xf32>,
    %8 = vector.extract_strided_slice %2 {offsets = [0, 130], sizes = [128, 2], strides = [1, 1]} : vector<128x132xf32> to vector<128x2xf32>
    %c0_7 = arith.constant 0 : index
    %c0_8 = arith.constant 0 : index
    %9 = vector.load %arg5[%c0_7, %c0_8] : memref<128x2xf32, #tpu.memory_space<vmem>>, vector<128x2xf32>
    tpu.vector_store %arg5[%c0_7, %c0_8], %8 {strides = array<i32>} : memref<128x2xf32, #tpu.memory_space<vmem>>, vector<128x2xf32>,
    return
  }
  func.func @transform_0(%arg0: i32) -> (i32, i32) {
    %c0_i32 = arith.constant 0 : i32
    %c0_i32_0 = arith.constant 0 : i32
    return %arg0, %c0_i32 : i32, i32
  }
  func.func @transform_1(%arg0: i32) -> (i32, i32) {
    %c0_i32 = arith.constant 0 : i32
    %c0_i32_0 = arith.constant 0 : i32
    %c0_i32_1 = arith.constant 0 : i32
    return %c0_i32, %c0_i32_0 : i32, i32
  }
  func.func @transform_2(%arg0: i32) -> (i32, i32) {
    %c0_i32 = arith.constant 0 : i32
    %c0_i32_0 = arith.constant 0 : i32
    return %arg0, %c0_i32 : i32, i32
  }
  func.func @transform_3(%arg0: i32) -> (i32, i32) {
    %c0_i32 = arith.constant 0 : i32
    %c0_i32_0 = arith.constant 0 : i32
    return %arg0, %c0_i32 : i32, i32
  }
  func.func @transform_4(%arg0: i32) -> (i32, i32) {
    %c0_i32 = arith.constant 0 : i32
    %c0_i32_0 = arith.constant 0 : i32
    return %arg0, %c0_i32 : i32, i32
  }
}

module attributes {stable_mosaic.version = 11 : i64} {
  func.func @_attn_kernel(%arg0: i32, %arg1: i32, %arg2: memref<128x128xbf16, #tpu.memory_space<vmem>>, %arg3: memref<2x128xf32, #tpu.memory_space<vmem>>, %arg4: memref<128x2xf32, #tpu.memory_space<vmem>>, %arg5: memref<128x2xf32, #tpu.memory_space<vmem>>, %arg6: memref<128x128xi8, #tpu.memory_space<vmem>>, %arg7: memref<128x128xf32, #tpu.memory_space<vmem>>, %arg8: memref<128x2xf32, #tpu.memory_space<vmem>>, %arg9: memref<128x128xf32, #tpu.memory_space<vmem>>) attributes {dimension_semantics = [#tpu.dimension_semantics<parallel>, #tpu.dimension_semantics<arbitrary>], iteration_bounds = array<i64: 1, 1>, scalar_prefetch = 0 : i64, scratch_operands = 2 : i64, tpu.core_type = #tpu.core_type<tc>, window_params = [{transform_indices = @transform_0, window_bounds = array<i64: 128, 128>}, {transform_indices = @transform_1, window_bounds = array<i64: 2, 128>}, {transform_indices = @transform_2, window_bounds = array<i64: 128, 2>}, {transform_indices = @transform_3, window_bounds = array<i64: 128, 2>}, {transform_indices = @transform_4, window_bounds = array<i64: 128, 128>}, {transform_indices = @transform_5, window_bounds = array<i64: 128, 128>}]} {
    %c0_i32 = arith.constant 0 : i32
    %0 = arith.cmpi eq, %arg1, %c0_i32 : i32
    %1 = arith.extui %0 : i1 to i32
    %c0_i32_0 = arith.constant 0 : i32
    %2 = arith.cmpi ne, %1, %c0_i32_0 : i32
    scf.if %2 {
      %cst_27 = arith.constant 0.000000e+00 : f32
      %56 = vector.broadcast %cst_27 : f32 to vector<128x2xf32>
      %c0_28 = arith.constant 0 : index
      %c0_29 = arith.constant 0 : index
      %57 = vector.load %arg8[%c0_28, %c0_29] : memref<128x2xf32, #tpu.memory_space<vmem>>, vector<128x2xf32>
      tpu.vector_store %arg8[%c0_28, %c0_29], %56 {strides = array<i32>} : memref<128x2xf32, #tpu.memory_space<vmem>>, vector<128x2xf32>,
      %cst_30 = arith.constant 0.000000e+00 : f32
      %58 = vector.broadcast %cst_30 : f32 to vector<128x128xf32>
      %c0_31 = arith.constant 0 : index
      %c0_32 = arith.constant 0 : index
      %59 = vector.load %arg9[%c0_31, %c0_32] : memref<128x128xf32, #tpu.memory_space<vmem>>, vector<128x128xf32>
      tpu.vector_store %arg9[%c0_31, %c0_32], %58 {strides = array<i32>} : memref<128x128xf32, #tpu.memory_space<vmem>>, vector<128x128xf32>,
    } else {
    }
    %c0 = arith.constant 0 : index
    %c0_1 = arith.constant 0 : index
    %3 = vector.load %arg6[%c0, %c0_1] : memref<128x128xi8, #tpu.memory_space<vmem>>, vector<128x128xi8>
    %4 = arith.sitofp %3 : vector<128x128xi8> to vector<128x128xf32>
    %c0_2 = arith.constant 0 : index
    %c0_3 = arith.constant 0 : index
    %5 = vector.load %arg4[%c0_2, %c0_3] : memref<128x2xf32, #tpu.memory_space<vmem>>, vector<128x2xf32>
    %c0_4 = arith.constant 0 : index
    %c0_5 = arith.constant 0 : index
    %6 = vector.load %arg5[%c0_4, %c0_5] : memref<128x2xf32, #tpu.memory_space<vmem>>, vector<128x2xf32>
    %c0_6 = arith.constant 0 : index
    %c0_7 = arith.constant 0 : index
    %7 = vector.load %arg3[%c0_6, %c0_7] : memref<2x128xf32, #tpu.memory_space<vmem>>, vector<2x128xf32>
    %8 = vector.extract_strided_slice %5 {offsets = [0, 0], sizes = [128, 1], strides = [1, 1]} : vector<128x2xf32> to vector<128x1xf32>
    %9 = vector.extract_strided_slice %7 {offsets = [0, 0], sizes = [1, 128], strides = [1, 1]} : vector<2x128xf32> to vector<1x128xf32>
    %10 = vector.broadcast %8 : vector<128x1xf32> to vector<128x128xf32>
    %11 = vector.broadcast %9 : vector<1x128xf32> to vector<128x128xf32>
    %12 = arith.addf %10, %11 : vector<128x128xf32>
    %cst = arith.constant 0.00999999977 : f32
    %13 = vector.broadcast %cst : f32 to vector<128x128xf32>
    %14 = arith.mulf %13, %12 : vector<128x128xf32>
    %15 = arith.maximumf %12, %14 : vector<128x128xf32>
    %16 = vector.extract_strided_slice %6 {offsets = [0, 0], sizes = [128, 1], strides = [1, 1]} : vector<128x2xf32> to vector<128x1xf32>
    %17 = vector.broadcast %16 : vector<128x1xf32> to vector<128x128xf32>
    %18 = arith.subf %15, %17 : vector<128x128xf32>
    %19 = math.exp %18 : vector<128x128xf32>
    %20 = arith.mulf %19, %4 : vector<128x128xf32>
    %cst_8 = arith.constant dense<0.000000e+00> : vector<128xf32>
    %21 = vector.multi_reduction <add>, %20, %cst_8 [1] : vector<128x128xf32> to vector<128xf32>
    %22 = vector.shape_cast %21 : vector<128xf32> to vector<128x1xf32>
    %23 = arith.truncf %20 : vector<128x128xf32> to vector<128x128xbf16>
    %c0_9 = arith.constant 0 : index
    %c0_10 = arith.constant 0 : index
    %24 = vector.load %arg2[%c0_9, %c0_10] : memref<128x128xbf16, #tpu.memory_space<vmem>>, vector<128x8xbf16>
    %cst_11 = arith.constant dense<0.000000e+00> : vector<128x8xf32>
    %25 = tpu.matmul %23, %24, %cst_11 {dimension_numbers = #tpu.dot_dimension_numbers<[1], [0], [0], [1], [0, 0, 1, 1], [], []>} : vector<128x128xbf16>, vector<128x8xbf16>, vector<128x8xf32> -> vector<128x8xf32>
    %26 = vector.extract_strided_slice %5 {offsets = [0, 1], sizes = [128, 1], strides = [1, 1]} : vector<128x2xf32> to vector<128x1xf32>
    %27 = vector.extract_strided_slice %7 {offsets = [1, 0], sizes = [1, 128], strides = [1, 1]} : vector<2x128xf32> to vector<1x128xf32>
    %28 = vector.broadcast %26 : vector<128x1xf32> to vector<128x128xf32>
    %29 = vector.broadcast %27 : vector<1x128xf32> to vector<128x128xf32>
    %30 = arith.addf %28, %29 : vector<128x128xf32>
    %cst_12 = arith.constant 0.00999999977 : f32
    %31 = vector.broadcast %cst_12 : f32 to vector<128x128xf32>
    %32 = arith.mulf %31, %30 : vector<128x128xf32>
    %33 = arith.maximumf %30, %32 : vector<128x128xf32>
    %34 = vector.extract_strided_slice %6 {offsets = [0, 1], sizes = [128, 1], strides = [1, 1]} : vector<128x2xf32> to vector<128x1xf32>
    %35 = vector.broadcast %34 : vector<128x1xf32> to vector<128x128xf32>
    %36 = arith.subf %33, %35 : vector<128x128xf32>
    %37 = math.exp %36 : vector<128x128xf32>
    %38 = arith.mulf %37, %4 : vector<128x128xf32>
    %cst_13 = arith.constant dense<0.000000e+00> : vector<128xf32>
    %39 = vector.multi_reduction <add>, %38, %cst_13 [1] : vector<128x128xf32> to vector<128xf32>
    %40 = vector.shape_cast %39 : vector<128xf32> to vector<128x1xf32>
    %41 = arith.truncf %38 : vector<128x128xf32> to vector<128x128xbf16>
    %c0_14 = arith.constant 0 : index
    %c8 = arith.constant 8 : index
    %42 = vector.load %arg2[%c0_14, %c8] : memref<128x128xbf16, #tpu.memory_space<vmem>>, vector<128x8xbf16>
    %cst_15 = arith.constant dense<0.000000e+00> : vector<128x8xf32>
    %43 = tpu.matmul %41, %42, %cst_15 {dimension_numbers = #tpu.dot_dimension_numbers<[1], [0], [0], [1], [0, 0, 1, 1], [], []>} : vector<128x128xbf16>, vector<128x8xbf16>, vector<128x8xf32> -> vector<128x8xf32>
    %c0_16 = arith.constant 0 : index
    %c0_17 = arith.constant 0 : index
    %44 = vector.load %arg8[%c0_16, %c0_17] : memref<128x2xf32, #tpu.memory_space<vmem>>, vector<128x2xf32>
    %45 = tpu.concatenate %22, %40 in 1 : vector<128x1xf32>, vector<128x1xf32> -> vector<128x2xf32>
    %46 = arith.addf %44, %45 : vector<128x2xf32>
    %c0_18 = arith.constant 0 : index
    %c0_19 = arith.constant 0 : index
    %47 = vector.load %arg8[%c0_18, %c0_19] : memref<128x2xf32, #tpu.memory_space<vmem>>, vector<128x2xf32>
    tpu.vector_store %arg8[%c0_18, %c0_19], %46 {strides = array<i32>} : memref<128x2xf32, #tpu.memory_space<vmem>>, vector<128x2xf32>,
    %cst_20 = arith.constant 0.000000e+00 : f32
    %48 = vector.broadcast %cst_20 : f32 to vector<128x112xf32>
    %c0_21 = arith.constant 0 : index
    %c0_22 = arith.constant 0 : index
    %49 = vector.load %arg9[%c0_21, %c0_22] : memref<128x128xf32, #tpu.memory_space<vmem>>, vector<128x128xf32>
    %50 = tpu.concatenate %25, %43, %48 in 1 : vector<128x8xf32>, vector<128x8xf32>, vector<128x112xf32> -> vector<128x128xf32>
    %51 = arith.addf %49, %50 : vector<128x128xf32>
    %c0_23 = arith.constant 0 : index
    %c0_24 = arith.constant 0 : index
    %52 = vector.load %arg9[%c0_23, %c0_24] : memref<128x128xf32, #tpu.memory_space<vmem>>, vector<128x128xf32>
    tpu.vector_store %arg9[%c0_23, %c0_24], %51 {strides = array<i32>} : memref<128x128xf32, #tpu.memory_space<vmem>>, vector<128x128xf32>,
    %c0_i32_25 = arith.constant 0 : i32
    %53 = arith.cmpi eq, %arg1, %c0_i32_25 : i32
    %54 = arith.extui %53 : i1 to i32
    %c0_i32_26 = arith.constant 0 : i32
    %55 = arith.cmpi ne, %54, %c0_i32_26 : i32
    scf.if %55 {
      %c0_27 = arith.constant 0 : index
      %c0_28 = arith.constant 0 : index
      %56 = vector.load %arg8[%c0_27, %c0_28] : memref<128x2xf32, #tpu.memory_space<vmem>>, vector<128x2xf32>
      %cst_29 = arith.constant 9.99999968E-21 : f32
      %57 = vector.broadcast %cst_29 : f32 to vector<128x2xf32>
      %58 = arith.maximumf %56, %57 : vector<128x2xf32>
      %cst_30 = arith.constant 1.000000e+00 : f32
      %59 = vector.broadcast %cst_30 : f32 to vector<128x2xf32>
      %60 = arith.divf %59, %58 : vector<128x2xf32>
      %c0_31 = arith.constant 0 : index
      %c0_32 = arith.constant 0 : index
      %61 = vector.load %arg9[%c0_31, %c0_32] : memref<128x128xf32, #tpu.memory_space<vmem>>, vector<128x128xf32>
      %62 = vector.extract_strided_slice %61 {offsets = [0, 0], sizes = [128, 8], strides = [1, 1]} : vector<128x128xf32> to vector<128x8xf32>
      %63 = vector.extract_strided_slice %60 {offsets = [0, 0], sizes = [128, 1], strides = [1, 1]} : vector<128x2xf32> to vector<128x1xf32>
      %64 = vector.broadcast %63 : vector<128x1xf32> to vector<128x8xf32>
      %65 = arith.mulf %62, %64 : vector<128x8xf32>
      %66 = vector.extract_strided_slice %61 {offsets = [0, 8], sizes = [128, 8], strides = [1, 1]} : vector<128x128xf32> to vector<128x8xf32>
      %67 = vector.extract_strided_slice %60 {offsets = [0, 1], sizes = [128, 1], strides = [1, 1]} : vector<128x2xf32> to vector<128x1xf32>
      %68 = vector.broadcast %67 : vector<128x1xf32> to vector<128x8xf32>
      %69 = arith.mulf %66, %68 : vector<128x8xf32>
      %70 = vector.extract_strided_slice %61 {offsets = [0, 16], sizes = [128, 112], strides = [1, 1]} : vector<128x128xf32> to vector<128x112xf32>
      %71 = tpu.concatenate %65, %69, %70 in 1 : vector<128x8xf32>, vector<128x8xf32>, vector<128x112xf32> -> vector<128x128xf32>
      %cst_33 = arith.constant 0.000000e+00 : f32
      %72 = vector.broadcast %cst_33 : f32 to vector<128x128xf32>
      %73 = arith.cmpf ogt, %71, %72 : vector<128x128xf32>
      %74 = math.exp %71 : vector<128x128xf32>
      %cst_34 = arith.constant 1.000000e+00 : f32
      %75 = vector.broadcast %cst_34 : f32 to vector<128x128xf32>
      %76 = arith.subf %74, %75 : vector<128x128xf32>
      %77 = arith.select %73, %71, %76 : vector<128x128xi1>, vector<128x128xf32>
      %c0_35 = arith.constant 0 : index
      %c0_36 = arith.constant 0 : index
      %78 = vector.load %arg7[%c0_35, %c0_36] : memref<128x128xf32, #tpu.memory_space<vmem>>, vector<128x128xf32>
      tpu.vector_store %arg7[%c0_35, %c0_36], %77 {strides = array<i32>} : memref<128x128xf32, #tpu.memory_space<vmem>>, vector<128x128xf32>,
    } else {
    }
    return
  }
  func.func @transform_0(%arg0: i32, %arg1: i32) -> (i32, i32) {
    %c0_i32 = arith.constant 0 : i32
    %c0_i32_0 = arith.constant 0 : i32
    return %arg1, %c0_i32 : i32, i32
  }
  func.func @transform_1(%arg0: i32, %arg1: i32) -> (i32, i32) {
    %c0_i32 = arith.constant 0 : i32
    %c0_i32_0 = arith.constant 0 : i32
    return %c0_i32, %arg1 : i32, i32
  }
  func.func @transform_2(%arg0: i32, %arg1: i32) -> (i32, i32) {
    %c0_i32 = arith.constant 0 : i32
    %c0_i32_0 = arith.constant 0 : i32
    return %arg0, %c0_i32 : i32, i32
  }
  func.func @transform_3(%arg0: i32, %arg1: i32) -> (i32, i32) {
    %c0_i32 = arith.constant 0 : i32
    %c0_i32_0 = arith.constant 0 : i32
    return %arg0, %c0_i32 : i32, i32
  }
  func.func @transform_4(%arg0: i32, %arg1: i32) -> (i32, i32) {
    %c0_i32 = arith.constant 0 : i32
    return %arg0, %arg1 : i32, i32
  }
  func.func @transform_5(%arg0: i32, %arg1: i32) -> (i32, i32) {
    %c0_i32 = arith.constant 0 : i32
    %c0_i32_0 = arith.constant 0 : i32
    return %arg0, %c0_i32 : i32, i32
  }
}

module attributes {stable_mosaic.version = 11 : i64} {
  func.func @_proj_kernel(%arg0: i32, %arg1: memref<128x128xbf16, #tpu.memory_space<vmem>>, %arg2: memref<128x130xbf16, #tpu.memory_space<vmem>>, %arg3: memref<128x128xbf16, #tpu.memory_space<vmem>>, %arg4: memref<128x1xf32, #tpu.memory_space<vmem>>, %arg5: memref<128x1xf32, #tpu.memory_space<vmem>>) attributes {dimension_semantics = [#tpu.dimension_semantics<parallel>], iteration_bounds = array<i64: 1>, scalar_prefetch = 0 : i64, scratch_operands = 0 : i64, tpu.core_type = #tpu.core_type<tc>, window_params = [{transform_indices = @transform_0, window_bounds = array<i64: 128, 128>}, {pipeline_mode = #tpu.pipeline_mode<synchronous>, transform_indices = @transform_1, window_bounds = array<i64: 128, 130>}, {transform_indices = @transform_2, window_bounds = array<i64: 128, 128>}, {transform_indices = @transform_3, window_bounds = array<i64: 128, 1>}, {transform_indices = @transform_4, window_bounds = array<i64: 128, 1>}]} {
    %c0 = arith.constant 0 : index
    %c0_0 = arith.constant 0 : index
    %0 = vector.load %arg1[%c0, %c0_0] : memref<128x128xbf16, #tpu.memory_space<vmem>>, vector<128x128xbf16>
    %c0_1 = arith.constant 0 : index
    %c0_2 = arith.constant 0 : index
    %1 = vector.load %arg2[%c0_1, %c0_2] : memref<128x130xbf16, #tpu.memory_space<vmem>>, vector<128x130xbf16>
    %cst = arith.constant dense<0.000000e+00> : vector<128x130xf32>
    %2 = tpu.matmul %0, %1, %cst {dimension_numbers = #tpu.dot_dimension_numbers<[1], [0], [0], [1], [0, 0, 1, 1], [], []>} : vector<128x128xbf16>, vector<128x130xbf16>, vector<128x130xf32> -> vector<128x130xf32>
    %3 = vector.extract_strided_slice %2 {offsets = [0, 0], sizes = [128, 128], strides = [1, 1]} : vector<128x130xf32> to vector<128x128xf32>
    %4 = arith.truncf %3 : vector<128x128xf32> to vector<128x128xbf16>
    %c0_3 = arith.constant 0 : index
    %c0_4 = arith.constant 0 : index
    %5 = vector.load %arg3[%c0_3, %c0_4] : memref<128x128xbf16, #tpu.memory_space<vmem>>, vector<128x128xbf16>
    tpu.vector_store %arg3[%c0_3, %c0_4], %4 {strides = array<i32>} : memref<128x128xbf16, #tpu.memory_space<vmem>>, vector<128x128xbf16>,
    %6 = vector.extract_strided_slice %2 {offsets = [0, 128], sizes = [128, 1], strides = [1, 1]} : vector<128x130xf32> to vector<128x1xf32>
    %c0_5 = arith.constant 0 : index
    %c0_6 = arith.constant 0 : index
    %7 = vector.load %arg4[%c0_5, %c0_6] : memref<128x1xf32, #tpu.memory_space<vmem>>, vector<128x1xf32>
    tpu.vector_store %arg4[%c0_5, %c0_6], %6 {strides = array<i32>} : memref<128x1xf32, #tpu.memory_space<vmem>>, vector<128x1xf32>,
    %8 = vector.extract_strided_slice %2 {offsets = [0, 129], sizes = [128, 1], strides = [1, 1]} : vector<128x130xf32> to vector<128x1xf32>
    %c0_7 = arith.constant 0 : index
    %c0_8 = arith.constant 0 : index
    %9 = vector.load %arg5[%c0_7, %c0_8] : memref<128x1xf32, #tpu.memory_space<vmem>>, vector<128x1xf32>
    tpu.vector_store %arg5[%c0_7, %c0_8], %8 {strides = array<i32>} : memref<128x1xf32, #tpu.memory_space<vmem>>, vector<128x1xf32>,
    return
  }
  func.func @transform_0(%arg0: i32) -> (i32, i32) {
    %c0_i32 = arith.constant 0 : i32
    %c0_i32_0 = arith.constant 0 : i32
    return %arg0, %c0_i32 : i32, i32
  }
  func.func @transform_1(%arg0: i32) -> (i32, i32) {
    %c0_i32 = arith.constant 0 : i32
    %c0_i32_0 = arith.constant 0 : i32
    %c0_i32_1 = arith.constant 0 : i32
    return %c0_i32, %c0_i32_0 : i32, i32
  }
  func.func @transform_2(%arg0: i32) -> (i32, i32) {
    %c0_i32 = arith.constant 0 : i32
    %c0_i32_0 = arith.constant 0 : i32
    return %arg0, %c0_i32 : i32, i32
  }
  func.func @transform_3(%arg0: i32) -> (i32, i32) {
    %c0_i32 = arith.constant 0 : i32
    %c0_i32_0 = arith.constant 0 : i32
    return %arg0, %c0_i32 : i32, i32
  }
  func.func @transform_4(%arg0: i32) -> (i32, i32) {
    %c0_i32 = arith.constant 0 : i32
    %c0_i32_0 = arith.constant 0 : i32
    return %arg0, %c0_i32 : i32, i32
  }
}

module attributes {stable_mosaic.version = 11 : i64} {
  func.func @_attn_kernel(%arg0: i32, %arg1: i32, %arg2: memref<128x128xbf16, #tpu.memory_space<vmem>>, %arg3: memref<1x128xf32, #tpu.memory_space<vmem>>, %arg4: memref<128x1xf32, #tpu.memory_space<vmem>>, %arg5: memref<128x1xf32, #tpu.memory_space<vmem>>, %arg6: memref<128x128xi8, #tpu.memory_space<vmem>>, %arg7: memref<128x128xf32, #tpu.memory_space<vmem>>, %arg8: memref<128x1xf32, #tpu.memory_space<vmem>>, %arg9: memref<128x128xf32, #tpu.memory_space<vmem>>) attributes {dimension_semantics = [#tpu.dimension_semantics<parallel>, #tpu.dimension_semantics<arbitrary>], iteration_bounds = array<i64: 1, 1>, scalar_prefetch = 0 : i64, scratch_operands = 2 : i64, tpu.core_type = #tpu.core_type<tc>, window_params = [{transform_indices = @transform_0, window_bounds = array<i64: 128, 128>}, {transform_indices = @transform_1, window_bounds = array<i64: 1, 128>}, {transform_indices = @transform_2, window_bounds = array<i64: 128, 1>}, {transform_indices = @transform_3, window_bounds = array<i64: 128, 1>}, {transform_indices = @transform_4, window_bounds = array<i64: 128, 128>}, {transform_indices = @transform_5, window_bounds = array<i64: 128, 128>}]} {
    %c0_i32 = arith.constant 0 : i32
    %0 = arith.cmpi eq, %arg1, %c0_i32 : i32
    %1 = arith.extui %0 : i1 to i32
    %c0_i32_0 = arith.constant 0 : i32
    %2 = arith.cmpi ne, %1, %c0_i32_0 : i32
    scf.if %2 {
      %cst_23 = arith.constant 0.000000e+00 : f32
      %34 = vector.broadcast %cst_23 : f32 to vector<128x1xf32>
      %c0_24 = arith.constant 0 : index
      %c0_25 = arith.constant 0 : index
      %35 = vector.load %arg8[%c0_24, %c0_25] : memref<128x1xf32, #tpu.memory_space<vmem>>, vector<128x1xf32>
      tpu.vector_store %arg8[%c0_24, %c0_25], %34 {strides = array<i32>} : memref<128x1xf32, #tpu.memory_space<vmem>>, vector<128x1xf32>,
      %cst_26 = arith.constant 0.000000e+00 : f32
      %36 = vector.broadcast %cst_26 : f32 to vector<128x128xf32>
      %c0_27 = arith.constant 0 : index
      %c0_28 = arith.constant 0 : index
      %37 = vector.load %arg9[%c0_27, %c0_28] : memref<128x128xf32, #tpu.memory_space<vmem>>, vector<128x128xf32>
      tpu.vector_store %arg9[%c0_27, %c0_28], %36 {strides = array<i32>} : memref<128x128xf32, #tpu.memory_space<vmem>>, vector<128x128xf32>,
    } else {
    }
    %c0 = arith.constant 0 : index
    %c0_1 = arith.constant 0 : index
    %3 = vector.load %arg6[%c0, %c0_1] : memref<128x128xi8, #tpu.memory_space<vmem>>, vector<128x128xi8>
    %4 = arith.sitofp %3 : vector<128x128xi8> to vector<128x128xf32>
    %c0_2 = arith.constant 0 : index
    %c0_3 = arith.constant 0 : index
    %5 = vector.load %arg4[%c0_2, %c0_3] : memref<128x1xf32, #tpu.memory_space<vmem>>, vector<128x1xf32>
    %c0_4 = arith.constant 0 : index
    %c0_5 = arith.constant 0 : index
    %6 = vector.load %arg5[%c0_4, %c0_5] : memref<128x1xf32, #tpu.memory_space<vmem>>, vector<128x1xf32>
    %c0_6 = arith.constant 0 : index
    %c0_7 = arith.constant 0 : index
    %7 = vector.load %arg3[%c0_6, %c0_7] : memref<1x128xf32, #tpu.memory_space<vmem>>, vector<1x128xf32>
    %8 = vector.broadcast %5 : vector<128x1xf32> to vector<128x128xf32>
    %9 = vector.broadcast %7 : vector<1x128xf32> to vector<128x128xf32>
    %10 = arith.addf %8, %9 : vector<128x128xf32>
    %cst = arith.constant 0.00999999977 : f32
    %11 = vector.broadcast %cst : f32 to vector<128x128xf32>
    %12 = arith.mulf %11, %10 : vector<128x128xf32>
    %13 = arith.maximumf %10, %12 : vector<128x128xf32>
    %14 = vector.broadcast %6 : vector<128x1xf32> to vector<128x128xf32>
    %15 = arith.subf %13, %14 : vector<128x128xf32>
    %16 = math.exp %15 : vector<128x128xf32>
    %17 = arith.mulf %16, %4 : vector<128x128xf32>
    %cst_8 = arith.constant dense<0.000000e+00> : vector<128xf32>
    %18 = vector.multi_reduction <add>, %17, %cst_8 [1] : vector<128x128xf32> to vector<128xf32>
    %19 = vector.shape_cast %18 : vector<128xf32> to vector<128x1xf32>
    %20 = arith.truncf %17 : vector<128x128xf32> to vector<128x128xbf16>
    %c0_9 = arith.constant 0 : index
    %c0_10 = arith.constant 0 : index
    %21 = vector.load %arg2[%c0_9, %c0_10] : memref<128x128xbf16, #tpu.memory_space<vmem>>, vector<128x4xbf16>
    %cst_11 = arith.constant dense<0.000000e+00> : vector<128x4xf32>
    %22 = tpu.matmul %20, %21, %cst_11 {dimension_numbers = #tpu.dot_dimension_numbers<[1], [0], [0], [1], [0, 0, 1, 1], [], []>} : vector<128x128xbf16>, vector<128x4xbf16>, vector<128x4xf32> -> vector<128x4xf32>
    %c0_12 = arith.constant 0 : index
    %c0_13 = arith.constant 0 : index
    %23 = vector.load %arg8[%c0_12, %c0_13] : memref<128x1xf32, #tpu.memory_space<vmem>>, vector<128x1xf32>
    %24 = arith.addf %23, %19 : vector<128x1xf32>
    %c0_14 = arith.constant 0 : index
    %c0_15 = arith.constant 0 : index
    %25 = vector.load %arg8[%c0_14, %c0_15] : memref<128x1xf32, #tpu.memory_space<vmem>>, vector<128x1xf32>
    tpu.vector_store %arg8[%c0_14, %c0_15], %24 {strides = array<i32>} : memref<128x1xf32, #tpu.memory_space<vmem>>, vector<128x1xf32>,
    %cst_16 = arith.constant 0.000000e+00 : f32
    %26 = vector.broadcast %cst_16 : f32 to vector<128x124xf32>
    %c0_17 = arith.constant 0 : index
    %c0_18 = arith.constant 0 : index
    %27 = vector.load %arg9[%c0_17, %c0_18] : memref<128x128xf32, #tpu.memory_space<vmem>>, vector<128x128xf32>
    %28 = tpu.concatenate %22, %26 in 1 : vector<128x4xf32>, vector<128x124xf32> -> vector<128x128xf32>
    %29 = arith.addf %27, %28 : vector<128x128xf32>
    %c0_19 = arith.constant 0 : index
    %c0_20 = arith.constant 0 : index
    %30 = vector.load %arg9[%c0_19, %c0_20] : memref<128x128xf32, #tpu.memory_space<vmem>>, vector<128x128xf32>
    tpu.vector_store %arg9[%c0_19, %c0_20], %29 {strides = array<i32>} : memref<128x128xf32, #tpu.memory_space<vmem>>, vector<128x128xf32>,
    %c0_i32_21 = arith.constant 0 : i32
    %31 = arith.cmpi eq, %arg1, %c0_i32_21 : i32
    %32 = arith.extui %31 : i1 to i32
    %c0_i32_22 = arith.constant 0 : i32
    %33 = arith.cmpi ne, %32, %c0_i32_22 : i32
    scf.if %33 {
      %c0_23 = arith.constant 0 : index
      %c0_24 = arith.constant 0 : index
      %34 = vector.load %arg8[%c0_23, %c0_24] : memref<128x1xf32, #tpu.memory_space<vmem>>, vector<128x1xf32>
      %cst_25 = arith.constant 9.99999968E-21 : f32
      %35 = vector.broadcast %cst_25 : f32 to vector<128x1xf32>
      %36 = arith.maximumf %34, %35 : vector<128x1xf32>
      %cst_26 = arith.constant 1.000000e+00 : f32
      %37 = vector.broadcast %cst_26 : f32 to vector<128x1xf32>
      %38 = arith.divf %37, %36 : vector<128x1xf32>
      %c0_27 = arith.constant 0 : index
      %c0_28 = arith.constant 0 : index
      %39 = vector.load %arg9[%c0_27, %c0_28] : memref<128x128xf32, #tpu.memory_space<vmem>>, vector<128x128xf32>
      %40 = vector.extract_strided_slice %39 {offsets = [0, 0], sizes = [128, 4], strides = [1, 1]} : vector<128x128xf32> to vector<128x4xf32>
      %41 = vector.broadcast %38 : vector<128x1xf32> to vector<128x4xf32>
      %42 = arith.mulf %40, %41 : vector<128x4xf32>
      %43 = vector.extract_strided_slice %39 {offsets = [0, 4], sizes = [128, 124], strides = [1, 1]} : vector<128x128xf32> to vector<128x124xf32>
      %44 = tpu.concatenate %42, %43 in 1 : vector<128x4xf32>, vector<128x124xf32> -> vector<128x128xf32>
      %c0_29 = arith.constant 0 : index
      %c0_30 = arith.constant 0 : index
      %45 = vector.load %arg7[%c0_29, %c0_30] : memref<128x128xf32, #tpu.memory_space<vmem>>, vector<128x128xf32>
      tpu.vector_store %arg7[%c0_29, %c0_30], %44 {strides = array<i32>} : memref<128x128xf32, #tpu.memory_space<vmem>>, vector<128x128xf32>,
    } else {
    }
    return
  }
  func.func @transform_0(%arg0: i32, %arg1: i32) -> (i32, i32) {
    %c0_i32 = arith.constant 0 : i32
    %c0_i32_0 = arith.constant 0 : i32
    return %arg1, %c0_i32 : i32, i32
  }
  func.func @transform_1(%arg0: i32, %arg1: i32) -> (i32, i32) {
    %c0_i32 = arith.constant 0 : i32
    %c0_i32_0 = arith.constant 0 : i32
    return %c0_i32, %arg1 : i32, i32
  }
  func.func @transform_2(%arg0: i32, %arg1: i32) -> (i32, i32) {
    %c0_i32 = arith.constant 0 : i32
    %c0_i32_0 = arith.constant 0 : i32
    return %arg0, %c0_i32 : i32, i32
  }
  func.func @transform_3(%arg0: i32, %arg1: i32) -> (i32, i32) {
    %c0_i32 = arith.constant 0 : i32
    %c0_i32_0 = arith.constant 0 : i32
    return %arg0, %c0_i32 : i32, i32
  }
  func.func @transform_4(%arg0: i32, %arg1: i32) -> (i32, i32) {
    %c0_i32 = arith.constant 0 : i32
    return %arg0, %arg1 : i32, i32
  }
  func.func @transform_5(%arg0: i32, %arg1: i32) -> (i32, i32) {
    %c0_i32 = arith.constant 0 : i32
    %c0_i32_0 = arith.constant 0 : i32
    return %arg0, %c0_i32 : i32, i32
  }
}

</mosaic_0001>

<bundles_post_ra>
// kernel: gat_forward.4
= control target key start
LH: loop header
LB: loop body
LE: loop exit
PB: predicated region body
PF: predicated region fallthrough
CT: control target
= control target key end

     0   :  { %10 = vsyncpa [#allocation3], 0  ;;  %s890_s0 = inlined_call_operand.hbm [shape: bf16[128,16], index: 0, kind: input, shape index: {}]   ;;  %s891_s1 = inlined_call_operand.hbm [shape: bf16[16,132], index: 1, kind: input, shape index: {}]   ;;  %s892_s2 = inlined_call_operand.hbm [shape: bf16[128,128], index: 2, kind: output, shape index: {0}]   ;;  %s893_s3 = inlined_call_operand.hbm [shape: f32[128,2], index: 3, kind: output, shape index: {1}]   ;;  %s894_s4 = inlined_call_operand.hbm [shape: f32[128,2], index: 4, kind: output, shape index: {2}]  }
   0x1   :  { %11 = vsyncpa [#allocation6], 0 }
   0x2   :  { %12 = vsyncpa [#allocation4], 0 }
   0x3   :  { %13 = vsyncpa [#allocation9], 0  ;;  %s716_s15 = smov [#allocation2]   ;;  %s598_s19 = scalar_lea.hbm %s890_s0, 1024 }
   0x4   :  { %s19_s16 = sshll.u32 %s716_s15, 4  ;;  %p599_p0 = scmp.ne.s32.totalorder %s890_s0, %s598_s19  ;;  %s20_s16 = int_to_ptr.vmem [resolvable:$true] %s19_s16 }
   0x5   :  { %p602_p1 = scmp.lt.u32.totalorder %s598_s19, %s890_s0 }
   0x7   :  { %p604_p2 = pnand %p602_p1, %p599_p0 }
   0x9   :  { %607 = shalt.err (!%p604_p2)
}
   0xa   :  { %s608_s24 = scalar_lea.vmem %s20_s16, 1024  ;;  %p613_p4 = scmp.lt.s32.totalorder %s20_s16, %s20_s16 }
   0xb   :  { %p609_p3 = scmp.ne.s32.totalorder %s20_s16, %s608_s24  ;;  %p614_p5 = scmp.lt.s32.totalorder %s608_s24, %s608_s24 }
   0xd   :  { %p615_p6 = por %p614_p5, %p613_p4 }
   0xf   :  { %p616_p7 = pnand %p615_p6, %p609_p3 }
  0x11   :  { %619 = shalt.err (!%p616_p7)
}
  0x12   :  { %s717_s25 = smov 64   ;;  %s718_s26 = smov 4  }
  0x13   :  { %25 = dma.hbm_to_vmem [thread:$0]  %s890_s0, 1024, %s20_s16, [#allocation3], %s717_s25, %s717_s25, %s718_s26  }
  0x14   :  { %s719_s29 = smov [#allocation5]   ;;  %s620_s7 = scalar_lea.hbm %s891_s1, 256 }
  0x15   :  { %s31_s30 = sshll.u32 %s719_s29, 4  ;;  %p621_p8 = scmp.ne.s32.totalorder %s891_s1, %s620_s7  ;;  %s32_s30 = int_to_ptr.vmem [resolvable:$true] %s31_s30 }
  0x16   :  { %p624_p9 = scmp.lt.u32.totalorder %s620_s7, %s891_s1 }
  0x18   :  { %p626_p10 = pnand %p624_p9, %p621_p8 }
  0x1a   :  { %629 = shalt.err (!%p626_p10)
}
  0x1b   :  { %s630_s12 = scalar_lea.vmem %s32_s30, 256  ;;  %p635_p12 = scmp.lt.s32.totalorder %s32_s30, %s32_s30 }
  0x1c   :  { %p631_p11 = scmp.ne.s32.totalorder %s32_s30, %s630_s12  ;;  %p636_p13 = scmp.lt.s32.totalorder %s630_s12, %s630_s12 }
  0x1e   :  { %p637_p0 = por %p636_p13, %p635_p12 }
  0x20   :  { %p638_p1 = pnand %p637_p0, %p631_p11 }
  0x22   :  { %641 = shalt.err (!%p638_p1)
}
  0x23   :  { %s720_s0 = smov 128   ;;  %s721_s13 = smov 8  }
  0x24   :  { %37 = dma.hbm_to_vmem [thread:$0]  %s891_s1, 256, %s32_s30, [#allocation6], %s720_s0, %s720_s0, %s721_s13  }
  0x25   :  { %708 = dma.done.wait [#allocation3], 1024  }
  0x26   :  { %709 = vsyncadd [#allocation3], 4294966272 }
  0x27   :  { %710 = dma.done.wait [#allocation6], 256  }
  0x28   :  { %711 = vsyncadd [#allocation6], 4294967040  ;;  %v722_v0 = vmov 0   ;;  %v587_v1 = vld [vmem:[#allocation5 + $0x4] ss:$8 sps:$4 sm:$0xff]   ;;  %vm113_vm0 = vcmask 130048  }
  0x29   :  { %170 = vmatprep.mubr.bf16.mxu0 %v722_v0  ;;  %210 = vmatprep.mubr.bf16.mxu1 %v722_v0  ;;  %v589_v2 = vld [vmem:[#allocation5] ss:$8 sps:$4 sm:$0xff]   ;;  %v594_v7 = vld [vmem:[#allocation2 + $0x10] sm:$0xff]   ;;  %v596_v9 = vld [vmem:[#allocation2 + $0x18] sm:$0xff]   ;;  %vm331_vm1 = vcmask 15360   ;;  %s723_s1 = smov 126  }
  0x2a   :  { %138 = vmatprep.subr.bf16.mxu0 %v587_v1  ;;  %574 = vmatprep.subr.bf16.mxu1 %v587_v1  ;;  %v590_v3 = vld [vmem:[#allocation2] sm:$0xff]   ;;  %v592_v5 = vld [vmem:[#allocation2 + $0x8] sm:$0xff]   ;;  %v595_v8 = vld [vmem:[#allocation2 + $0x30] sm:$0xff]   ;;  %s724_s16 = smov [#allocation8]   ;;  %s725_s18 = smov [#allocation7]  }
  0x2b   :  { %139 = vmatpush1.bf16.msra.mxu0 %v589_v2  ;;  %575 = vmatpush1.bf16.msra.mxu1 %v589_v2  ;;  %v591_v4 = vld [vmem:[#allocation2 + $0x20] sm:$0xff]   ;;  %v593_v6 = vld [vmem:[#allocation2 + $0x28] sm:$0xff]   ;;  %v597_v10 = vld [vmem:[#allocation2 + $0x38] sm:$0xff]   ;;  %s445_s17 = sshll.u32 %s724_s16, 4  ;;  %s433_s19 = sshll.u32 %s725_s18, 4  ;;  %s446_s17 = int_to_ptr.vmem [resolvable:$true] %s445_s17  ;;  %s819_s19 = int_to_ptr.vmem [resolvable:$true] %s433_s19 }
  0x2c   :  { %s642_s20 = scalar_lea.vmem %s446_s17, 2048  ;;  %p647_p3 = scmp.lt.s32.totalorder %s446_s17, %s446_s17 }
  0x2d   :  { %p643_p2 = scmp.ne.s32.totalorder %s446_s17, %s642_s20  ;;  %p648_p4 = scmp.lt.s32.totalorder %s642_s20, %s642_s20 }
  0x2e   :  { %487 = vmatmul.mubr.msk.bf16.vlgmr.msra.gmra.mrb[0].mxu0 %vm113_vm0, %v590_v3  ;;  %491 = vmatmul.mubr.msk.bf16.vlgmr.msra.gmra.mrb[0].mxu1 %vm113_vm0, %v591_v4 }
  0x2f   :  { %180 = vmatprep.mubr.bf16.mxu0 %v722_v0  ;;  %220 = vmatprep.mubr.bf16.mxu1 %v722_v0  ;;  %p649_p5 = por %p648_p4, %p647_p3 }
  0x31   :  { %p650_p6 = pnand %p649_p5, %p643_p2 }
  0x36   :  { %488 = vmatmul.mubr.msk.bf16.gmra.mrb[4].mxu0 %vm113_vm0, %v592_v5  ;;  %492 = vmatmul.mubr.msk.bf16.gmra.mrb[4].mxu1 %vm113_vm0, %v593_v6 }
  0x37   :  { %190 = vmatprep.mubr.bf16.mxu0 %v722_v0  ;;  %230 = vmatprep.mubr.bf16.mxu1 %v722_v0 }
  0x3e   :  { %489 = vmatmul.mubr.msk.bf16.gmra.mrb[8].mxu0 %vm113_vm0, %v594_v7  ;;  %493 = vmatmul.mubr.msk.bf16.gmra.mrb[8].mxu1 %vm113_vm0, %v595_v8 }
  0x3f   :  { %200 = vmatprep.mubr.bf16.mxu0 %v722_v0  ;;  %240 = vmatprep.mubr.bf16.mxu1 %v722_v0 }
  0x46   :  { %490 = vmatmul.mubr.msk.bf16.gmra.mrb[12].mxu0 %vm113_vm0, %v596_v9  ;;  %494 = vmatmul.mubr.msk.bf16.gmra.mrb[12].mxu1 %vm113_vm0, %v597_v10 }
 0x101   :  { %v172_v11 = vpop.f32.mrb[0].mxu0  ;;  %v212_v12 = vpop.f32.mrb[0].mxu1 }
 0x102   :  { %v174_v13 = vpop.f32.mrb[1].mxu0  ;;  %v214_v14 = vpop.f32.mrb[1].mxu1 }
 0x103   :  { %332 = vst.msk [vmem:[#allocation8] sm:$0xff] %vm331_vm1, %v174_v13  ;;  %340 = vst.msk [vmem:[#allocation8 + $0x40] sm:$0xff] %vm331_vm1, %v214_v14  ;;  %v216_v15 = vpop.f32.mrb[2].mxu1  ;;  %364 = vrot.lane.b32.xlu0 %v174_v13, %s723_s1  ;;  %v176_v16 = vpop.f32.mrb[2].mxu0 }
 0x104   :  { %v550_v17 = vpack.c.bf16 %v216_v15, %v212_v12  ;;  %v530_v18 = vpack.c.bf16 %v176_v16, %v172_v11  ;;  %v178_v19 = vpop.f32.mrb[3].mxu0  ;;  %v218_v20 = vpop.f32.mrb[3].mxu1 }
 0x105   :  { %333 = vst.msk [vmem:[#allocation8 + $0x8] sm:$0xff] %vm331_vm1, %v178_v19  ;;  %341 = vst.msk [vmem:[#allocation8 + $0x48] sm:$0xff] %vm331_vm1, %v218_v20  ;;  %382 = vrot.lane.b32.xlu1 %v218_v20, %s723_s1 }
 0x106   :  { %570 = vst [vmem:[#allocation7 + $0x20] sm:$0xff] %v550_v17   ;;  %531 = vst [vmem:[#allocation7] sm:$0xff] %v530_v18  }
 0x107   :  { %380 = vrot.lane.b32.xlu0 %v214_v14, %s723_s1 }
 0x109   :  { %v182_v21 = vpop.f32.mrb[4].mxu0  ;;  %v222_v22 = vpop.f32.mrb[4].mxu1 }
 0x10a   :  { %v184_v23 = vpop.f32.mrb[5].mxu0  ;;  %v224_v24 = vpop.f32.mrb[5].mxu1 }
 0x10b   :  { %334 = vst.msk [vmem:[#allocation8 + $0x10] sm:$0xff] %vm331_vm1, %v184_v23  ;;  %366 = vrot.lane.b32.xlu0 %v178_v19, %s723_s1  ;;  %368 = vrot.lane.b32.xlu1 %v184_v23, %s723_s1  ;;  %v186_v25 = vpop.f32.mrb[6].mxu0  ;;  %342 = vst.msk [vmem:[#allocation8 + $0x50] sm:$0xff] %vm331_vm1, %v224_v24  ;;  %v226_v26 = vpop.f32.mrb[6].mxu1 }
 0x10c   :  { %v535_v27 = vpack.c.bf16 %v186_v25, %v182_v21  ;;  %v188_v28 = vpop.f32.mrb[7].mxu0  ;;  %v555_v29 = vpack.c.bf16 %v226_v26, %v222_v22  ;;  %v228_v30 = vpop.f32.mrb[7].mxu1 }
 0x10d   :  { %335 = vst.msk [vmem:[#allocation8 + $0x18] sm:$0xff] %vm331_vm1, %v188_v28  ;;  %343 = vst.msk [vmem:[#allocation8 + $0x58] sm:$0xff] %vm331_vm1, %v228_v30 }
 0x10e   :  { %567 = vst [vmem:[#allocation7 + $0x8] sm:$0xff] %v535_v27   ;;  %571 = vst [vmem:[#allocation7 + $0x28] sm:$0xff] %v555_v29  }
 0x10f   :  { %370 = vrot.lane.b32.xlu1 %v188_v28, %s723_s1  ;;  %384 = vrot.lane.b32.xlu0 %v224_v24, %s723_s1 }
 0x111   :  { %v192_v31 = vpop.f32.mrb[8].mxu0  ;;  %v232_v32 = vpop.f32.mrb[8].mxu1 }
 0x112   :  { %v194_v33 = vpop.f32.mrb[9].mxu0  ;;  %v234_v34 = vpop.f32.mrb[9].mxu1 }
 0x113   :  { %336 = vst.msk [vmem:[#allocation8 + $0x20] sm:$0xff] %vm331_vm1, %v194_v33  ;;  %386 = vrot.lane.b32.xlu1 %v228_v30, %s723_s1  ;;  %v196_v35 = vpop.f32.mrb[10].mxu0  ;;  %372 = vrot.lane.b32.xlu0 %v194_v33, %s723_s1  ;;  %344 = vst.msk [vmem:[#allocation8 + $0x60] sm:$0xff] %vm331_vm1, %v234_v34  ;;  %v236_v36 = vpop.f32.mrb[10].mxu1 }
 0x114   :  { %v540_v37 = vpack.c.bf16 %v196_v35, %v192_v31  ;;  %v198_v38 = vpop.f32.mrb[11].mxu0  ;;  %v560_v39 = vpack.c.bf16 %v236_v36, %v232_v32  ;;  %v238_v40 = vpop.f32.mrb[11].mxu1 }
 0x115   :  { %337 = vst.msk [vmem:[#allocation8 + $0x28] sm:$0xff] %vm331_vm1, %v198_v38  ;;  %345 = vst.msk [vmem:[#allocation8 + $0x68] sm:$0xff] %vm331_vm1, %v238_v40 }
 0x116   :  { %568 = vst [vmem:[#allocation7 + $0x10] sm:$0xff] %v540_v37   ;;  %572 = vst [vmem:[#allocation7 + $0x30] sm:$0xff] %v560_v39  }
 0x117   :  { %374 = vrot.lane.b32.xlu1 %v198_v38, %s723_s1  ;;  %388 = vrot.lane.b32.xlu0 %v234_v34, %s723_s1 }
 0x119   :  { %v202_v41 = vpop.f32.mrb[12].mxu0  ;;  %v242_v42 = vpop.f32.mrb[12].mxu1 }
 0x11a   :  { %v204_v43 = vpop.f32.mrb[13].mxu0  ;;  %v244_v44 = vpop.f32.mrb[13].mxu1 }
 0x11b   :  { %338 = vst.msk [vmem:[#allocation8 + $0x30] sm:$0xff] %vm331_vm1, %v204_v43  ;;  %390 = vrot.lane.b32.xlu1 %v238_v40, %s723_s1  ;;  %v206_v45 = vpop.f32.mrb[14].mxu0  ;;  %376 = vrot.lane.b32.xlu0 %v204_v43, %s723_s1  ;;  %346 = vst.msk [vmem:[#allocation8 + $0x70] sm:$0xff] %vm331_vm1, %v244_v44  ;;  %v246_v46 = vpop.f32.mrb[14].mxu1 }
 0x11c   :  { %v545_v47 = vpack.c.bf16 %v206_v45, %v202_v41  ;;  %v208_v48 = vpop.f32.mrb[15].mxu0  ;;  %v565_v49 = vpack.c.bf16 %v246_v46, %v242_v42  ;;  %v248_v50 = vpop.f32.mrb[15].mxu1 }
 0x11d   :  { %339 = vst.msk [vmem:[#allocation8 + $0x38] sm:$0xff] %vm331_vm1, %v208_v48  ;;  %347 = vst.msk [vmem:[#allocation8 + $0x78] sm:$0xff] %vm331_vm1, %v248_v50 }
 0x11e   :  { %569 = vst [vmem:[#allocation7 + $0x18] sm:$0xff] %v545_v47   ;;  %573 = vst [vmem:[#allocation7 + $0x38] sm:$0xff] %v565_v49  }
 0x11f   :  { %653 = shalt.err (!%p650_p6)
}
 0x120   :  { %s654_s23 = scalar_lea.hbm %s893_s3, 2048 }
 0x121   :  { %p655_p7 = scmp.ne.s32.totalorder %s893_s3, %s654_s23  ;;  %p658_p8 = scmp.lt.u32.totalorder %s654_s23, %s893_s3 }
 0x123   :  { %p660_p9 = pnand %p658_p8, %p655_p7 }
 0x125   :  { %663 = shalt.err (!%p660_p9)
}
 0x126   :  { %451 = dma.vmem_to_hbm [thread:$0]  %s446_s17, 2048, %s893_s3, [#allocation9], %s720_s0, %s720_s0, %s721_s13  }
 0x127   :  { %378 = vrot.lane.b32.xlu1 %v208_v48, %s723_s1  ;;  %392 = vrot.lane.b32.xlu0 %v244_v44, %s723_s1  ;;  %s664_s6 = scalar_lea.vmem %s819_s19, 1024  ;;  %p669_p11 = scmp.lt.s32.totalorder %s819_s19, %s819_s19 }
 0x128   :  { %p665_p10 = scmp.ne.s32.totalorder %s819_s19, %s664_s6  ;;  %p670_p12 = scmp.lt.s32.totalorder %s664_s6, %s664_s6 }
 0x12a   :  { %p671_p13 = por %p670_p12, %p669_p11 }
 0x12c   :  { %p672_p0 = pnand %p671_p13, %p665_p10 }
 0x12e   :  { %675 = shalt.err (!%p672_p0)
}
 0x12f   :  { %s676_s9 = scalar_lea.hbm %s892_s2, 1024 }
 0x130   :  { %p677_p1 = scmp.ne.s32.totalorder %s892_s2, %s676_s9  ;;  %p680_p2 = scmp.lt.u32.totalorder %s676_s9, %s892_s2 }
 0x132   :  { %p682_p3 = pnand %p680_p2, %p677_p1 }
 0x134   :  { %685 = shalt.err (!%p682_p3)
}
 0x135   :  { %439 = dma.vmem_to_hbm [thread:$0]  %s819_s19, 1024, %s892_s2, [#allocation4], %s717_s25, %s717_s25, %s718_s26  }
 0x136   :  { %394 = vrot.lane.b32.xlu1 %v248_v50, %s723_s1  ;;  %s726_s2 = smov [#allocation10]  }
 0x137   :  { %s457_s25 = sshll.u32 %s726_s2, 4  ;;  %s458_s25 = int_to_ptr.vmem [resolvable:$true] %s457_s25 }
 0x138   :  { %s686_s26 = scalar_lea.vmem %s458_s25, 2048  ;;  %p691_p5 = scmp.lt.s32.totalorder %s458_s25, %s458_s25 }
 0x139   :  { %p687_p4 = scmp.ne.s32.totalorder %s458_s25, %s686_s26  ;;  %p692_p6 = scmp.lt.s32.totalorder %s686_s26, %s686_s26 }
 0x13b   :  { %p693_p7 = por %p692_p6, %p691_p5 }
 0x13d   :  { %p694_p8 = pnand %p693_p7, %p687_p4 }
 0x175   :  { %v365_v51 = vpop.permute.xlu0 %364 }
 0x176   :  { %412 = vst.msk [vmem:[#allocation10] sm:$0xff] %vm331_vm1, %v365_v51 }
 0x177   :  { %v383_v52 = vpop.permute.xlu1 %382 }
 0x178   :  { %421 = vst.msk [vmem:[#allocation10 + $0x48] sm:$0xff] %vm331_vm1, %v383_v52 }
 0x179   :  { %v381_v53 = vpop.permute.xlu0 %380 }
 0x17a   :  { %420 = vst.msk [vmem:[#allocation10 + $0x40] sm:$0xff] %vm331_vm1, %v381_v53 }
 0x17d   :  { %v367_v54 = vpop.permute.xlu0 %366  ;;  %v369_v55 = vpop.permute.xlu1 %368 }
 0x17e   :  { %413 = vst.msk [vmem:[#allocation10 + $0x8] sm:$0xff] %vm331_vm1, %v367_v54  ;;  %414 = vst.msk [vmem:[#allocation10 + $0x10] sm:$0xff] %vm331_vm1, %v369_v55 }
 0x181   :  { %v371_v56 = vpop.permute.xlu1 %370  ;;  %v385_v57 = vpop.permute.xlu0 %384 }
 0x182   :  { %415 = vst.msk [vmem:[#allocation10 + $0x18] sm:$0xff] %vm331_vm1, %v371_v56  ;;  %422 = vst.msk [vmem:[#allocation10 + $0x50] sm:$0xff] %vm331_vm1, %v385_v57 }
 0x185   :  { %v387_v58 = vpop.permute.xlu1 %386  ;;  %v373_v59 = vpop.permute.xlu0 %372 }
 0x186   :  { %423 = vst.msk [vmem:[#allocation10 + $0x58] sm:$0xff] %vm331_vm1, %v387_v58  ;;  %416 = vst.msk [vmem:[#allocation10 + $0x20] sm:$0xff] %vm331_vm1, %v373_v59 }
 0x189   :  { %v375_v60 = vpop.permute.xlu1 %374  ;;  %v389_v61 = vpop.permute.xlu0 %388 }
 0x18a   :  { %417 = vst.msk [vmem:[#allocation10 + $0x28] sm:$0xff] %vm331_vm1, %v375_v60  ;;  %424 = vst.msk [vmem:[#allocation10 + $0x60] sm:$0xff] %vm331_vm1, %v389_v61 }
 0x18d   :  { %v391_v62 = vpop.permute.xlu1 %390  ;;  %v377_v63 = vpop.permute.xlu0 %376 }
 0x18e   :  { %425 = vst.msk [vmem:[#allocation10 + $0x68] sm:$0xff] %vm331_vm1, %v391_v62  ;;  %418 = vst.msk [vmem:[#allocation10 + $0x30] sm:$0xff] %vm331_vm1, %v377_v63 }
 0x199   :  { %v379_v0 = vpop.permute.xlu1 %378  ;;  %v393_v1 = vpop.permute.xlu0 %392 }
 0x19a   :  { %419 = vst.msk [vmem:[#allocation10 + $0x38] sm:$0xff] %vm331_vm1, %v379_v0  ;;  %426 = vst.msk [vmem:[#allocation10 + $0x70] sm:$0xff] %vm331_vm1, %v393_v1 }
 0x1a8   :  { %v395_v2 = vpop.permute.xlu1 %394 }
 0x1a9   :  { %427 = vst.msk [vmem:[#allocation10 + $0x78] sm:$0xff] %vm331_vm1, %v395_v2 }
 0x1aa   :  { %697 = shalt.err (!%p694_p8)
}
 0x1ab   :  { %s698_s17 = scalar_lea.hbm %s894_s4, 2048 }
 0x1ac   :  { %p699_p9 = scmp.ne.s32.totalorder %s894_s4, %s698_s17  ;;  %p702_p10 = scmp.lt.u32.totalorder %s698_s17, %s894_s4 }
 0x1ae   :  { %p704_p11 = pnand %p702_p10, %p699_p9 }
 0x1b0   :  { %707 = shalt.err (!%p704_p11)
}
 0x1b1   :  { %463 = dma.vmem_to_hbm [thread:$0]  %s458_s25, 2048, %s894_s4, [#allocation9], %s720_s0, %s720_s0, %s721_s13  }
 0x1b2   :  { %712 = dma.done.wait [#allocation4], 1024  }
 0x1b3   :  { %713 = vsyncadd [#allocation4], 4294966272 }
 0x1b4   :  { %714 = dma.done.wait [#allocation9], 4096  }
 0x1b5   :  { %715 = vsyncadd [#allocation9], 4294963200 }
 0x1b6   :  { %473 = vsyncpa [#allocation3], 1 }
 0x1b7   :  { %474 = vsyncpa [#allocation6], 1 }
 0x1b8   :  { %475 = vsyncpa [#allocation4], 1 }
 0x1b9   :  { %476 = vsyncpa [#allocation9], 1 }

// kernel: gat_forward.6
= control target key start
LH: loop header
LB: loop body
LE: loop exit
PB: predicated region body
PF: predicated region fallthrough
CT: control target
= control target key end

     0   :  { %10 = vsyncpa [#allocation3], 0  ;;  %s998_s0 = inlined_call_operand.hbm [shape: bf16[128,128], index: 0, kind: input, shape index: {}]   ;;  %s999_s1 = inlined_call_operand.hbm [shape: bf16[128,130], index: 1, kind: input, shape index: {}]   ;;  %s1000_s2 = inlined_call_operand.hbm [shape: bf16[128,128], index: 2, kind: output, shape index: {0}]   ;;  %s1001_s3 = inlined_call_operand.hbm [shape: f32[128,1], index: 3, kind: output, shape index: {1}]   ;;  %s1002_s4 = inlined_call_operand.hbm [shape: f32[128,1], index: 4, kind: output, shape index: {2}]  }
   0x1   :  { %11 = vsyncpa [#allocation6], 0 }
   0x2   :  { %12 = vsyncpa [#allocation4], 0 }
   0x3   :  { %13 = vsyncpa [#allocation9], 0  ;;  %s824_s15 = smov [#allocation2]   ;;  %s706_s19 = scalar_lea.hbm %s998_s0, 1024 }
   0x4   :  { %s19_s16 = sshll.u32 %s824_s15, 4  ;;  %p707_p0 = scmp.ne.s32.totalorder %s998_s0, %s706_s19  ;;  %s20_s16 = int_to_ptr.vmem [resolvable:$true] %s19_s16 }
   0x5   :  { %p710_p1 = scmp.lt.u32.totalorder %s706_s19, %s998_s0 }
   0x7   :  { %p712_p2 = pnand %p710_p1, %p707_p0 }
   0x9   :  { %715 = shalt.err (!%p712_p2)
}
   0xa   :  { %s716_s24 = scalar_lea.vmem %s20_s16, 1024  ;;  %p721_p4 = scmp.lt.s32.totalorder %s20_s16, %s20_s16 }
   0xb   :  { %p717_p3 = scmp.ne.s32.totalorder %s20_s16, %s716_s24  ;;  %p722_p5 = scmp.lt.s32.totalorder %s716_s24, %s716_s24 }
   0xd   :  { %p723_p6 = por %p722_p5, %p721_p4 }
   0xf   :  { %p724_p7 = pnand %p723_p6, %p717_p3 }
  0x11   :  { %727 = shalt.err (!%p724_p7)
}
  0x12   :  { %s825_s25 = smov 64   ;;  %s826_s26 = smov 4  }
  0x13   :  { %25 = dma.hbm_to_vmem [thread:$0]  %s998_s0, 1024, %s20_s16, [#allocation3], %s825_s25, %s825_s25, %s826_s26  }
  0x14   :  { %s827_s29 = smov [#allocation5]   ;;  %s728_s7 = scalar_lea.hbm %s999_s1, 2048 }
  0x15   :  { %s31_s30 = sshll.u32 %s827_s29, 4  ;;  %p729_p8 = scmp.ne.s32.totalorder %s999_s1, %s728_s7  ;;  %s32_s30 = int_to_ptr.vmem [resolvable:$true] %s31_s30 }
  0x16   :  { %p732_p9 = scmp.lt.u32.totalorder %s728_s7, %s999_s1 }
  0x18   :  { %p734_p10 = pnand %p732_p9, %p729_p8 }
  0x1a   :  { %737 = shalt.err (!%p734_p10)
}
  0x1b   :  { %s738_s12 = scalar_lea.vmem %s32_s30, 2048  ;;  %p743_p12 = scmp.lt.s32.totalorder %s32_s30, %s32_s30 }
  0x1c   :  { %p739_p11 = scmp.ne.s32.totalorder %s32_s30, %s738_s12  ;;  %p744_p13 = scmp.lt.s32.totalorder %s738_s12, %s738_s12 }
  0x1e   :  { %p745_p0 = por %p744_p13, %p743_p12 }
  0x20   :  { %p746_p1 = pnand %p745_p0, %p739_p11 }
  0x22   :  { %749 = shalt.err (!%p746_p1)
}
  0x23   :  { %s828_s0 = smov 128   ;;  %s829_s13 = smov 8  }
  0x24   :  { %37 = dma.hbm_to_vmem [thread:$0]  %s999_s1, 2048, %s32_s30, [#allocation6], %s828_s0, %s828_s0, %s829_s13  }
  0x25   :  { %816 = dma.done.wait [#allocation3], 1024  }
  0x26   :  { %817 = vsyncadd [#allocation3], 4294966272 }
  0x27   :  { %818 = dma.done.wait [#allocation6], 2048  }
  0x28   :  { %819 = vsyncadd [#allocation6], 4294965248  ;;  %v830_v0 = vmov 0   ;;  %v674_v1 = vld [vmem:[#allocation5 + $0x4] ss:$8 sps:$4 sm:$0xff]   ;;  %v702_v21 = vld [vmem:[#allocation2 + $0x10] sm:$0xff]  }
  0x29   :  { %237 = vmatprep.mubr.bf16.mxu0 %v830_v0  ;;  %277 = vmatprep.mubr.bf16.mxu1 %v830_v0  ;;  %v676_v2 = vld [vmem:[#allocation5] ss:$8 sps:$4 sm:$0xff]   ;;  %v677_v3 = vld [vmem:[#allocation5 + $0x14] ss:$8 sps:$4 sm:$0xff]   ;;  %v679_v4 = vld [vmem:[#allocation5 + $0x10] ss:$8 sps:$4 sm:$0xff]  }
  0x2a   :  { %205 = vmatprep.subr.bf16.mxu0 %v674_v1  ;;  %647 = vmatprep.subr.bf16.mxu1 %v674_v1  ;;  %v680_v5 = vld [vmem:[#allocation5 + $0x24] ss:$8 sps:$4 sm:$0xff]   ;;  %v682_v6 = vld [vmem:[#allocation5 + $0x20] ss:$8 sps:$4 sm:$0xff]   ;;  %v683_v7 = vld [vmem:[#allocation5 + $0x34] ss:$8 sps:$4 sm:$0xff]  }
  0x2b   :  { %206 = vmatpush1.bf16.msra.mxu0 %v676_v2  ;;  %655 = vmatpush1.bf16.msra.mxu1 %v676_v2  ;;  %v685_v8 = vld [vmem:[#allocation5 + $0x30] ss:$8 sps:$4 sm:$0xff]   ;;  %v686_v9 = vld [vmem:[#allocation5 + $0x44] ss:$8 sps:$4 sm:$0xff]   ;;  %v688_v10 = vld [vmem:[#allocation5 + $0x40] ss:$8 sps:$4 sm:$0xff]  }
  0x2c   :  { %207 = vmatprep.subr.bf16.mxu0 %v677_v3  ;;  %648 = vmatprep.subr.bf16.mxu1 %v677_v3  ;;  %v689_v11 = vld [vmem:[#allocation5 + $0x54] ss:$8 sps:$4 sm:$0xff]   ;;  %v691_v12 = vld [vmem:[#allocation5 + $0x50] ss:$8 sps:$4 sm:$0xff]   ;;  %v692_v13 = vld [vmem:[#allocation5 + $0x64] ss:$8 sps:$4 sm:$0xff]  }
  0x2d   :  { %v694_v14 = vld [vmem:[#allocation5 + $0x60] ss:$8 sps:$4 sm:$0xff]   ;;  %v695_v15 = vld [vmem:[#allocation5 + $0x74] ss:$8 sps:$4 sm:$0xff]   ;;  %v697_v16 = vld [vmem:[#allocation5 + $0x70] ss:$8 sps:$4 sm:$0xff]  }
  0x2e   :  { %v698_v17 = vld [vmem:[#allocation2] sm:$0xff]   ;;  %v700_v19 = vld [vmem:[#allocation2 + $0x8] sm:$0xff]   ;;  %v703_v22 = vld [vmem:[#allocation2 + $0x30] sm:$0xff]   ;;  %vm398_vm0 = vcmask 7168   ;;  %s831_s1 = smov 127   ;;  %s832_s16 = smov [#allocation8]  }
  0x2f   :  { %208 = vmatpush1.bf16.msra.mxu0 %v679_v4  ;;  %656 = vmatpush1.bf16.msra.mxu1 %v679_v4  ;;  %v699_v18 = vld [vmem:[#allocation2 + $0x20] sm:$0xff]   ;;  %v701_v20 = vld [vmem:[#allocation2 + $0x28] sm:$0xff]   ;;  %v704_v23 = vld [vmem:[#allocation2 + $0x18] sm:$0xff]   ;;  %s512_s17 = sshll.u32 %s832_s16, 4  ;;  %s833_s18 = smov [#allocation7]   ;;  %s513_s17 = int_to_ptr.vmem [resolvable:$true] %s512_s17 }
  0x30   :  { %209 = vmatprep.subr.bf16.mxu0 %v680_v5  ;;  %649 = vmatprep.subr.bf16.mxu1 %v680_v5  ;;  %v705_v24 = vld [vmem:[#allocation2 + $0x38] sm:$0xff]   ;;  %s500_s19 = sshll.u32 %s833_s18, 4  ;;  %s750_s20 = scalar_lea.vmem %s513_s17, 2048  ;;  %s927_s19 = int_to_ptr.vmem [resolvable:$true] %s500_s19 }
  0x31   :  { %p751_p2 = scmp.ne.s32.totalorder %s513_s17, %s750_s20  ;;  %p755_p3 = scmp.lt.s32.totalorder %s513_s17, %s513_s17 }
  0x32   :  { %p756_p4 = scmp.lt.s32.totalorder %s750_s20, %s750_s20 }
  0x33   :  { %210 = vmatpush1.bf16.msra.mxu0 %v682_v6  ;;  %657 = vmatpush1.bf16.msra.mxu1 %v682_v6 }
  0x34   :  { %211 = vmatprep.subr.bf16.mxu0 %v683_v7  ;;  %650 = vmatprep.subr.bf16.mxu1 %v683_v7  ;;  %p757_p5 = por %p756_p4, %p755_p3 }
  0x36   :  { %p758_p6 = pnand %p757_p5, %p751_p2 }
  0x37   :  { %212 = vmatpush1.bf16.msra.mxu0 %v685_v8  ;;  %658 = vmatpush1.bf16.msra.mxu1 %v685_v8 }
  0x38   :  { %213 = vmatprep.subr.bf16.mxu0 %v686_v9  ;;  %651 = vmatprep.subr.bf16.mxu1 %v686_v9 }
  0x3b   :  { %214 = vmatpush1.bf16.msra.mxu0 %v688_v10  ;;  %659 = vmatpush1.bf16.msra.mxu1 %v688_v10 }
  0x3c   :  { %215 = vmatprep.subr.bf16.mxu0 %v689_v11  ;;  %652 = vmatprep.subr.bf16.mxu1 %v689_v11 }
  0x3f   :  { %216 = vmatpush1.bf16.msra.mxu0 %v691_v12  ;;  %660 = vmatpush1.bf16.msra.mxu1 %v691_v12 }
  0x40   :  { %217 = vmatprep.subr.bf16.mxu0 %v692_v13  ;;  %653 = vmatprep.subr.bf16.mxu1 %v692_v13 }
  0x43   :  { %218 = vmatpush1.bf16.msra.mxu0 %v694_v14  ;;  %661 = vmatpush1.bf16.msra.mxu1 %v694_v14 }
  0x44   :  { %219 = vmatprep.subr.bf16.mxu0 %v695_v15  ;;  %654 = vmatprep.subr.bf16.mxu1 %v695_v15 }
  0x47   :  { %220 = vmatpush1.bf16.msra.mxu0 %v697_v16  ;;  %662 = vmatpush1.bf16.msra.mxu1 %v697_v16 }
  0x4a   :  { %238 = vmatmul.mubr.bf16.vlgmr.msra.gmra.mrb[0].mxu0 %v698_v17  ;;  %278 = vmatmul.mubr.bf16.vlgmr.msra.gmra.mrb[0].mxu1 %v699_v18 }
  0x4b   :  { %247 = vmatprep.mubr.bf16.mxu0 %v830_v0  ;;  %287 = vmatprep.mubr.bf16.mxu1 %v830_v0 }
  0x52   :  { %248 = vmatmul.mubr.bf16.gmra.mrb[4].mxu0 %v700_v19  ;;  %288 = vmatmul.mubr.bf16.gmra.mrb[4].mxu1 %v701_v20 }
  0x53   :  { %257 = vmatprep.mubr.bf16.mxu0 %v830_v0  ;;  %297 = vmatprep.mubr.bf16.mxu1 %v830_v0 }
  0x5a   :  { %258 = vmatmul.mubr.bf16.gmra.mrb[8].mxu0 %v702_v21  ;;  %298 = vmatmul.mubr.bf16.gmra.mrb[8].mxu1 %v703_v22 }
  0x5b   :  { %267 = vmatprep.mubr.bf16.mxu0 %v830_v0  ;;  %307 = vmatprep.mubr.bf16.mxu1 %v830_v0 }
  0x62   :  { %268 = vmatmul.mubr.bf16.gmra.mrb[12].mxu0 %v704_v23  ;;  %308 = vmatmul.mubr.bf16.gmra.mrb[12].mxu1 %v705_v24 }
 0x11d   :  { %v239_v25 = vpop.f32.mrb[0].mxu0  ;;  %v279_v26 = vpop.f32.mrb[0].mxu1 }
 0x11e   :  { %v241_v27 = vpop.f32.mrb[1].mxu0  ;;  %v281_v28 = vpop.f32.mrb[1].mxu1 }
 0x11f   :  { %399 = vst.msk [vmem:[#allocation8] sm:$0xff] %vm398_vm0, %v241_v27  ;;  %407 = vst.msk [vmem:[#allocation8 + $0x40] sm:$0xff] %vm398_vm0, %v281_v28  ;;  %v283_v29 = vpop.f32.mrb[2].mxu1  ;;  %431 = vrot.lane.b32.xlu0 %v241_v27, %s831_s1  ;;  %v243_v30 = vpop.f32.mrb[2].mxu0 }
 0x120   :  { %v623_v31 = vpack.c.bf16 %v283_v29, %v279_v26  ;;  %v603_v32 = vpack.c.bf16 %v243_v30, %v239_v25  ;;  %v245_v33 = vpop.f32.mrb[3].mxu0  ;;  %v285_v34 = vpop.f32.mrb[3].mxu1 }
 0x121   :  { %400 = vst.msk [vmem:[#allocation8 + $0x8] sm:$0xff] %vm398_vm0, %v245_v33  ;;  %408 = vst.msk [vmem:[#allocation8 + $0x48] sm:$0xff] %vm398_vm0, %v285_v34  ;;  %449 = vrot.lane.b32.xlu1 %v285_v34, %s831_s1 }
 0x122   :  { %643 = vst [vmem:[#allocation7 + $0x20] sm:$0xff] %v623_v31   ;;  %604 = vst [vmem:[#allocation7] sm:$0xff] %v603_v32  }
 0x123   :  { %447 = vrot.lane.b32.xlu0 %v281_v28, %s831_s1 }
 0x125   :  { %v249_v35 = vpop.f32.mrb[4].mxu0  ;;  %v289_v36 = vpop.f32.mrb[4].mxu1 }
 0x126   :  { %v251_v37 = vpop.f32.mrb[5].mxu0  ;;  %v291_v38 = vpop.f32.mrb[5].mxu1 }
 0x127   :  { %401 = vst.msk [vmem:[#allocation8 + $0x10] sm:$0xff] %vm398_vm0, %v251_v37  ;;  %433 = vrot.lane.b32.xlu0 %v245_v33, %s831_s1  ;;  %435 = vrot.lane.b32.xlu1 %v251_v37, %s831_s1  ;;  %v253_v39 = vpop.f32.mrb[6].mxu0  ;;  %409 = vst.msk [vmem:[#allocation8 + $0x50] sm:$0xff] %vm398_vm0, %v291_v38  ;;  %v293_v40 = vpop.f32.mrb[6].mxu1 }
 0x128   :  { %v608_v41 = vpack.c.bf16 %v253_v39, %v249_v35  ;;  %v255_v42 = vpop.f32.mrb[7].mxu0  ;;  %v628_v43 = vpack.c.bf16 %v293_v40, %v289_v36  ;;  %v295_v44 = vpop.f32.mrb[7].mxu1 }
 0x129   :  { %402 = vst.msk [vmem:[#allocation8 + $0x18] sm:$0xff] %vm398_vm0, %v255_v42  ;;  %410 = vst.msk [vmem:[#allocation8 + $0x58] sm:$0xff] %vm398_vm0, %v295_v44 }
 0x12a   :  { %640 = vst [vmem:[#allocation7 + $0x8] sm:$0xff] %v608_v41   ;;  %644 = vst [vmem:[#allocation7 + $0x28] sm:$0xff] %v628_v43  }
 0x12b   :  { %437 = vrot.lane.b32.xlu1 %v255_v42, %s831_s1  ;;  %451 = vrot.lane.b32.xlu0 %v291_v38, %s831_s1 }
 0x12d   :  { %v259_v45 = vpop.f32.mrb[8].mxu0  ;;  %v299_v46 = vpop.f32.mrb[8].mxu1 }
 0x12e   :  { %v261_v47 = vpop.f32.mrb[9].mxu0  ;;  %v301_v48 = vpop.f32.mrb[9].mxu1 }
 0x12f   :  { %403 = vst.msk [vmem:[#allocation8 + $0x20] sm:$0xff] %vm398_vm0, %v261_v47  ;;  %453 = vrot.lane.b32.xlu1 %v295_v44, %s831_s1  ;;  %v263_v49 = vpop.f32.mrb[10].mxu0  ;;  %439 = vrot.lane.b32.xlu0 %v261_v47, %s831_s1  ;;  %411 = vst.msk [vmem:[#allocation8 + $0x60] sm:$0xff] %vm398_vm0, %v301_v48  ;;  %v303_v50 = vpop.f32.mrb[10].mxu1 }
 0x130   :  { %v613_v51 = vpack.c.bf16 %v263_v49, %v259_v45  ;;  %v265_v52 = vpop.f32.mrb[11].mxu0  ;;  %v633_v53 = vpack.c.bf16 %v303_v50, %v299_v46  ;;  %v305_v54 = vpop.f32.mrb[11].mxu1 }
 0x131   :  { %404 = vst.msk [vmem:[#allocation8 + $0x28] sm:$0xff] %vm398_vm0, %v265_v52  ;;  %412 = vst.msk [vmem:[#allocation8 + $0x68] sm:$0xff] %vm398_vm0, %v305_v54 }
 0x132   :  { %641 = vst [vmem:[#allocation7 + $0x10] sm:$0xff] %v613_v51   ;;  %645 = vst [vmem:[#allocation7 + $0x30] sm:$0xff] %v633_v53  }
 0x133   :  { %441 = vrot.lane.b32.xlu1 %v265_v52, %s831_s1  ;;  %455 = vrot.lane.b32.xlu0 %v301_v48, %s831_s1 }
 0x135   :  { %v269_v55 = vpop.f32.mrb[12].mxu0  ;;  %v309_v56 = vpop.f32.mrb[12].mxu1 }
 0x136   :  { %v271_v57 = vpop.f32.mrb[13].mxu0  ;;  %v311_v58 = vpop.f32.mrb[13].mxu1 }
 0x137   :  { %405 = vst.msk [vmem:[#allocation8 + $0x30] sm:$0xff] %vm398_vm0, %v271_v57  ;;  %457 = vrot.lane.b32.xlu1 %v305_v54, %s831_s1  ;;  %v273_v59 = vpop.f32.mrb[14].mxu0  ;;  %443 = vrot.lane.b32.xlu0 %v271_v57, %s831_s1  ;;  %413 = vst.msk [vmem:[#allocation8 + $0x70] sm:$0xff] %vm398_vm0, %v311_v58  ;;  %v313_v60 = vpop.f32.mrb[14].mxu1 }
 0x138   :  { %v618_v61 = vpack.c.bf16 %v273_v59, %v269_v55  ;;  %v275_v62 = vpop.f32.mrb[15].mxu0  ;;  %v638_v63 = vpack.c.bf16 %v313_v60, %v309_v56  ;;  %v315_v0 = vpop.f32.mrb[15].mxu1 }
 0x139   :  { %406 = vst.msk [vmem:[#allocation8 + $0x38] sm:$0xff] %vm398_vm0, %v275_v62  ;;  %414 = vst.msk [vmem:[#allocation8 + $0x78] sm:$0xff] %vm398_vm0, %v315_v0 }
 0x13a   :  { %642 = vst [vmem:[#allocation7 + $0x18] sm:$0xff] %v618_v61   ;;  %646 = vst [vmem:[#allocation7 + $0x38] sm:$0xff] %v638_v63  }
 0x13b   :  { %761 = shalt.err (!%p758_p6)
}
 0x13c   :  { %s762_s23 = scalar_lea.hbm %s1001_s3, 2048 }
 0x13d   :  { %p763_p7 = scmp.ne.s32.totalorder %s1001_s3, %s762_s23  ;;  %p766_p8 = scmp.lt.u32.totalorder %s762_s23, %s1001_s3 }
 0x13f   :  { %p768_p9 = pnand %p766_p8, %p763_p7 }
 0x141   :  { %771 = shalt.err (!%p768_p9)
}
 0x142   :  { %518 = dma.vmem_to_hbm [thread:$0]  %s513_s17, 2048, %s1001_s3, [#allocation9], %s828_s0, %s828_s0, %s829_s13  }
 0x143   :  { %445 = vrot.lane.b32.xlu1 %v275_v62, %s831_s1  ;;  %459 = vrot.lane.b32.xlu0 %v311_v58, %s831_s1  ;;  %s772_s6 = scalar_lea.vmem %s927_s19, 1024  ;;  %p777_p11 = scmp.lt.s32.totalorder %s927_s19, %s927_s19 }
 0x144   :  { %p773_p10 = scmp.ne.s32.totalorder %s927_s19, %s772_s6  ;;  %p778_p12 = scmp.lt.s32.totalorder %s772_s6, %s772_s6 }
 0x146   :  { %p779_p13 = por %p778_p12, %p777_p11 }
 0x148   :  { %p780_p0 = pnand %p779_p13, %p773_p10 }
 0x14a   :  { %783 = shalt.err (!%p780_p0)
}
 0x14b   :  { %s784_s9 = scalar_lea.hbm %s1000_s2, 1024 }
 0x14c   :  { %p785_p1 = scmp.ne.s32.totalorder %s1000_s2, %s784_s9  ;;  %p788_p2 = scmp.lt.u32.totalorder %s784_s9, %s1000_s2 }
 0x14e   :  { %p790_p3 = pnand %p788_p2, %p785_p1 }
 0x150   :  { %793 = shalt.err (!%p790_p3)
}
 0x151   :  { %506 = dma.vmem_to_hbm [thread:$0]  %s927_s19, 1024, %s1000_s2, [#allocation4], %s825_s25, %s825_s25, %s826_s26  }
 0x152   :  { %461 = vrot.lane.b32.xlu1 %v315_v0, %s831_s1  ;;  %s834_s2 = smov [#allocation10]  }
 0x153   :  { %s524_s25 = sshll.u32 %s834_s2, 4  ;;  %s525_s25 = int_to_ptr.vmem [resolvable:$true] %s524_s25 }
 0x154   :  { %s794_s26 = scalar_lea.vmem %s525_s25, 2048  ;;  %p799_p5 = scmp.lt.s32.totalorder %s525_s25, %s525_s25 }
 0x155   :  { %p795_p4 = scmp.ne.s32.totalorder %s525_s25, %s794_s26  ;;  %p800_p6 = scmp.lt.s32.totalorder %s794_s26, %s794_s26 }
 0x157   :  { %p801_p7 = por %p800_p6, %p799_p5 }
 0x159   :  { %p802_p8 = pnand %p801_p7, %p795_p4 }
 0x191   :  { %v432_v1 = vpop.permute.xlu0 %431 }
 0x192   :  { %479 = vst.msk [vmem:[#allocation10] sm:$0xff] %vm398_vm0, %v432_v1 }
 0x193   :  { %v450_v2 = vpop.permute.xlu1 %449 }
 0x194   :  { %488 = vst.msk [vmem:[#allocation10 + $0x48] sm:$0xff] %vm398_vm0, %v450_v2 }
 0x195   :  { %v448_v3 = vpop.permute.xlu0 %447 }
 0x196   :  { %487 = vst.msk [vmem:[#allocation10 + $0x40] sm:$0xff] %vm398_vm0, %v448_v3 }
 0x199   :  { %v434_v4 = vpop.permute.xlu0 %433  ;;  %v436_v5 = vpop.permute.xlu1 %435 }
 0x19a   :  { %480 = vst.msk [vmem:[#allocation10 + $0x8] sm:$0xff] %vm398_vm0, %v434_v4  ;;  %481 = vst.msk [vmem:[#allocation10 + $0x10] sm:$0xff] %vm398_vm0, %v436_v5 }
 0x19d   :  { %v438_v6 = vpop.permute.xlu1 %437  ;;  %v452_v7 = vpop.permute.xlu0 %451 }
 0x19e   :  { %482 = vst.msk [vmem:[#allocation10 + $0x18] sm:$0xff] %vm398_vm0, %v438_v6  ;;  %489 = vst.msk [vmem:[#allocation10 + $0x50] sm:$0xff] %vm398_vm0, %v452_v7 }
 0x1a1   :  { %v454_v8 = vpop.permute.xlu1 %453  ;;  %v440_v9 = vpop.permute.xlu0 %439 }
 0x1a2   :  { %490 = vst.msk [vmem:[#allocation10 + $0x58] sm:$0xff] %vm398_vm0, %v454_v8  ;;  %483 = vst.msk [vmem:[#allocation10 + $0x20] sm:$0xff] %vm398_vm0, %v440_v9 }
 0x1a5   :  { %v442_v10 = vpop.permute.xlu1 %441  ;;  %v456_v11 = vpop.permute.xlu0 %455 }
 0x1a6   :  { %484 = vst.msk [vmem:[#allocation10 + $0x28] sm:$0xff] %vm398_vm0, %v442_v10  ;;  %491 = vst.msk [vmem:[#allocation10 + $0x60] sm:$0xff] %vm398_vm0, %v456_v11 }
 0x1a9   :  { %v458_v12 = vpop.permute.xlu1 %457  ;;  %v444_v13 = vpop.permute.xlu0 %443 }
 0x1aa   :  { %492 = vst.msk [vmem:[#allocation10 + $0x68] sm:$0xff] %vm398_vm0, %v458_v12  ;;  %485 = vst.msk [vmem:[#allocation10 + $0x30] sm:$0xff] %vm398_vm0, %v444_v13 }
 0x1b5   :  { %v446_v14 = vpop.permute.xlu1 %445  ;;  %v460_v15 = vpop.permute.xlu0 %459 }
 0x1b6   :  { %486 = vst.msk [vmem:[#allocation10 + $0x38] sm:$0xff] %vm398_vm0, %v446_v14  ;;  %493 = vst.msk [vmem:[#allocation10 + $0x70] sm:$0xff] %vm398_vm0, %v460_v15 }
 0x1c4   :  { %v462_v16 = vpop.permute.xlu1 %461 }
 0x1c5   :  { %494 = vst.msk [vmem:[#allocation10 + $0x78] sm:$0xff] %vm398_vm0, %v462_v16 }
 0x1c6   :  { %805 = shalt.err (!%p802_p8)
}
 0x1c7   :  { %s806_s17 = scalar_lea.hbm %s1002_s4, 2048 }
 0x1c8   :  { %p807_p9 = scmp.ne.s32.totalorder %s1002_s4, %s806_s17  ;;  %p810_p10 = scmp.lt.u32.totalorder %s806_s17, %s1002_s4 }
 0x1ca   :  { %p812_p11 = pnand %p810_p10, %p807_p9 }
 0x1cc   :  { %815 = shalt.err (!%p812_p11)
}
 0x1cd   :  { %530 = dma.vmem_to_hbm [thread:$0]  %s525_s25, 2048, %s1002_s4, [#allocation9], %s828_s0, %s828_s0, %s829_s13  }
 0x1ce   :  { %820 = dma.done.wait [#allocation4], 1024  }
 0x1cf   :  { %821 = vsyncadd [#allocation4], 4294966272 }
 0x1d0   :  { %822 = dma.done.wait [#allocation9], 4096  }
 0x1d1   :  { %823 = vsyncadd [#allocation9], 4294963200 }
 0x1d2   :  { %540 = vsyncpa [#allocation3], 1 }
 0x1d3   :  { %541 = vsyncpa [#allocation6], 1 }
 0x1d4   :  { %542 = vsyncpa [#allocation4], 1 }
 0x1d5   :  { %543 = vsyncpa [#allocation9], 1 }

// kernel: gat_forward.5
= control target key start
LH: loop header
LB: loop body
LE: loop exit
PB: predicated region body
PF: predicated region fallthrough
CT: control target
= control target key end

     0   :  { %10 = vsyncpa [#allocation5], 0  ;;  %s2955_s0 = inlined_call_operand.hbm [shape: bf16[128,128], index: 0, kind: input, shape index: {}]   ;;  %s2956_s1 = inlined_call_operand.hbm [shape: f32[2,128], index: 1, kind: input, shape index: {}]   ;;  %s2957_s2 = inlined_call_operand.hbm [shape: f32[128,2], index: 2, kind: input, shape index: {}]   ;;  %s2958_s3 = inlined_call_operand.hbm [shape: f32[128,2], index: 3, kind: input, shape index: {}]   ;;  %s2959_s4 = inlined_call_operand.hbm [shape: s8[128,128], index: 4, kind: input, shape index: {}]   ;;  %s2960_s5 = inlined_call_operand.hbm [shape: f32[128,128], index: 5, kind: output, shape index: {}]  }
   0x1   :  { %11 = vsyncpa [#allocation8], 0 }
   0x2   :  { %12 = vsyncpa [#allocation11], 0 }
   0x3   :  { %13 = vsyncpa [#allocation6], 0  ;;  %s2112_s18 = smov [#allocation7]   ;;  %s1972_s22 = scalar_lea.hbm %s2956_s1, 32 }
   0x4   :  { %s32_s19 = sshll.u32 %s2112_s18, 4  ;;  %p1973_p0 = scmp.ne.s32.totalorder %s2956_s1, %s1972_s22  ;;  %s33_s19 = int_to_ptr.vmem [resolvable:$true] %s32_s19 }
   0x5   :  { %p1976_p1 = scmp.lt.u32.totalorder %s1972_s22, %s2956_s1 }
   0x7   :  { %p1978_p2 = pnand %p1976_p1, %p1973_p0 }
   0x9   :  { %1981 = shalt.err (!%p1978_p2)
}
   0xa   :  { %s1982_s27 = scalar_lea.vmem %s33_s19, 32  ;;  %p1987_p4 = scmp.lt.s32.totalorder %s33_s19, %s33_s19 }
   0xb   :  { %p1983_p3 = scmp.ne.s32.totalorder %s33_s19, %s1982_s27  ;;  %p1988_p5 = scmp.lt.s32.totalorder %s1982_s27, %s1982_s27 }
   0xd   :  { %p1989_p6 = por %p1988_p5, %p1987_p4 }
   0xf   :  { %p1990_p7 = pnand %p1989_p6, %p1983_p3 }
  0x11   :  { %1993 = shalt.err (!%p1990_p7)
}
  0x12   :  { %35 = dma.hbm_to_vmem [thread:$0]  %s2956_s1, 32, %s33_s19, [#allocation8]  }
  0x13   :  { %s2113_s30 = smov [#allocation10]   ;;  %s2114_s7 = smov [#allocation4]  }
  0x14   :  { %s53_s6 = sshll.u32 %s2113_s30, 4  ;;  %s19_s8 = sshll.u32 %s2114_s7, 4  ;;  %s54_s6 = int_to_ptr.vmem [resolvable:$true] %s53_s6  ;;  %s20_s8 = int_to_ptr.vmem [resolvable:$true] %s19_s8 }
  0x15   :  { %s1994_s11 = scalar_lea.hbm %s2958_s3, 2048 }
  0x16   :  { %p1995_p8 = scmp.ne.s32.totalorder %s2958_s3, %s1994_s11  ;;  %p1998_p9 = scmp.lt.u32.totalorder %s1994_s11, %s2958_s3 }
  0x18   :  { %p2000_p10 = pnand %p1998_p9, %p1995_p8 }
  0x1a   :  { %2003 = shalt.err (!%p2000_p10)
}
  0x1b   :  { %s2004_s1 = scalar_lea.vmem %s54_s6, 2048  ;;  %p2009_p12 = scmp.lt.s32.totalorder %s54_s6, %s54_s6 }
  0x1c   :  { %p2005_p11 = scmp.ne.s32.totalorder %s54_s6, %s2004_s1  ;;  %p2010_p13 = scmp.lt.s32.totalorder %s2004_s1, %s2004_s1 }
  0x1e   :  { %p2011_p0 = por %p2010_p13, %p2009_p12 }
  0x20   :  { %p2012_p1 = pnand %p2011_p0, %p2005_p11 }
  0x22   :  { %2015 = shalt.err (!%p2012_p1)
}
  0x23   :  { %s2115_s16 = smov 128   ;;  %s2116_s17 = smov 8  }
  0x24   :  { %59 = dma.hbm_to_vmem [thread:$0]  %s2958_s3, 2048, %s54_s6, [#allocation11], %s2115_s16, %s2115_s16, %s2116_s17  }
  0x25   :  { %s2016_s22 = scalar_lea.hbm %s2955_s0, 1024 }
  0x26   :  { %p2017_p2 = scmp.ne.s32.totalorder %s2955_s0, %s2016_s22  ;;  %p2020_p3 = scmp.lt.u32.totalorder %s2016_s22, %s2955_s0 }
  0x28   :  { %p2022_p4 = pnand %p2020_p3, %p2017_p2 }
  0x2a   :  { %2025 = shalt.err (!%p2022_p4)
}
  0x2b   :  { %s2026_s27 = scalar_lea.vmem %s20_s8, 1024  ;;  %p2031_p6 = scmp.lt.s32.totalorder %s20_s8, %s20_s8 }
  0x2c   :  { %p2027_p5 = scmp.ne.s32.totalorder %s20_s8, %s2026_s27  ;;  %p2032_p7 = scmp.lt.s32.totalorder %s2026_s27, %s2026_s27 }
  0x2e   :  { %p2033_p8 = por %p2032_p7, %p2031_p6 }
  0x30   :  { %p2034_p9 = pnand %p2033_p8, %p2027_p5 }
  0x32   :  { %2037 = shalt.err (!%p2034_p9)
}
  0x33   :  { %s2117_s3 = smov 64   ;;  %s2118_s28 = smov 4  }
  0x34   :  { %25 = dma.hbm_to_vmem [thread:$0]  %s2955_s0, 1024, %s20_s8, [#allocation5], %s2117_s3, %s2117_s3, %s2118_s28  }
  0x35   :  { %s2119_s6 = smov [#allocation9]   ;;  %s2120_s9 = smov [#allocation12]  }
  0x36   :  { %s41_s7 = sshll.u32 %s2119_s6, 4  ;;  %s65_s10 = sshll.u32 %s2120_s9, 4  ;;  %s42_s7 = int_to_ptr.vmem [resolvable:$true] %s41_s7  ;;  %s66_s10 = int_to_ptr.vmem [resolvable:$true] %s65_s10 }
  0x37   :  { %s2038_s13 = scalar_lea.hbm %s2957_s2, 2048 }
  0x38   :  { %p2039_p10 = scmp.ne.s32.totalorder %s2957_s2, %s2038_s13  ;;  %p2042_p11 = scmp.lt.u32.totalorder %s2038_s13, %s2957_s2 }
  0x3a   :  { %p2044_p12 = pnand %p2042_p11, %p2039_p10 }
  0x3c   :  { %2047 = shalt.err (!%p2044_p12)
}
  0x3d   :  { %s2048_s0 = scalar_lea.vmem %s42_s7, 2048  ;;  %p2053_p0 = scmp.lt.s32.totalorder %s42_s7, %s42_s7 }
  0x3e   :  { %p2049_p13 = scmp.ne.s32.totalorder %s42_s7, %s2048_s0  ;;  %p2054_p1 = scmp.lt.s32.totalorder %s2048_s0, %s2048_s0 }
  0x40   :  { %p2055_p2 = por %p2054_p1, %p2053_p0 }
  0x42   :  { %p2056_p3 = pnand %p2055_p2, %p2049_p13 }
  0x44   :  { %2059 = shalt.err (!%p2056_p3)
}
  0x45   :  { %47 = dma.hbm_to_vmem [thread:$0]  %s2957_s2, 2048, %s42_s7, [#allocation8], %s2115_s16, %s2115_s16, %s2116_s17  }
  0x46   :  { %s2060_s22 = scalar_lea.hbm %s2959_s4, 512 }
  0x47   :  { %p2061_p4 = scmp.ne.s32.totalorder %s2959_s4, %s2060_s22  ;;  %p2064_p5 = scmp.lt.u32.totalorder %s2060_s22, %s2959_s4 }
  0x49   :  { %p2066_p6 = pnand %p2064_p5, %p2061_p4 }
  0x4b   :  { %2069 = shalt.err (!%p2066_p6)
}
  0x4c   :  { %s2070_s27 = scalar_lea.vmem %s66_s10, 512  ;;  %p2075_p8 = scmp.lt.s32.totalorder %s66_s10, %s66_s10 }
  0x4d   :  { %p2071_p7 = scmp.ne.s32.totalorder %s66_s10, %s2070_s27  ;;  %p2076_p9 = scmp.lt.s32.totalorder %s2070_s27, %s2070_s27 }
  0x4f   :  { %p2077_p10 = por %p2076_p9, %p2075_p8 }
  0x51   :  { %p2078_p11 = pnand %p2077_p10, %p2071_p7 }
  0x53   :  { %2081 = shalt.err (!%p2078_p11)
}
  0x54   :  { %71 = dma.hbm_to_vmem [thread:$0]  %s2959_s4, 512, %s66_s10, [#allocation11], %s2115_s16, %s2115_s16, %s2116_s17  }
  0x55   :  { %2104 = dma.done.wait [#allocation5], 1024  }
  0x56   :  { %2105 = vsyncadd [#allocation5], 4294966272 }
  0x57   :  { %2106 = dma.done.wait [#allocation8], 2080  }
  0x58   :  { %2107 = vsyncadd [#allocation8], 4294965216 }
  0x59   :  { %2108 = dma.done.wait [#allocation11], 2560  }
  0x5a   :  { %2109 = vsyncadd [#allocation11], 4294964736  ;;  %v2121_v0 = vmov 0   ;;  %v2227_v1 = vld [vmem:[#allocation9 + $0x10] sm:$0xff]  ;;  %v2229_v2 = vld [vmem:[#allocation9] sm:$0xff]  ;;  %v2122_v41 = vmov 1   ;;  %v274_v46 = vlaneseq }
  0x5b   :  { %1829 = vset.pattern.permute.xlu1 %v2121_v0  ;;  %1828 = vset.pattern.permute.xlu0 %v2121_v0  ;;  %v2233_v3 = vld [vmem:[#allocation9 + $0x18] sm:$0xff]  ;;  %v2235_v4 = vld [vmem:[#allocation9 + $0x8] sm:$0xff]  ;;  %v2241_v6 = vld [vmem:[#allocation9 + $0x20] sm:$0xff]  ;;  %s2123_s4 = smov 120   ;;  %vm92_vm0 = vcmask 15360   ;;  %vm1092_vm1 = vcmask 7168  }
  0x5c   :  { %206 = vperm.xlu1 %1829, %v2227_v1   ;;  %196 = vperm.xlu0 %1828, %v2229_v2   ;;  %v2239_v5 = vld [vmem:[#allocation9 + $0x28] sm:$0xff]  ;;  %v2245_v7 = vld [vmem:[#allocation9 + $0x38] sm:$0xff]  ;;  %v2247_v8 = vld [vmem:[#allocation9 + $0x30] sm:$0xff]  ;;  %v2343_v49 = vshrl.u32 %v274_v46, 7  ;;  %vm1222_vm2 = vcmask 64512   ;;  %vm1239_vm3 = vcmask 130048  }
  0x5d   :  { %v2249_v9 = vld [vmem:[#allocation9 + $0x48] sm:$0xff]  ;;  %v2251_v10 = vld [vmem:[#allocation4] sm:$0xff]   ;;  %v2266_v14 = vld [vmem:[#allocation9 + $0x50] sm:$0xff]  ;;  %s2125_s28 = smov [#allocation13]  }
  0x5e   :  { %v2255_v11 = vld [vmem:[#allocation9 + $0x40] sm:$0xff]  ;;  %1750 = vmatprep.subr.bf16.mxu0 %v2251_v10  ;;  %v2264_v13 = vld [vmem:[#allocation9 + $0x58] sm:$0xff]  ;;  %v2268_v15 = vld [vmem:[#allocation4 + $0x10] sm:$0xff]   ;;  %v276_v52 = vsub.s32 0, %v2343_v49  ;;  %s1680_s29 = sshll.u32 %s2125_s28, 4  ;;  %s1681_s29 = int_to_ptr.vmem [resolvable:$true] %s1680_s29 }
  0x5f   :  { %v2257_v12 = vld [vmem:[#allocation4 + $0x8] sm:$0xff]   ;;  %1751 = vmatpush3.bf16.msra.mxu0 %v2251_v10  ;;  %v2278_v18 = vld [vmem:[#allocation4 + $0x18] sm:$0xff]   ;;  %v1838_v21 = vld [vmem:[#allocation4 + $0x20] sm:$0xff]   ;;  %s2082_s30 = scalar_lea.vmem %s1681_s29, 2048  ;;  %p2087_p13 = scmp.lt.s32.totalorder %s1681_s29, %s1681_s29 }
  0x60   :  { %211 = vperm.xlu1 %1829, %v2233_v3   ;;  %201 = vperm.xlu0 %1828, %v2235_v4   ;;  %v2274_v16 = vld [vmem:[#allocation9 + $0x68] sm:$0xff]  ;;  %v2276_v17 = vld [vmem:[#allocation9 + $0x60] sm:$0xff]  ;;  %v2284_v19 = vld [vmem:[#allocation9 + $0x78] sm:$0xff]  ;;  %p2083_p12 = scmp.ne.s32.totalorder %s1681_s29, %s2082_s30  ;;  %p2088_p0 = scmp.lt.s32.totalorder %s2082_s30, %s2082_s30 }
  0x61   :  { %1752 = vmatprep.subr.bf16.mxu0 %v2257_v12  ;;  %v2286_v20 = vld [vmem:[#allocation9 + $0x70] sm:$0xff]  ;;  %v178_v22 = vld [vmem:[#allocation10 + $0x8] sm:$0xff]  ;;  %v177_v23 = vld [vmem:[#allocation10] sm:$0xff] }
  0x62   :  { %v2291_v24 = vld [vmem:[#allocation4 + $0x28] sm:$0xff]   ;;  %v180_v25 = vld [vmem:[#allocation10 + $0x18] sm:$0xff]  ;;  %v179_v26 = vld [vmem:[#allocation10 + $0x10] sm:$0xff]  ;;  %p2089_p1 = por %p2088_p0, %p2087_p13 }
  0x63   :  { %1753 = vmatpush3.bf16.msra.mxu0 %v2257_v12  ;;  %v182_v27 = vld [vmem:[#allocation10 + $0x28] sm:$0xff]  ;;  %v181_v28 = vld [vmem:[#allocation10 + $0x20] sm:$0xff]  ;;  %v184_v29 = vld [vmem:[#allocation10 + $0x38] sm:$0xff] }
  0x64   :  { %221 = vperm.xlu1 %1829, %v2239_v5   ;;  %216 = vperm.xlu0 %1828, %v2241_v6   ;;  %v183_v30 = vld [vmem:[#allocation10 + $0x30] sm:$0xff]  ;;  %v2295_v31 = vld [vmem:[#allocation10 + $0x48] sm:$0xff]  ;;  %v185_v32 = vld [vmem:[#allocation10 + $0x40] sm:$0xff]  ;;  %p2090_p2 = pnand %p2089_p1, %p2083_p12 }
  0x65   :  { %1754 = vmatprep.subr.bf16.mxu0 %v2268_v15  ;;  %v2297_v33 = vld [vmem:[#allocation4 + $0x30] sm:$0xff]   ;;  %v2300_v34 = vld [vmem:[#allocation10 + $0x58] sm:$0xff]  ;;  %v2310_v38 = vld [vmem:[#allocation10 + $0x60] sm:$0xff] }
  0x66   :  { %v187_v35 = vld [vmem:[#allocation10 + $0x50] sm:$0xff]  ;;  %v2308_v37 = vld [vmem:[#allocation10 + $0x68] sm:$0xff]  ;;  %v2315_v39 = vld [vmem:[#allocation10 + $0x78] sm:$0xff] }
  0x67   :  { %1755 = vmatpush3.bf16.msra.mxu0 %v2268_v15  ;;  %v2302_v36 = vld [vmem:[#allocation4 + $0x38] sm:$0xff]   ;;  %v2347_v53 = vld [vmem:[#allocation7] sm:$0x3] }
  0x68   :  { %231 = vperm.xlu1 %1829, %v2245_v7   ;;  %226 = vperm.xlu0 %1828, %v2247_v8   ;;  %v2317_v40 = vld [vmem:[#allocation10 + $0x70] sm:$0xff]  ;;  %v2351_v56 = vrot.slane %v2347_v53, %v276_v52 }
  0x69   :  { %1756 = vmatprep.subr.bf16.mxu0 %v2278_v18 }
  0x6b   :  { %1757 = vmatpush3.bf16.msra.mxu0 %v2278_v18 }
  0x6c   :  { %241 = vperm.xlu1 %1829, %v2249_v9   ;;  %236 = vperm.xlu0 %1828, %v2255_v11  }
  0x6d   :  { %1758 = vmatprep.subr.bf16.mxu0 %v1838_v21 }
  0x6f   :  { %1759 = vmatpush3.bf16.msra.mxu0 %v1838_v21 }
  0x70   :  { %251 = vperm.xlu1 %1829, %v2264_v13   ;;  %246 = vperm.xlu0 %1828, %v2266_v14  }
  0x71   :  { %1760 = vmatprep.subr.bf16.mxu0 %v2291_v24 }
  0x73   :  { %1761 = vmatpush3.bf16.msra.mxu0 %v2291_v24 }
  0x74   :  { %261 = vperm.xlu1 %1829, %v2274_v16   ;;  %256 = vperm.xlu0 %1828, %v2276_v17  }
  0x75   :  { %1762 = vmatprep.subr.bf16.mxu0 %v2297_v33 }
  0x77   :  { %1763 = vmatpush3.bf16.msra.mxu0 %v2297_v33 }
  0x78   :  { %271 = vperm.xlu1 %1829, %v2284_v19   ;;  %266 = vperm.xlu0 %1828, %v2286_v20  }
  0x79   :  { %1764 = vmatprep.subr.bf16.mxu0 %v2302_v36 }
  0x7b   :  { %1765 = vmatpush3.bf16.msra.mxu0 %v2302_v36 }
  0x7c   :  { %333 = vperm.xlu1 %1829, %v178_v22   ;;  %328 = vperm.xlu0 %1828, %v177_v23  }
  0x80   :  { %343 = vperm.xlu1 %1829, %v180_v25   ;;  %338 = vperm.xlu0 %1828, %v179_v26  }
  0x84   :  { %353 = vperm.xlu1 %1829, %v182_v27   ;;  %348 = vperm.xlu0 %1828, %v181_v28  }
  0x88   :  { %363 = vperm.xlu1 %1829, %v184_v29   ;;  %358 = vperm.xlu0 %1828, %v183_v30  }
  0x8c   :  { %373 = vperm.xlu1 %1829, %v2295_v31   ;;  %368 = vperm.xlu0 %1828, %v185_v32  }
  0x90   :  { %383 = vperm.xlu1 %1829, %v2300_v34   ;;  %378 = vperm.xlu0 %1828, %v187_v35  }
  0x94   :  { %393 = vperm.xlu1 %1829, %v2308_v37   ;;  %388 = vperm.xlu0 %1828, %v2310_v38  }
  0x98   :  { %403 = vperm.xlu1 %1829, %v2315_v39   ;;  %398 = vperm.xlu0 %1828, %v2317_v40  }
  0x9c   :  { %1830 = vset.pattern.permute.xlu1 %v2122_v41  ;;  %1831 = vset.pattern.permute.xlu0 %v2122_v41 }
  0x9d   :  { %672 = vperm.xlu1 %1830, %v2229_v2   ;;  %796 = vperm.xlu0 %1831, %v179_v26  }
  0xa1   :  { %676 = vperm.xlu1 %1830, %v2235_v4   ;;  %704 = vperm.xlu0 %1831, %v2255_v11  }
  0xa5   :  { %680 = vperm.xlu1 %1830, %v2227_v1   ;;  %712 = vperm.xlu0 %1831, %v2266_v14  }
  0xa9   :  { %684 = vperm.xlu1 %1830, %v2233_v3   ;;  %963 = vrot.lane.b32.xlu0 %v1838_v21, %s2123_s4 }
  0xad   :  { %955 = vrot.lane.b32.xlu1 %v2251_v10, %s2123_s4  ;;  %820 = vperm.xlu0 %1831, %v185_v32  }
  0xb1   :  { %957 = vrot.lane.b32.xlu1 %v2257_v12, %s2123_s4  ;;  %828 = vperm.xlu0 %1831, %v187_v35  }
  0xb5   :  { %788 = vperm.xlu1 %1830, %v177_v23   ;;  %720 = vperm.xlu0 %1831, %v2276_v17  }
  0xb9   :  { %792 = vperm.xlu1 %1830, %v178_v22  }
  0xbd   :  { %800 = vperm.xlu1 %1830, %v180_v25  }
  0xc1   :  { %688 = vperm.xlu1 %1830, %v2241_v6  }
  0xc5   :  { %692 = vperm.xlu1 %1830, %v2239_v5  }
  0xc9   :  { %696 = vperm.xlu1 %1830, %v2247_v8  }
  0xcd   :  { %700 = vperm.xlu1 %1830, %v2245_v7  }
  0xd1   :  { %959 = vrot.lane.b32.xlu1 %v2268_v15, %s2123_s4 }
  0xd5   :  { %961 = vrot.lane.b32.xlu1 %v2278_v18, %s2123_s4 }
  0xd9   :  { %804 = vperm.xlu1 %1830, %v181_v28  }
  0xdb   :  { %v207_v42 = vpop.permute.xlu1 %206  ;;  %v197_v43 = vpop.permute.xlu0 %196 }
  0xdc   :  { %v278_v59 = vadd.f32 %v2351_v56, %v197_v43  ;;  %v280_v61 = vadd.f32 %v2351_v56, %v207_v42 }
  0xdd   :  { %808 = vperm.xlu1 %1830, %v182_v27  }
  0xde   :  { %v294_v2 = vmul.f32 0.01, %v278_v59  ;;  %v296_v4 = vmul.f32 0.01, %v280_v61 }
  0xdf   :  { %v212_v44 = vpop.permute.xlu1 %211  ;;  %v202_v45 = vpop.permute.xlu0 %201 }
  0xe0   :  { %v279_v60 = vadd.f32 %v2351_v56, %v202_v45  ;;  %v281_v1 = vadd.f32 %v2351_v56, %v212_v44  ;;  %v310_v12 = vmax.f32 %v278_v59, %v294_v2  ;;  %v312_v15 = vmax.f32 %v280_v61, %v296_v4  ;;  %v2382_v45 = vld [vmem:[#allocation12 + $0x8] sm:$0xff] }
  0xe1   :  { %812 = vperm.xlu1 %1830, %v183_v30  }
  0xe2   :  { %v295_v3 = vmul.f32 0.01, %v279_v60  ;;  %v297_v7 = vmul.f32 0.01, %v281_v1 }
  0xe3   :  { %v222_v47 = vpop.permute.xlu1 %221  ;;  %v217_v48 = vpop.permute.xlu0 %216 }
  0xe4   :  { %v283_v8 = vadd.f32 %v2351_v56, %v222_v47  ;;  %v282_v10 = vadd.f32 %v2351_v56, %v217_v48  ;;  %v311_v11 = vmax.f32 %v279_v60, %v295_v3  ;;  %v313_v23 = vmax.f32 %v281_v1, %v297_v7 }
  0xe5   :  { %816 = vperm.xlu1 %1830, %v184_v29  }
  0xe6   :  { %v299_v18 = vmul.f32 0.01, %v283_v8 }
  0xe7   :  { %v232_v50 = vpop.permute.xlu1 %231  ;;  %v227_v51 = vpop.permute.xlu0 %226 }
  0xe8   :  { %v285_v25 = vadd.f32 %v2351_v56, %v232_v50  ;;  %v284_v26 = vadd.f32 %v2351_v56, %v227_v51  ;;  %v315_v42 = vmax.f32 %v283_v8, %v299_v18 }
  0xe9   :  { %708 = vperm.xlu1 %1830, %v2249_v9   ;;  %v2369_v9 = vld [vmem:[#allocation12] sm:$0xff] }
  0xea   :  { %v129_v17 = vunpack.c.0.s8 %v2369_v9  ;;  %v130_v32 = vunpack.c.1.s8 %v2369_v9  ;;  %v301_v43 = vmul.f32 0.01, %v285_v25  ;;  %v300_v46 = vmul.f32 0.01, %v284_v26 }
  0xeb   :  { %v242_v54 = vpop.permute.xlu1 %241  ;;  %v237_v55 = vpop.permute.xlu0 %236  ;;  %v132_v2 = vunpack.c.3.s8 %v2369_v9 }
  0xec   :  { %v287_v44 = vadd.f32 %v2351_v56, %v242_v54  ;;  %v286_v47 = vadd.f32 %v2351_v56, %v237_v55  ;;  %v2391_v54 = vcvt.s32.f32 %v130_v32  ;;  %v316_v8 = vmax.f32 %v284_v26, %v300_v46 }
  0xed   :  { %716 = vperm.xlu1 %1830, %v2264_v13  }
  0xee   :  { %v303_v55 = vmul.f32 0.01, %v287_v44  ;;  %v302_v3 = vmul.f32 0.01, %v286_v47 }
  0xef   :  { %v252_v57 = vpop.permute.xlu1 %251  ;;  %v247_v58 = vpop.permute.xlu0 %246 }
  0xf0   :  { %v2386_v51 = vadd.f32 %v2351_v56, %v252_v57  ;;  %v2389_v52 = vadd.f32 %v2351_v56, %v247_v58  ;;  %v317_v57 = vmax.f32 %v285_v25, %v301_v43  ;;  %v133_v58 = vunpack.c.0.s8 %v2382_v45  ;;  %v2424_v43 = vld [vmem:[#allocation12 + $0x10] sm:$0xff] }
  0xf1   :  { %965 = vrot.lane.b32.xlu1 %v2291_v24, %s2123_s4  ;;  %v298_v24 = vmul.f32 0.01, %v282_v10  ;;  %v319_v26 = vmax.f32 %v287_v44, %v303_v55 }
  0xf3   :  { %v2358_v62 = vpop.permute.xlu1 %261  ;;  %v2360_v63 = vpop.permute.xlu0 %256 }
  0xf4   :  { %v2407_v18 = vadd.f32 %v2351_v56, %v2358_v62 }
  0xf5   :  { %824 = vperm.xlu1 %1830, %v2295_v31   ;;  %v2377_v31 = vcvt.s32.f32 %v129_v17  ;;  %v2403_v17 = vcvt.s32.f32 %v132_v2 }
  0xf6   :  { %v307_v44 = vmul.f32 0.01, %v2407_v18 }
  0xf7   :  { %v2364_v5 = vpop.permute.xlu1 %271  ;;  %v2366_v6 = vpop.permute.xlu0 %266 }
  0xf8   :  { %v293_v46 = vadd.f32 %v2351_v56, %v2364_v5  ;;  %v135_v5 = vunpack.c.2.s8 %v2382_v45 }
  0xf9   :  { %832 = vperm.xlu1 %1830, %v2300_v34  }
  0xfa   :  { %v309_v55 = vmul.f32 0.01, %v293_v46 }
  0xfb   :  { %v334_v13 = vpop.permute.xlu1 %333  ;;  %v329_v14 = vpop.permute.xlu0 %328 }
  0xfc   :  { %v407_v21 = vsub.f32 %v311_v11, %v334_v13  ;;  %v406_v22 = vsub.f32 %v310_v12, %v329_v14  ;;  %v304_v11 = vmul.f32 0.01, %v2389_v52 }
  0xfd   :  { %724 = vperm.xlu1 %1830, %v2274_v16   ;;  %v314_v16 = vmax.f32 %v282_v10, %v298_v24  ;;  %v305_v10 = vmul.f32 0.01, %v2386_v51 }
  0xfe   :  { %v424_v27 = vmul.f32 1.442695, %v407_v21  ;;  %v422_v28 = vmul.f32 1.442695, %v406_v22  ;;  %v2411_v21 = vadd.f32 %v2351_v56, %v2360_v63  ;;  %v2414_v22 = vcvt.s32.f32 %v133_v58 }
  0xff   :  { %v344_v29 = vpop.permute.xlu1 %343  ;;  %v339_v30 = vpop.permute.xlu0 %338  ;;  %v321_v62 = vmax.f32 %v2386_v51, %v305_v10  ;;  %v320_v32 = vmax.f32 %v2389_v52, %v304_v11 }
 0x100   :  { %1844 = vpow2.f32 %v424_v27  ;;  %v409_v34 = vsub.f32 %v313_v23, %v344_v29  ;;  %v408_v35 = vsub.f32 %v312_v15, %v339_v30  ;;  %v318_v27 = vmax.f32 %v286_v47, %v302_v3 }
 0x101   :  { %1846 = vpow2.f32 %v422_v28  ;;  %732 = vperm.xlu1 %1830, %v2284_v19   ;;  %v131_v19 = vunpack.c.2.s8 %v2369_v9  ;;  %v134_v9 = vunpack.c.1.s8 %v2382_v45 }
 0x102   :  { %v428_v48 = vmul.f32 1.442695, %v409_v34  ;;  %v426_v50 = vmul.f32 1.442695, %v408_v35 }
 0x103   :  { %v354_v59 = vpop.permute.xlu1 %353  ;;  %v349_v60 = vpop.permute.xlu0 %348  ;;  %v2400_v14 = vcvt.s32.f32 %v131_v19  ;;  %v2421_v34 = vcvt.s32.f32 %v134_v9  ;;  %v2451_v9 = vcvt.s32.f32 %v135_v5 }
 0x104   :  { %1848 = vpow2.f32 %v428_v48  ;;  %v411_v61 = vsub.f32 %v315_v42, %v354_v59  ;;  %v410_v1 = vsub.f32 %v314_v16, %v349_v60  ;;  %v306_v16 = vmul.f32 0.01, %v2411_v21 }
 0x105   :  { %1850 = vpow2.f32 %v426_v50  ;;  %969 = vrot.lane.b32.xlu1 %v2302_v36, %s2123_s4  ;;  %v292_v48 = vadd.f32 %v2351_v56, %v2366_v6 }
 0x106   :  { %v432_v4 = vmul.f32 1.442695, %v411_v61  ;;  %v430_v7 = vmul.f32 1.442695, %v410_v1  ;;  %v136_v1 = vunpack.c.3.s8 %v2382_v45  ;;  %v322_v58 = vmax.f32 %v2411_v21, %v306_v16 }
 0x107   :  { %v364_v12 = vpop.permute.xlu1 %363  ;;  %v359_v13 = vpop.permute.xlu0 %358  ;;  %v140_v16 = vunpack.c.3.s8 %v2424_v43 }
 0x108   :  { %1852 = vpow2.f32 %v432_v4  ;;  %v413_v15 = vsub.f32 %v317_v57, %v364_v12  ;;  %v412_v36 = vsub.f32 %v316_v8, %v359_v13  ;;  %v323_v57 = vmax.f32 %v2407_v18, %v307_v44 }
 0x109   :  { %1854 = vpow2.f32 %v430_v7  ;;  %840 = vperm.xlu1 %1830, %v2308_v37   ;;  %v308_v4 = vmul.f32 0.01, %v292_v48  ;;  %v139_v44 = vunpack.c.2.s8 %v2424_v43 }
 0x10a   :  { %v1845_v23 = vpop.eup %1844  ;;  %v436_v24 = vmul.f32 1.442695, %v413_v15  ;;  %v434_v25 = vmul.f32 1.442695, %v412_v36  ;;  %v2453_v15 = vcvt.s32.f32 %v136_v1  ;;  %v138_v36 = vunpack.c.1.s8 %v2424_v43 }
 0x10b   :  { %v1847_v28 = vpop.eup %1846  ;;  %v374_v29 = vpop.permute.xlu1 %373  ;;  %v2419_v63 = vmul.f32 %v1845_v23, %v2391_v54 }
 0x10c   :  { %v369_v30 = vpop.permute.xlu0 %368  ;;  %1856 = vpow2.f32 %v436_v24  ;;  %v415_v37 = vsub.f32 %v319_v26, %v374_v29  ;;  %v454_v42 = vmul.f32 %v1847_v28, %v2377_v31  ;;  %v325_v24 = vmax.f32 %v293_v46, %v309_v55 }
 0x10d   :  { %v414_v35 = vsub.f32 %v318_v27, %v369_v30  ;;  %1858 = vpow2.f32 %v434_v25  ;;  %848 = vperm.xlu1 %1830, %v2315_v39   ;;  %v137_v39 = vunpack.c.0.s8 %v2424_v43  ;;  %v324_v29 = vmax.f32 %v292_v48, %v308_v4 }
 0x10e   :  { %v1849_v47 = vpop.eup %1848  ;;  %v440_v50 = vmul.f32 1.442695, %v415_v37  ;;  %470 = vadd.xlane.f32.xlu0 %v454_v42  ;;  %v502_v52 = vpack.c.bf16 %v2419_v63, %v454_v42  ;;  %v2466_v42 = vcvt.s32.f32 %v138_v36  ;;  %v2478_v43 = vcvt.s32.f32 %v140_v16 }
 0x10f   :  { %v438_v51 = vmul.f32 1.442695, %v414_v35  ;;  %v1851_v59 = vpop.eup %1850  ;;  %v384_v60 = vpop.permute.xlu1 %383  ;;  %v2435_v61 = vmul.f32 %v1849_v47, %v2403_v17  ;;  %v2459_v25 = vcvt.s32.f32 %v137_v39 }
 0x110   :  { %v379_v19 = vpop.permute.xlu0 %378  ;;  %1860 = vpow2.f32 %v440_v50  ;;  %v417_v2 = vsub.f32 %v321_v62, %v384_v60  ;;  %1766 = vmatprep.mubr.bf16.mxu0 %v502_v52  ;;  %v2441_v6 = vmul.f32 %v1851_v59, %v2400_v14  ;;  %v128_v50 = vld [vmem:[#allocation12 + $0x18] sm:$0xff] }
 0x111   :  { %v416_v56 = vsub.f32 %v320_v32, %v379_v19  ;;  %1862 = vpow2.f32 %v438_v51  ;;  %1832 = vset.pattern.permute.xlu1 %v2121_v0  ;;  %v142_v1 = vunpack.c.1.s8 %v128_v50  ;;  %v141_v55 = vunpack.c.0.s8 %v128_v50 }
 0x112   :  { %v1853_v3 = vpop.eup %1852  ;;  %v444_v45 = vmul.f32 1.442695, %v417_v2  ;;  %v503_v8 = vpack.c.bf16 %v2435_v61, %v2441_v6 }
 0x113   :  { %v442_v7 = vmul.f32 1.442695, %v416_v56  ;;  %v1855_v10 = vpop.eup %1854  ;;  %v394_v11 = vpop.permute.xlu1 %393  ;;  %v2449_v13 = vmul.f32 %v1853_v3, %v2421_v34  ;;  %v2483_v56 = vcvt.s32.f32 %v139_v44 }
 0x114   :  { %v389_v12 = vpop.permute.xlu0 %388  ;;  %1864 = vpow2.f32 %v444_v45  ;;  %v419_v18 = vsub.f32 %v323_v57, %v394_v11  ;;  %1767 = vmatmul.mubr.bf16.vlgmr.msra.gmra.mrb[0].mxu0 %v503_v8  ;;  %v2457_v23 = vmul.f32 %v1855_v10, %v2414_v22  ;;  %v2490_v45 = vcvt.s32.f32 %v142_v1 }
 0x115   :  { %v418_v21 = vsub.f32 %v322_v58, %v389_v12  ;;  %1866 = vpow2.f32 %v442_v7  ;;  %v144_v7 = vunpack.c.3.s8 %v128_v50  ;;  %v2495_v11 = vcvt.s32.f32 %v141_v55 }
 0x116   :  { %v1857_v26 = vpop.eup %1856  ;;  %v448_v27 = vmul.f32 1.442695, %v419_v18  ;;  %v504_v30 = vpack.c.bf16 %v2449_v13, %v2457_v23  ;;  %v143_v12 = vunpack.c.2.s8 %v128_v50  ;;  %v737_v18 = vsub.s32 1, %v2343_v49 }
 0x117   :  { %v446_v28 = vmul.f32 1.442695, %v418_v21  ;;  %v1859_v62 = vpop.eup %1858  ;;  %v404_v32 = vpop.permute.xlu1 %403  ;;  %v2464_v35 = vmul.f32 %v1857_v26, %v2453_v15 }
 0x118   :  { %v399_v37 = vpop.permute.xlu0 %398  ;;  %1868 = vpow2.f32 %v448_v27  ;;  %v421_v46 = vsub.f32 %v325_v24, %v404_v32  ;;  %1770 = vmatprep.mubr.bf16.mxu0 %v504_v30  ;;  %v2471_v48 = vmul.f32 %v1859_v62, %v2451_v9  ;;  %v2501_v27 = vcvt.s32.f32 %v144_v7 }
 0x119   :  { %v420_v47 = vsub.f32 %v324_v29, %v399_v37  ;;  %1870 = vpow2.f32 %v446_v28  ;;  %v2507_v30 = vcvt.s32.f32 %v143_v12  ;;  %v2510_v49 = vrot.slane %v2347_v53, %v737_v18 }
 0x11a   :  { %v1861_v51 = vpop.eup %1860  ;;  %v452_v52 = vmul.f32 1.442695, %v421_v46  ;;  %v505_v60 = vpack.c.bf16 %v2464_v35, %v2471_v48 }
 0x11b   :  { %v450_v59 = vmul.f32 1.442695, %v420_v47  ;;  %v1863_v19 = vpop.eup %1862  ;;  %v2476_v5 = vmul.f32 %v1861_v51, %v2466_v42 }
 0x11c   :  { %1872 = vpow2.f32 %v452_v52  ;;  %1771 = vmatmul.mubr.bf16.gmra.mrb[4].mxu0 %v505_v60  ;;  %v673_v39 = vpop.permute.xlu1 %672  ;;  %v2481_v2 = vmul.f32 %v1863_v19, %v2459_v25 }
 0x11d   :  { %1874 = vpow2.f32 %v450_v59  ;;  %v739_v47 = vadd.f32 %v2510_v49, %v673_v39 }
 0x11e   :  { %v1865_v57 = vpop.eup %1864  ;;  %v506_v58 = vpack.c.bf16 %v2476_v5, %v2481_v2 }
 0x11f   :  { %v1867_v3 = vpop.eup %1866  ;;  %v2488_v4 = vmul.f32 %v1865_v57, %v2478_v43  ;;  %v755_v52 = vmul.f32 0.01, %v739_v47 }
 0x120   :  { %1774 = vmatprep.mubr.bf16.mxu0 %v506_v58  ;;  %v677_v8 = vpop.permute.xlu1 %676  ;;  %v2493_v10 = vmul.f32 %v1867_v3, %v2483_v56 }
 0x121   :  { %v740_v59 = vadd.f32 %v2510_v49, %v677_v8  ;;  %v771_v39 = vmax.f32 %v739_v47, %v755_v52 }
 0x122   :  { %v1869_v36 = vpop.eup %1868  ;;  %v507_v21 = vpack.c.bf16 %v2488_v4, %v2493_v10 }
 0x123   :  { %v1871_v24 = vpop.eup %1870  ;;  %v467_v26 = vmul.f32 %v1869_v36, %v2490_v45  ;;  %v756_v19 = vmul.f32 0.01, %v740_v59 }
 0x124   :  { %728 = vperm.xlu0 %1831, %v2286_v20   ;;  %1775 = vmatmul.mubr.bf16.gmra.mrb[8].mxu0 %v507_v21  ;;  %v681_v28 = vpop.permute.xlu1 %680  ;;  %v2505_v29 = vmul.f32 %v1871_v24, %v2495_v11 }
 0x125   :  { %v741_v16 = vadd.f32 %v2510_v49, %v681_v28 }
 0x126   :  { %v1873_v62 = vpop.eup %1872  ;;  %v508_v32 = vpack.c.bf16 %v467_v26, %v2505_v29 }
 0x127   :  { %v1875_v37 = vpop.eup %1874  ;;  %v469_v44 = vmul.f32 %v1873_v62, %v2501_v27  ;;  %v757_v50 = vmul.f32 0.01, %v741_v16 }
 0x128   :  { %967 = vrot.lane.b32.xlu0 %v2297_v33, %s2123_s4  ;;  %1778 = vmatprep.mubr.bf16.mxu0 %v508_v32  ;;  %v685_v20 = vpop.permute.xlu1 %684  ;;  %v2518_v46 = vmul.f32 %v1875_v37, %v2507_v30 }
 0x129   :  { %v773_v60 = vmax.f32 %v741_v16, %v757_v50  ;;  %v742_v1 = vadd.f32 %v2510_v49, %v685_v20 }
 0x12a   :  { %v509_v53 = vpack.c.bf16 %v469_v44, %v2518_v46 }
 0x12b   :  { %v758_v58 = vmul.f32 0.01, %v742_v1 }
 0x12c   :  { %836 = vperm.xlu0 %1831, %v2310_v38   ;;  %1779 = vmatmul.mubr.bf16.gmra.mrb[12].mxu0 %v509_v53  ;;  %v956_v51 = vpop.permute.xlu1 %955  ;;  %v797_v38 = vpop.permute.xlu0 %796 }
 0x12d   :  { %1782 = vmatprep.subr.bf16.mxu1 %v956_v51  ;;  %v853_v57 = vsub.f32 %v773_v60, %v797_v38 }
 0x12e   :  { %1783 = vmatpush3.bf16.msra.mxu1 %v956_v51 }
 0x12f   :  { %v871_v12 = vmul.f32 1.442695, %v853_v57 }
 0x130   :  { %844 = vperm.xlu0 %1831, %v2317_v40   ;;  %v958_v33 = vpop.permute.xlu1 %957  ;;  %v772_v40 = vmax.f32 %v740_v59, %v756_v19  ;;  %v705_v47 = vpop.permute.xlu0 %704  ;;  %v2124_v59 = vmov 0.0  }
 0x131   :  { %474 = vadd.xlane.f32.xlu1 %v2441_v6  ;;  %1784 = vmatprep.subr.bf16.mxu1 %v958_v33  ;;  %v774_v6 = vmax.f32 %v742_v1, %v758_v58  ;;  %94 = vst.msk [vmem:[#allocation2 + $0x8] sm:$0xff] %vm92_vm0, %v2124_v59  ;;  %93 = vst.msk [vmem:[#allocation2] sm:$0xff] %vm92_vm0, %v2124_v59 }
 0x132   :  { %1785 = vmatpush3.bf16.msra.mxu1 %v958_v33  ;;  %95 = vst.msk [vmem:[#allocation2 + $0x10] sm:$0xff] %vm92_vm0, %v2124_v59  ;;  %96 = vst.msk [vmem:[#allocation2 + $0x18] sm:$0xff] %vm92_vm0, %v2124_v59 }
 0x133   :  { %97 = vst.msk [vmem:[#allocation2 + $0x20] sm:$0xff] %vm92_vm0, %v2124_v59  ;;  %98 = vst.msk [vmem:[#allocation2 + $0x28] sm:$0xff] %vm92_vm0, %v2124_v59 }
 0x134   :  { %v789_v55 = vpop.permute.xlu1 %788  ;;  %1833 = vset.pattern.permute.xlu0 %v2121_v0  ;;  %99 = vst.msk [vmem:[#allocation2 + $0x30] sm:$0xff] %vm92_vm0, %v2124_v59  ;;  %100 = vst.msk [vmem:[#allocation2 + $0x38] sm:$0xff] %vm92_vm0, %v2124_v59 }
 0x135   :  { %v851_v3 = vsub.f32 %v771_v39, %v789_v55  ;;  %480 = vadd.xlane.f32.xlu1 %v2449_v13  ;;  %101 = vst.msk [vmem:[#allocation2 + $0x40] sm:$0xff] %vm92_vm0, %v2124_v59  ;;  %102 = vst.msk [vmem:[#allocation2 + $0x48] sm:$0xff] %vm92_vm0, %v2124_v59  ;;  %v747_v39 = vadd.f32 %v2510_v49, %v705_v47 }
 0x136   :  { %103 = vst.msk [vmem:[#allocation2 + $0x50] sm:$0xff] %vm92_vm0, %v2124_v59  ;;  %104 = vst.msk [vmem:[#allocation2 + $0x58] sm:$0xff] %vm92_vm0, %v2124_v59 }
 0x137   :  { %v867_v7 = vmul.f32 1.442695, %v851_v3  ;;  %105 = vst.msk [vmem:[#allocation2 + $0x60] sm:$0xff] %vm92_vm0, %v2124_v59  ;;  %106 = vst.msk [vmem:[#allocation2 + $0x68] sm:$0xff] %vm92_vm0, %v2124_v59 }
 0x138   :  { %v793_v8 = vpop.permute.xlu1 %792  ;;  %107 = vst.msk [vmem:[#allocation2 + $0x70] sm:$0xff] %vm92_vm0, %v2124_v59  ;;  %108 = vst.msk [vmem:[#allocation2 + $0x78] sm:$0xff] %vm92_vm0, %v2124_v59 }
 0x139   :  { %1876 = vpow2.f32 %v867_v7  ;;  %v852_v36 = vsub.f32 %v772_v40, %v793_v8  ;;  %484 = vadd.xlane.f32.xlu1 %v2464_v35 }
 0x13a   :  { %1878 = vpow2.f32 %v871_v12 }
 0x13b   :  { %v869_v18 = vmul.f32 1.442695, %v852_v36 }
 0x13c   :  { %v801_v21 = vpop.permute.xlu1 %800 }
 0x13d   :  { %1880 = vpow2.f32 %v869_v18  ;;  %v854_v24 = vsub.f32 %v774_v6, %v801_v21  ;;  %488 = vadd.xlane.f32.xlu1 %v2476_v5 }
 0x13f   :  { %v873_v0 = vmul.f32 1.442695, %v854_v24 }
 0x140   :  { %v689_v28 = vpop.permute.xlu1 %688 }
 0x141   :  { %1882 = vpow2.f32 %v873_v0  ;;  %492 = vadd.xlane.f32.xlu1 %v2488_v4 }
 0x143   :  { %v1877_v13 = vpop.eup %1876 }
 0x144   :  { %v693_v62 = vpop.permute.xlu1 %692  ;;  %v1879_v32 = vpop.eup %1878  ;;  %v2533_v37 = vmul.f32 %v1877_v13, %v2377_v31 }
 0x145   :  { %496 = vadd.xlane.f32.xlu1 %v467_v26  ;;  %v2538_v53 = vmul.f32 %v1879_v32, %v2400_v14  ;;  %v744_v14 = vadd.f32 %v2510_v49, %v693_v62 }
 0x147   :  { %v1881_v35 = vpop.eup %1880 }
 0x148   :  { %v697_v16 = vpop.permute.xlu1 %696  ;;  %v900_v20 = vmul.f32 %v1881_v35, %v2391_v54  ;;  %v713_v54 = vpop.permute.xlu0 %712 }
 0x149   :  { %500 = vadd.xlane.f32.xlu1 %v469_v44  ;;  %v745_v60 = vadd.f32 %v2510_v49, %v697_v16  ;;  %v749_v7 = vadd.f32 %v2510_v49, %v713_v54 }
 0x14a   :  { %v947_v5 = vpack.c.bf16 %v900_v20, %v2533_v37 }
 0x14b   :  { %v1883_v50 = vpop.eup %1882  ;;  %v761_v57 = vmul.f32 0.01, %v745_v60  ;;  %v765_v6 = vmul.f32 0.01, %v749_v7 }
 0x14c   :  { %v701_v4 = vpop.permute.xlu1 %700  ;;  %v2541_v51 = vmul.f32 %v1883_v50, %v2403_v17  ;;  %1798 = vmatprep.mubr.bf16.mxu1 %v947_v5  ;;  %v743_v17 = vadd.f32 %v2510_v49, %v689_v28  ;;  %v964_v52 = vpop.permute.xlu0 %963 }
 0x14d   :  { %917 = vadd.xlane.f32.xlu1 %v900_v20  ;;  %v746_v19 = vadd.f32 %v2510_v49, %v701_v4  ;;  %v777_v36 = vmax.f32 %v745_v60, %v761_v57  ;;  %v781_v32 = vmax.f32 %v749_v7, %v765_v6 }
 0x14e   :  { %v948_v31 = vpack.c.bf16 %v2541_v51, %v2538_v53  ;;  %v759_v33 = vmul.f32 0.01, %v743_v17 }
 0x14f   :  { %472 = vadd.xlane.f32.xlu0 %v2419_v63  ;;  %v760_v63 = vmul.f32 0.01, %v744_v14  ;;  %v762_v3 = vmul.f32 0.01, %v746_v19 }
 0x150   :  { %v960_v26 = vpop.permute.xlu1 %959  ;;  %v775_v58 = vmax.f32 %v743_v17, %v759_v33  ;;  %v821_v28 = vpop.permute.xlu0 %820 }
 0x151   :  { %1786 = vmatprep.subr.bf16.mxu1 %v960_v26  ;;  %921 = vadd.xlane.f32.xlu1 %v2541_v51  ;;  %v776_v1 = vmax.f32 %v744_v14, %v760_v63 }
 0x152   :  { %1787 = vmatpush3.bf16.msra.mxu1 %v960_v26 }
 0x153   :  { %476 = vadd.xlane.f32.xlu0 %v2435_v61 }
 0x154   :  { %v962_v44 = vpop.permute.xlu1 %961  ;;  %v829_v47 = vpop.permute.xlu0 %828 }
 0x155   :  { %1788 = vmatprep.subr.bf16.mxu1 %v962_v44  ;;  %v861_v50 = vsub.f32 %v781_v32, %v829_v47 }
 0x156   :  { %1789 = vmatpush3.bf16.msra.mxu1 %v962_v44 }
 0x157   :  { %478 = vadd.xlane.f32.xlu0 %v2457_v23  ;;  %1790 = vmatprep.subr.bf16.mxu1 %v964_v52  ;;  %v763_v23 = vmul.f32 0.01, %v747_v39  ;;  %v887_v14 = vmul.f32 1.442695, %v861_v50 }
 0x158   :  { %v805_v61 = vpop.permute.xlu1 %804 }
 0x159   :  { %v855_v8 = vsub.f32 %v775_v58, %v805_v61  ;;  %v779_v18 = vmax.f32 %v747_v39, %v763_v23 }
 0x15a   :  { %1791 = vmatpush3.bf16.msra.mxu1 %v964_v52 }
 0x15b   :  { %482 = vadd.xlane.f32.xlu0 %v2471_v48  ;;  %v778_v48 = vmax.f32 %v746_v19, %v762_v3  ;;  %v875_v21 = vmul.f32 1.442695, %v855_v8 }
 0x15c   :  { %v809_v38 = vpop.permute.xlu1 %808 }
 0x15d   :  { %v856_v55 = vsub.f32 %v776_v1, %v809_v38 }
 0x15f   :  { %v877_v40 = vmul.f32 1.442695, %v856_v55  ;;  %486 = vadd.xlane.f32.xlu0 %v2481_v2  ;;  %v859_v2 = vsub.f32 %v779_v18, %v821_v28 }
 0x160   :  { %v813_v12 = vpop.permute.xlu1 %812 }
 0x161   :  { %1884 = vpow2.f32 %v877_v40  ;;  %v857_v24 = vsub.f32 %v777_v36, %v813_v12  ;;  %v883_v5 = vmul.f32 1.442695, %v859_v2 }
 0x162   :  { %1886 = vpow2.f32 %v875_v21 }
 0x163   :  { %490 = vadd.xlane.f32.xlu0 %v2493_v10  ;;  %v879_v35 = vmul.f32 1.442695, %v857_v24 }
 0x164   :  { %v817_v0 = vpop.permute.xlu1 %816 }
 0x165   :  { %v858_v13 = vsub.f32 %v778_v48, %v817_v0 }
 0x167   :  { %v881_v62 = vmul.f32 1.442695, %v858_v13  ;;  %494 = vadd.xlane.f32.xlu0 %v2505_v29 }
 0x168   :  { %v709_v16 = vpop.permute.xlu1 %708 }
 0x169   :  { %1888 = vpow2.f32 %v881_v62  ;;  %v748_v10 = vadd.f32 %v2510_v49, %v709_v16 }
 0x16a   :  { %1890 = vpow2.f32 %v879_v35  ;;  %v721_v35 = vpop.permute.xlu0 %720 }
 0x16b   :  { %v1885_v20 = vpop.eup %1884  ;;  %498 = vadd.xlane.f32.xlu0 %v2518_v46  ;;  %v764_v29 = vmul.f32 0.01, %v748_v10  ;;  %1892 = vpow2.f32 %v883_v5 }
 0x16c   :  { %v717_v4 = vpop.permute.xlu1 %716  ;;  %v2578_v54 = vmul.f32 %v1885_v20, %v2421_v34  ;;  %v1887_v17 = vpop.eup %1886  ;;  %1894 = vpow2.f32 %v887_v14  ;;  %v751_v20 = vadd.f32 %v2510_v49, %v721_v35 }
 0x16d   :  { %v750_v26 = vadd.f32 %v2510_v49, %v717_v4  ;;  %v780_v59 = vmax.f32 %v748_v10, %v764_v29  ;;  %v2588_v33 = vmul.f32 %v1887_v17, %v2414_v22 }
 0x16e   :  { %925 = vadd.xlane.f32.xlu1 %v2578_v54  ;;  %v767_v10 = vmul.f32 0.01, %v751_v20 }
 0x16f   :  { %915 = vadd.xlane.f32.xlu0 %v2533_v37  ;;  %v766_v52 = vmul.f32 0.01, %v750_v26 }
 0x170   :  { %v966_v44 = vpop.permute.xlu1 %965 }
 0x171   :  { %1792 = vmatprep.subr.bf16.mxu1 %v966_v44  ;;  %v782_v19 = vmax.f32 %v750_v26, %v766_v52 }
 0x172   :  { %1793 = vmatpush3.bf16.msra.mxu1 %v966_v44  ;;  %v949_v44 = vpack.c.bf16 %v2578_v54, %v2588_v33 }
 0x173   :  { %v1889_v46 = vpop.eup %1888  ;;  %919 = vadd.xlane.f32.xlu0 %v2538_v53 }
 0x174   :  { %v825_v34 = vpop.permute.xlu1 %824  ;;  %v2585_v63 = vmul.f32 %v1889_v46, %v2453_v15  ;;  %v1891_v37 = vpop.eup %1890 }
 0x175   :  { %v860_v61 = vsub.f32 %v780_v59, %v825_v34  ;;  %v2593_v38 = vmul.f32 %v1891_v37, %v2451_v9  ;;  %v1893_v55 = vpop.eup %1892 }
 0x176   :  { %929 = vadd.xlane.f32.xlu1 %v2585_v63  ;;  %v907_v22 = vmul.f32 %v1893_v55, %v2459_v25  ;;  %v1895_v58 = vpop.eup %1894  ;;  %v1077_v55 = vld [vmem:[#allocation2 + $0x8] sm:$0xff] }
 0x177   :  { %v885_v60 = vmul.f32 1.442695, %v860_v61  ;;  %923 = vadd.xlane.f32.xlu0 %v2588_v33  ;;  %v2599_v23 = vmul.f32 %v1895_v58, %v2483_v56  ;;  %v950_v52 = vpack.c.bf16 %v2585_v63, %v2593_v38  ;;  %v1079_v58 = vld [vmem:[#allocation2 + $0x18] sm:$0xff] }
 0x178   :  { %v833_v1 = vpop.permute.xlu1 %832 }
 0x179   :  { %1896 = vpow2.f32 %v885_v60  ;;  %v862_v39 = vsub.f32 %v782_v19, %v833_v1 }
 0x17b   :  { %v889_v15 = vmul.f32 1.442695, %v862_v39  ;;  %927 = vadd.xlane.f32.xlu0 %v2593_v38 }
 0x17c   :  { %v725_v57 = vpop.permute.xlu1 %724 }
 0x17d   :  { %1898 = vpow2.f32 %v889_v15  ;;  %v752_v3 = vadd.f32 %v2510_v49, %v725_v57 }
 0x17f   :  { %931 = vadd.xlane.f32.xlu0 %v907_v22  ;;  %v768_v8 = vmul.f32 0.01, %v752_v3 }
 0x180   :  { %v733_v40 = vpop.permute.xlu1 %732 }
 0x181   :  { %v754_v9 = vadd.f32 %v2510_v49, %v733_v40  ;;  %v784_v6 = vmax.f32 %v752_v3, %v768_v8 }
 0x183   :  { %v1897_v7 = vpop.eup %1896  ;;  %935 = vadd.xlane.f32.xlu0 %v2599_v23  ;;  %v770_v25 = vmul.f32 0.01, %v754_v9 }
 0x184   :  { %v908_v12 = vmul.f32 %v1897_v7, %v2466_v42  ;;  %v970_v36 = vpop.permute.xlu1 %969 }
 0x185   :  { %v786_v0 = vmax.f32 %v754_v9, %v770_v25 }
 0x186   :  { %933 = vadd.xlane.f32.xlu1 %v908_v12  ;;  %v951_v59 = vpack.c.bf16 %v908_v12, %v907_v22 }
 0x187   :  { %v1899_v48 = vpop.eup %1898 }
 0x188   :  { %v910_v18 = vmul.f32 %v1899_v48, %v2478_v43  ;;  %v841_v21 = vpop.permute.xlu1 %840 }
 0x189   :  { %v864_v24 = vsub.f32 %v784_v6, %v841_v21 }
 0x18a   :  { %937 = vadd.xlane.f32.xlu1 %v910_v18  ;;  %v952_v33 = vpack.c.bf16 %v910_v18, %v2599_v23 }
 0x18b   :  { %v893_v56 = vmul.f32 1.442695, %v864_v24 }
 0x18c   :  { %v849_v28 = vpop.permute.xlu1 %848 }
 0x18d   :  { %1900 = vpow2.f32 %v893_v56  ;;  %v866_v13 = vsub.f32 %v786_v0, %v849_v28 }
 0x18f   :  { %v897_v62 = vmul.f32 1.442695, %v866_v13 }
 0x191   :  { %1902 = vpow2.f32 %v897_v62 }
 0x197   :  { %v1901_v2 = vpop.eup %1900 }
 0x198   :  { %v912_v42 = vmul.f32 %v1901_v2, %v2490_v45  ;;  %v783_v45 = vmax.f32 %v751_v20, %v767_v10  ;;  %v1081_v20 = vld [vmem:[#allocation2 + $0x28] sm:$0xff]  ;;  %v1076_v10 = vld [vmem:[#allocation2] sm:$0xff] }
 0x19a   :  { %941 = vadd.xlane.f32.xlu1 %v912_v42 }
 0x19b   :  { %v1903_v32 = vpop.eup %1902  ;;  %v2607_v43 = vpop.xlane.xlu0 %470 }
 0x19c   :  { %v914_v16 = vmul.f32 %v1903_v32, %v2501_v27 }
 0x19e   :  { %945 = vadd.xlane.f32.xlu1 %v914_v16 }
 0x1a3   :  { %v729_v47 = vpop.permute.xlu0 %728 }
 0x1a4   :  { %v753_v5 = vadd.f32 %v2510_v49, %v729_v47 }
 0x1a6   :  { %v769_v4 = vmul.f32 0.01, %v753_v5 }
 0x1a7   :  { %v968_v50 = vpop.permute.xlu0 %967 }
 0x1a8   :  { %1794 = vmatprep.subr.bf16.mxu1 %v968_v50  ;;  %v785_v27 = vmax.f32 %v753_v5, %v769_v4 }
 0x1a9   :  { %1795 = vmatpush3.bf16.msra.mxu1 %v968_v50 }
 0x1aa   :  { %1796 = vmatprep.subr.bf16.mxu1 %v970_v36 }
 0x1ab   :  { %v837_v29 = vpop.permute.xlu0 %836 }
 0x1ac   :  { %v863_v26 = vsub.f32 %v783_v45, %v837_v29 }
 0x1ad   :  { %1797 = vmatpush3.bf16.msra.mxu1 %v970_v36 }
 0x1ae   :  { %v891_v14 = vmul.f32 1.442695, %v863_v26 }
 0x1af   :  { %v845_v17 = vpop.permute.xlu0 %844 }
 0x1b0   :  { %1904 = vpow2.f32 %v891_v14  ;;  %v865_v46 = vsub.f32 %v785_v27, %v845_v17  ;;  %1799 = vmatmul.mubr.bf16.vlgmr.msra.gmra.mrb[0].mxu1 %v948_v31  ;;  %v1078_v14 = vld [vmem:[#allocation2 + $0x10] sm:$0xff] }
 0x1b1   :  { %1802 = vmatprep.mubr.bf16.mxu1 %v949_v44 }
 0x1b2   :  { %v895_v49 = vmul.f32 1.442695, %v865_v46 }
 0x1b4   :  { %1906 = vpow2.f32 %v895_v49 }
 0x1b8   :  { %1803 = vmatmul.mubr.bf16.gmra.mrb[4].mxu1 %v950_v52 }
 0x1b9   :  { %1806 = vmatprep.mubr.bf16.mxu1 %v951_v59 }
 0x1ba   :  { %v1905_v34 = vpop.eup %1904 }
 0x1bb   :  { %v911_v61 = vmul.f32 %v1905_v34, %v2495_v11  ;;  %v1080_v34 = vld [vmem:[#allocation2 + $0x20] sm:$0xff] }
 0x1bd   :  { %939 = vadd.xlane.f32.xlu0 %v911_v61  ;;  %v953_v53 = vpack.c.bf16 %v912_v42, %v911_v61 }
 0x1be   :  { %v1907_v54 = vpop.eup %1906  ;;  %v2620_v37 = vpop.xlane.xlu1 %474 }
 0x1bf   :  { %v913_v51 = vmul.f32 %v1907_v54, %v2507_v30 }
 0x1c0   :  { %1807 = vmatmul.mubr.bf16.gmra.mrb[8].mxu1 %v952_v33 }
 0x1c1   :  { %1810 = vmatprep.mubr.bf16.mxu1 %v953_v53  ;;  %943 = vadd.xlane.f32.xlu0 %v913_v51  ;;  %v954_v63 = vpack.c.bf16 %v914_v16, %v913_v51 }
 0x1c2   :  { %v481_v31 = vpop.xlane.xlu1 %480 }
 0x1c6   :  { %v2623_v60 = vpop.xlane.xlu1 %484 }
 0x1c8   :  { %1811 = vmatmul.mubr.bf16.gmra.mrb[12].mxu1 %v954_v63 }
 0x1ca   :  { %v2625_v19 = vpop.xlane.xlu1 %488 }
 0x1ce   :  { %v2627_v11 = vpop.xlane.xlu1 %492 }
 0x1d2   :  { %v2629_v1 = vpop.xlane.xlu1 %496 }
 0x1d6   :  { %v2631_v39 = vpop.xlane.xlu1 %500 }
 0x1da   :  { %v918_v38 = vpop.xlane.xlu1 %917 }
 0x1dc   :  { %v473_v30 = vpop.xlane.xlu0 %472 }
 0x1dd   :  { %v1094_v15 = vsel %vm1092_vm1, %v473_v30, %v918_v38 }
 0x1de   :  { %v1110_v57 = vadd.f32 %v1094_v15, %v1077_v55  ;;  %v922_v22 = vpop.xlane.xlu1 %921 }
 0x1e0   :  { %1127 = vst.msk [vmem:[#allocation2 + $0x8] sm:$0xff] %vm92_vm0, %v1110_v57  ;;  %v477_v3 = vpop.xlane.xlu0 %476 }
 0x1e1   :  { %v1096_v40 = vsel %vm1092_vm1, %v477_v3, %v922_v22 }
 0x1e2   :  { %v1112_v23 = vadd.f32 %v1096_v40, %v1079_v58 }
 0x1e4   :  { %1129 = vst.msk [vmem:[#allocation2 + $0x18] sm:$0xff] %vm92_vm0, %v1112_v23  ;;  %v479_v7 = vpop.xlane.xlu0 %478 }
 0x1e7   :  { %v2637_v8 = vpop.f32.mrb[0].mxu0  ;;  %v1292_v9 = vld [vmem:[#allocation2 + $0x8] sm:$0xff] }
 0x1e8   :  { %v483_v12 = vpop.xlane.xlu0 %482  ;;  %v2639_v36 = vpop.f32.mrb[1].mxu0  ;;  %v1308_v48 = vmax.f32 %v1292_v9, 1e-20  ;;  %v1086_v9 = vld [vmem:[#allocation2 + $0x50] sm:$0xff] }
 0x1e9   :  { %v2641_v25 = vpop.f32.mrb[2].mxu0 }
 0x1ea   :  { %v2643_v6 = vpop.f32.mrb[3].mxu0  ;;  %1908 = vrcp.f32 %v1308_v48 }
 0x1eb   :  { %v1294_v30 = vld [vmem:[#allocation2 + $0x18] sm:$0xff] }
 0x1ec   :  { %v487_v18 = vpop.xlane.xlu0 %486  ;;  %v1310_v3 = vmax.f32 %v1294_v30, 1e-20 }
 0x1ef   :  { %v2645_v21 = vpop.f32.mrb[4].mxu0 }
 0x1f0   :  { %v2647_v24 = vpop.xlane.xlu0 %490  ;;  %v2649_v56 = vpop.f32.mrb[5].mxu0 }
 0x1f1   :  { %v2651_v0 = vpop.f32.mrb[6].mxu0 }
 0x1f2   :  { %v2653_v28 = vpop.f32.mrb[7].mxu0 }
 0x1f4   :  { %v2655_v13 = vpop.eup %1908  ;;  %v2657_v62 = vpop.xlane.xlu0 %494 }
 0x1f5   :  { %1378 = vperm.xlu0 %1833, %v2655_v13  }
 0x1f7   :  { %v2660_v2 = vpop.f32.mrb[8].mxu0 }
 0x1f8   :  { %v2662_v42 = vpop.xlane.xlu0 %498  ;;  %v2664_v32 = vpop.f32.mrb[9].mxu0 }
 0x1f9   :  { %v2666_v35 = vpop.f32.mrb[10].mxu0 }
 0x1fa   :  { %v2668_v16 = vpop.f32.mrb[11].mxu0 }
 0x1fb   :  { %v926_v47 = vpop.xlane.xlu1 %925 }
 0x1fc   :  { %v1098_v5 = vsel %vm1092_vm1, %v481_v31, %v926_v47  ;;  %v916_v50 = vpop.xlane.xlu0 %915 }
 0x1fd   :  { %v1114_v4 = vadd.f32 %v1098_v5, %v1081_v20  ;;  %v1093_v45 = vsel %vm1092_vm1, %v2607_v43, %v916_v50  ;;  %v1083_v43 = vld [vmem:[#allocation2 + $0x38] sm:$0xff] }
 0x1fe   :  { %v1109_v29 = vadd.f32 %v1093_v45, %v1076_v10 }
 0x1ff   :  { %1131 = vst.msk [vmem:[#allocation2 + $0x28] sm:$0xff] %vm92_vm0, %v1114_v4  ;;  %v2674_v26 = vpop.f32.mrb[12].mxu0  ;;  %v1085_v4 = vld [vmem:[#allocation2 + $0x48] sm:$0xff] }
 0x200   :  { %1126 = vst.msk [vmem:[#allocation2] sm:$0xff] %vm92_vm0, %v1109_v29  ;;  %v920_v27 = vpop.xlane.xlu0 %919  ;;  %v2677_v44 = vpop.f32.mrb[13].mxu0 }
 0x201   :  { %v1095_v17 = vsel %vm1092_vm1, %v2620_v37, %v920_v27  ;;  %v2681_v46 = vpop.f32.mrb[14].mxu0  ;;  %v1082_v37 = vld [vmem:[#allocation2 + $0x30] sm:$0xff] }
 0x202   :  { %v1111_v49 = vadd.f32 %v1095_v17, %v1078_v14  ;;  %v2683_v52 = vpop.f32.mrb[15].mxu0 }
 0x203   :  { %v930_v59 = vpop.xlane.xlu1 %929 }
 0x204   :  { %1128 = vst.msk [vmem:[#allocation2 + $0x10] sm:$0xff] %vm92_vm0, %v1111_v49  ;;  %v1100_v61 = vsel %vm1092_vm1, %v2623_v60, %v930_v59  ;;  %v924_v54 = vpop.xlane.xlu0 %923  ;;  %v1084_v60 = vld [vmem:[#allocation2 + $0x40] sm:$0xff] }
 0x205   :  { %v1116_v33 = vadd.f32 %v1100_v61, %v1083_v43  ;;  %v1097_v53 = vsel %vm1092_vm1, %v479_v7, %v924_v54 }
 0x206   :  { %v1113_v51 = vadd.f32 %v1097_v53, %v1080_v34  ;;  %v1296_v23 = vld [vmem:[#allocation2 + $0x28] sm:$0xff] }
 0x207   :  { %v1291_v31 = vld [vmem:[#allocation2] sm:$0xff]  ;;  %1133 = vst.msk [vmem:[#allocation2 + $0x38] sm:$0xff] %vm92_vm0, %v1116_v33  ;;  %v1312_v47 = vmax.f32 %v1296_v23, 1e-20  ;;  %v1091_v23 = vld [vmem:[#allocation2 + $0x78] sm:$0xff] }
 0x208   :  { %v1307_v63 = vmax.f32 %v1291_v31, 1e-20  ;;  %1130 = vst.msk [vmem:[#allocation2 + $0x20] sm:$0xff] %vm92_vm0, %v1113_v51  ;;  %v928_v38 = vpop.xlane.xlu0 %927 }
 0x209   :  { %v1099_v55 = vsel %vm1092_vm1, %v483_v12, %v928_v38 }
 0x20a   :  { %1910 = vrcp.f32 %v1307_v63  ;;  %v1115_v15 = vadd.f32 %v1099_v55, %v1082_v37 }
 0x20b   :  { %v1293_v57 = vld [vmem:[#allocation2 + $0x10] sm:$0xff] }
 0x20c   :  { %v1309_v22 = vmax.f32 %v1293_v57, 1e-20  ;;  %1132 = vst.msk [vmem:[#allocation2 + $0x30] sm:$0xff] %vm92_vm0, %v1115_v15  ;;  %v932_v58 = vpop.xlane.xlu0 %931 }
 0x20d   :  { %v1101_v40 = vsel %vm1092_vm1, %v487_v18, %v932_v58 }
 0x20e   :  { %1912 = vrcp.f32 %v1309_v22  ;;  %v1117_v7 = vadd.f32 %v1101_v40, %v1084_v60  ;;  %v1298_v5 = vld [vmem:[#allocation2 + $0x38] sm:$0xff]  ;;  %v1089_v60 = vld [vmem:[#allocation2 + $0x68] sm:$0xff] }
 0x20f   :  { %v1295_v48 = vld [vmem:[#allocation2 + $0x20] sm:$0xff]  ;;  %1914 = vrcp.f32 %v1310_v3  ;;  %v1314_v17 = vmax.f32 %v1298_v5, 1e-20 }
 0x210   :  { %1134 = vst.msk [vmem:[#allocation2 + $0x40] sm:$0xff] %vm92_vm0, %v1117_v7  ;;  %v936_v12 = vpop.xlane.xlu0 %935  ;;  %v1311_v20 = vmax.f32 %v1295_v48, 1e-20 }
 0x211   :  { %v1103_v10 = vsel %vm1092_vm1, %v2647_v24, %v936_v12  ;;  %v1087_v24 = vld [vmem:[#allocation2 + $0x58] sm:$0xff] }
 0x212   :  { %v1119_v50 = vadd.f32 %v1103_v10, %v1086_v9  ;;  %1916 = vrcp.f32 %v1311_v20 }
 0x213   :  { %v934_v45 = vpop.xlane.xlu1 %933  ;;  %v1297_v18 = vld [vmem:[#allocation2 + $0x30] sm:$0xff]  ;;  %1918 = vrcp.f32 %v1312_v47 }
 0x214   :  { %v2697_v29 = vpop.eup %1910  ;;  %1136 = vst.msk [vmem:[#allocation2 + $0x50] sm:$0xff] %vm92_vm0, %v1119_v50  ;;  %v1102_v14 = vsel %vm1092_vm1, %v2625_v19, %v934_v45  ;;  %v1313_v27 = vmax.f32 %v1297_v18, 1e-20 }
 0x215   :  { %v1118_v49 = vadd.f32 %v1102_v14, %v1085_v4  ;;  %1373 = vperm.xlu1 %1832, %v2697_v29  }
 0x216   :  { %1920 = vrcp.f32 %v1313_v27  ;;  %v1090_v27 = vld [vmem:[#allocation2 + $0x70] sm:$0xff] }
 0x217   :  { %1135 = vst.msk [vmem:[#allocation2 + $0x48] sm:$0xff] %vm92_vm0, %v1118_v49  ;;  %v938_v43 = vpop.xlane.xlu1 %937  ;;  %v1299_v59 = vld [vmem:[#allocation2 + $0x40] sm:$0xff]  ;;  %1922 = vrcp.f32 %v1314_v17 }
 0x218   :  { %v1913_v34 = vpop.eup %1912  ;;  %v1104_v61 = vsel %vm1092_vm1, %v2627_v11, %v938_v43  ;;  %v1315_v54 = vmax.f32 %v1299_v59, 1e-20 }
 0x219   :  { %v1120_v33 = vadd.f32 %v1104_v61, %v1087_v24  ;;  %1383 = vperm.xlu1 %1832, %v1913_v34   ;;  %v2706_v19 = vpop.eup %1914 }
 0x21a   :  { %1924 = vrcp.f32 %v1315_v54 }
 0x21b   :  { %1137 = vst.msk [vmem:[#allocation2 + $0x58] sm:$0xff] %vm92_vm0, %v1120_v33  ;;  %v1301_v53 = vld [vmem:[#allocation2 + $0x50] sm:$0xff] }
 0x21c   :  { %v1917_v51 = vpop.eup %1916  ;;  %v1317_v31 = vmax.f32 %v1301_v53, 1e-20 }
 0x21d   :  { %1393 = vperm.xlu0 %1833, %v1917_v51   ;;  %1388 = vperm.xlu1 %1832, %v2706_v19   ;;  %v2710_v63 = vpop.eup %1918 }
 0x21e   :  { %v1300_v37 = vld [vmem:[#allocation2 + $0x48] sm:$0xff]  ;;  %1926 = vrcp.f32 %v1317_v31 }
 0x21f   :  { %v1316_v11 = vmax.f32 %v1300_v37, 1e-20 }
 0x220   :  { %v1921_v38 = vpop.eup %1920 }
 0x221   :  { %1928 = vrcp.f32 %v1316_v11  ;;  %1403 = vperm.xlu0 %1833, %v1921_v38   ;;  %1398 = vperm.xlu1 %1832, %v2710_v63   ;;  %v2713_v30 = vpop.eup %1922 }
 0x222   :  { %v1302_v55 = vld [vmem:[#allocation2 + $0x58] sm:$0xff] }
 0x223   :  { %v1318_v15 = vmax.f32 %v1302_v55, 1e-20 }
 0x224   :  { %v1925_v57 = vpop.eup %1924 }
 0x225   :  { %1930 = vrcp.f32 %v1318_v15  ;;  %1413 = vperm.xlu0 %1833, %v1925_v57   ;;  %1408 = vperm.xlu1 %1832, %v2713_v30  }
 0x227   :  { %v942_v22 = vpop.xlane.xlu1 %941 }
 0x228   :  { %v1927_v58 = vpop.eup %1926  ;;  %v1106_v3 = vsel %vm1092_vm1, %v2629_v1, %v942_v22 }
 0x229   :  { %v1122_v40 = vadd.f32 %v1106_v3, %v1089_v60  ;;  %1423 = vperm.xlu0 %1833, %v1927_v58  }
 0x22b   :  { %v1929_v7 = vpop.eup %1928  ;;  %1139 = vst.msk [vmem:[#allocation2 + $0x68] sm:$0xff] %vm92_vm0, %v1122_v40  ;;  %v946_v9 = vpop.xlane.xlu1 %945 }
 0x22c   :  { %v1108_v48 = vsel %vm1092_vm1, %v2631_v39, %v946_v9  ;;  %1418 = vperm.xlu1 %1832, %v1929_v7   ;;  %v1088_v39 = vld [vmem:[#allocation2 + $0x60] sm:$0xff] }
 0x22d   :  { %v1124_v12 = vadd.f32 %v1108_v48, %v1091_v23 }
 0x22f   :  { %v1931_v20 = vpop.eup %1930  ;;  %1141 = vst.msk [vmem:[#allocation2 + $0x78] sm:$0xff] %vm92_vm0, %v1124_v12 }
 0x230   :  { %1428 = vperm.xlu1 %1832, %v1931_v20  }
 0x232   :  { %v1304_v47 = vld [vmem:[#allocation2 + $0x68] sm:$0xff] }
 0x233   :  { %v1320_v10 = vmax.f32 %v1304_v47, 1e-20 }
 0x235   :  { %1932 = vrcp.f32 %v1320_v10 }
 0x236   :  { %v1306_v1 = vld [vmem:[#allocation2 + $0x78] sm:$0xff] }
 0x237   :  { %v1322_v5 = vmax.f32 %v1306_v1, 1e-20 }
 0x239   :  { %1934 = vrcp.f32 %v1322_v5 }
 0x23f   :  { %v1933_v50 = vpop.eup %1932 }
 0x240   :  { %1438 = vperm.xlu1 %1832, %v1933_v50  }
 0x243   :  { %v2722_v4 = vpop.eup %1934 }
 0x244   :  { %1448 = vperm.xlu1 %1832, %v2722_v4  }
 0x248   :  { %1835 = vset.pattern.permute.xlu1 %v2122_v41 }
 0x249   :  { %1472 = vperm.xlu1 %1835, %v2655_v13  }
 0x24a   :  { %v940_v45 = vpop.xlane.xlu0 %939 }
 0x24b   :  { %v1105_v18 = vsel %vm1092_vm1, %v2657_v62, %v940_v45 }
 0x24c   :  { %v1121_v14 = vadd.f32 %v1105_v18, %v1088_v39 }
 0x24d   :  { %1476 = vperm.xlu1 %1835, %v1913_v34  }
 0x24e   :  { %1138 = vst.msk [vmem:[#allocation2 + $0x60] sm:$0xff] %vm92_vm0, %v1121_v14  ;;  %v944_v17 = vpop.xlane.xlu0 %943 }
 0x24f   :  { %v1107_v49 = vsel %vm1092_vm1, %v2662_v42, %v944_v17 }
 0x250   :  { %v1123_v24 = vadd.f32 %v1107_v49, %v1090_v27 }
 0x251   :  { %1484 = vperm.xlu1 %1835, %v1917_v51  }
 0x252   :  { %1140 = vst.msk [vmem:[#allocation2 + $0x70] sm:$0xff] %vm92_vm0, %v1123_v24 }
 0x255   :  { %v1303_v43 = vld [vmem:[#allocation2 + $0x60] sm:$0xff]  ;;  %1492 = vperm.xlu1 %1835, %v1921_v38  }
 0x256   :  { %v1319_v13 = vmax.f32 %v1303_v43, 1e-20 }
 0x258   :  { %1936 = vrcp.f32 %v1319_v13 }
 0x259   :  { %v1305_v59 = vld [vmem:[#allocation2 + $0x70] sm:$0xff]  ;;  %1500 = vperm.xlu1 %1835, %v1925_v57  }
 0x25a   :  { %v1321_v62 = vmax.f32 %v1305_v59, 1e-20 }
 0x25c   :  { %1938 = vrcp.f32 %v1321_v62 }
 0x25d   :  { %1508 = vperm.xlu1 %1835, %v1927_v58  }
 0x262   :  { %v1937_v34 = vpop.eup %1936 }
 0x263   :  { %1433 = vperm.xlu0 %1833, %v1937_v34   ;;  %1516 = vperm.xlu1 %1835, %v1937_v34  }
 0x266   :  { %v1939_v61 = vpop.eup %1938 }
 0x267   :  { %1443 = vperm.xlu0 %1833, %v1939_v61  }
 0x26b   :  { %1834 = vset.pattern.permute.xlu0 %v2122_v41 }
 0x26c   :  { %1468 = vperm.xlu0 %1834, %v2697_v29  }
 0x270   :  { %1480 = vperm.xlu0 %1834, %v2706_v19  }
 0x274   :  { %1488 = vperm.xlu0 %1834, %v2710_v63   ;;  %v1379_v9 = vpop.permute.xlu0 %1378 }
 0x278   :  { %1496 = vperm.xlu0 %1834, %v2713_v30  }
 0x27c   :  { %1504 = vperm.xlu0 %1834, %v1929_v7  }
 0x280   :  { %1512 = vperm.xlu0 %1834, %v1931_v20  }
 0x283   :  { %v1800_v42 = vpop.f32.mrb[0].mxu1 }
 0x284   :  { %v1013_v54 = vpop.f32.mrb[1].mxu1  ;;  %1520 = vperm.xlu0 %1834, %v1933_v50   ;;  %1178 = vrot.lane.b32.xlu1 %v1800_v42, %s2116_s17 }
 0x285   :  { %v1801_v33 = vpop.f32.mrb[2].mxu1 }
 0x286   :  { %v1016_v53 = vpop.f32.mrb[3].mxu1 }
 0x288   :  { %1174 = vrot.lane.b32.xlu0 %v1013_v54, %s2116_s17  ;;  %1176 = vrot.lane.b32.xlu1 %v1016_v53, %s2116_s17 }
 0x28b   :  { %v1804_v41 = vpop.f32.mrb[4].mxu1 }
 0x28c   :  { %v1029_v29 = vpop.f32.mrb[5].mxu1  ;;  %1180 = vrot.lane.b32.xlu0 %v1801_v33, %s2116_s17  ;;  %1186 = vrot.lane.b32.xlu1 %v1804_v41, %s2116_s17 }
 0x28d   :  { %v1805_v19 = vpop.f32.mrb[6].mxu1 }
 0x28e   :  { %v1032_v51 = vpop.f32.mrb[7].mxu1 }
 0x290   :  { %1188 = vrot.lane.b32.xlu0 %v1805_v19, %s2116_s17  ;;  %1182 = vrot.lane.b32.xlu1 %v1029_v29, %s2116_s17 }
 0x293   :  { %v1808_v31 = vpop.f32.mrb[8].mxu1 }
 0x294   :  { %v1045_v37 = vpop.f32.mrb[9].mxu1  ;;  %1184 = vrot.lane.b32.xlu0 %v1032_v51, %s2116_s17  ;;  %1194 = vrot.lane.b32.xlu1 %v1808_v31, %s2116_s17  ;;  %v2749_v55 = vpop.permute.xlu1 %1373 }
 0x295   :  { %v1809_v63 = vpop.f32.mrb[10].mxu1 }
 0x296   :  { %v1048_v11 = vpop.f32.mrb[11].mxu1 }
 0x298   :  { %1196 = vrot.lane.b32.xlu0 %v1809_v63, %s2116_s17  ;;  %1190 = vrot.lane.b32.xlu1 %v1045_v37, %s2116_s17  ;;  %v1384_v60 = vpop.permute.xlu1 %1383 }
 0x29b   :  { %v1812_v38 = vpop.f32.mrb[12].mxu1 }
 0x29c   :  { %v1061_v30 = vpop.f32.mrb[13].mxu1  ;;  %1192 = vrot.lane.b32.xlu0 %v1048_v11, %s2116_s17  ;;  %1202 = vrot.lane.b32.xlu1 %v1812_v38, %s2116_s17  ;;  %v2756_v22 = vpop.permute.xlu1 %1388 }
 0x29d   :  { %v1813_v15 = vpop.f32.mrb[14].mxu1  ;;  %v1394_v12 = vpop.permute.xlu0 %1393 }
 0x29e   :  { %v1064_v57 = vpop.f32.mrb[15].mxu1 }
 0x2a0   :  { %1204 = vrot.lane.b32.xlu0 %v1813_v15, %s2116_s17  ;;  %1198 = vrot.lane.b32.xlu1 %v1061_v30, %s2116_s17  ;;  %v2759_v58 = vpop.permute.xlu1 %1398 }
 0x2a1   :  { %v1404_v47 = vpop.permute.xlu0 %1403 }
 0x2a4   :  { %1200 = vrot.lane.b32.xlu0 %v1064_v57, %s2116_s17  ;;  %1524 = vperm.xlu1 %1835, %v1939_v61   ;;  %v2761_v3 = vpop.permute.xlu1 %1408 }
 0x2a5   :  { %v2771_v1 = vpop.permute.xlu0 %1413 }
 0x2a8   :  { %1528 = vperm.xlu0 %1834, %v2722_v4  }
 0x2a9   :  { %v1424_v50 = vpop.permute.xlu0 %1423 }
 0x2ab   :  { %v2763_v40 = vpop.permute.xlu1 %1418 }
 0x2af   :  { %v2765_v23 = vpop.permute.xlu1 %1428 }
 0x2bf   :  { %v2767_v7 = vpop.permute.xlu1 %1438 }
 0x2c3   :  { %v2769_v48 = vpop.permute.xlu1 %1448 }
 0x2c8   :  { %v1473_v20 = vpop.permute.xlu1 %1472 }
 0x2cc   :  { %v1477_v10 = vpop.permute.xlu1 %1476 }
 0x2d0   :  { %v1485_v5 = vpop.permute.xlu1 %1484 }
 0x2d4   :  { %v1493_v4 = vpop.permute.xlu1 %1492 }
 0x2d8   :  { %v2775_v45 = vpop.permute.xlu1 %1500 }
 0x2dc   :  { %v1509_v27 = vpop.permute.xlu1 %1508 }
 0x2e2   :  { %v2773_v39 = vpop.permute.xlu0 %1433  ;;  %v2781_v49 = vpop.permute.xlu1 %1516 }
 0x2e6   :  { %v2777_v18 = vpop.permute.xlu0 %1443 }
 0x2eb   :  { %v1469_v14 = vpop.permute.xlu0 %1468 }
 0x2ef   :  { %v2779_v17 = vpop.permute.xlu0 %1480 }
 0x2f3   :  { %v2783_v24 = vpop.permute.xlu0 %1488 }
 0x2f6   :  { %v1179_v43 = vpop.permute.xlu1 %1178 }
 0x2f7   :  { %v1225_v13 = vsel %vm1222_vm2, %v2637_v8, %v1179_v43  ;;  %v2787_v59 = vpop.permute.xlu0 %1496 }
 0x2f8   :  { %v1242_v62 = vsel %vm1239_vm3, %v1225_v13, 0.0 }
 0x2f9   :  { %v1453_v34 = vmul.f32 %v1384_v60, %v1242_v62  ;;  %v1533_v61 = vmul.f32 %v1477_v10, %v1242_v62 }
 0x2fa   :  { %v1177_v42 = vpop.permute.xlu1 %1176 }
 0x2fb   :  { %v1549_v54 = vsel %vm1222_vm2, %v1453_v34, %v1533_v61  ;;  %v1224_v33 = vsel %vm1222_vm2, %v2643_v6, %v1177_v42  ;;  %v2793_v53 = vpop.permute.xlu0 %1504 }
 0x2fc   :  { %v1565_v41 = vsel %vm1239_vm3, %v1549_v54, %v1242_v62  ;;  %v1241_v29 = vsel %vm1239_vm3, %v1224_v33, 0.0 }
 0x2fd   :  { %v1599_v19 = vmul.f32 1.442695, %v1565_v41  ;;  %v1452_v8 = vmul.f32 %v1379_v9, %v1241_v29  ;;  %v1532_v51 = vmul.f32 %v1473_v20, %v1241_v29  ;;  %vm1581_vm4 = vcmp.gt.f32.partialorder %v1565_v41, 0.0 }
 0x2fe   :  { %v1187_v31 = vpop.permute.xlu1 %1186 }
 0x2ff   :  { %1940 = vpow2.f32 %v1599_v19  ;;  %v1548_v37 = vsel %vm1222_vm2, %v1452_v8, %v1532_v51  ;;  %v1229_v63 = vsel %vm1222_vm2, %v2645_v21, %v1187_v31  ;;  %v2800_v11 = vpop.permute.xlu0 %1512 }
 0x300   :  { %v1564_v6 = vsel %vm1239_vm3, %v1548_v37, %v1241_v29  ;;  %v1246_v38 = vsel %vm1239_vm3, %v1229_v63, 0.0 }
 0x301   :  { %v1597_v30 = vmul.f32 1.442695, %v1564_v6  ;;  %v1457_v15 = vmul.f32 %v1404_v47, %v1246_v38  ;;  %v1537_v57 = vmul.f32 %v1493_v4, %v1246_v38  ;;  %vm1580_vm5 = vcmp.gt.f32.partialorder %v1564_v6, 0.0 }
 0x302   :  { %v1183_v60 = vpop.permute.xlu1 %1182 }
 0x303   :  { %1942 = vpow2.f32 %v1597_v30  ;;  %v1553_v9 = vsel %vm1222_vm2, %v1457_v15, %v1537_v57  ;;  %v1227_v20 = vsel %vm1222_vm2, %v2649_v56, %v1183_v60  ;;  %v2807_v10 = vpop.permute.xlu0 %1520 }
 0x304   :  { %v2810_v21 = vsel %vm1239_vm3, %v1553_v9, %v1246_v38  ;;  %v1244_v43 = vsel %vm1239_vm3, %v1227_v20, 0.0 }
 0x305   :  { %v1607_v13 = vmul.f32 1.442695, %v2810_v21  ;;  %v1455_v62 = vmul.f32 %v1394_v12, %v1244_v43  ;;  %v1535_v34 = vmul.f32 %v1485_v5, %v1244_v43  ;;  %vm1585_vm6 = vcmp.gt.f32.partialorder %v2810_v21, 0.0 }
 0x306   :  { %v1195_v47 = vpop.permute.xlu1 %1194 }
 0x307   :  { %1944 = vpow2.f32 %v1607_v13  ;;  %v1551_v4 = vsel %vm1222_vm2, %v1455_v62, %v1535_v34  ;;  %v1233_v61 = vsel %vm1222_vm2, %v2660_v2, %v1195_v47  ;;  %v1175_v42 = vpop.permute.xlu0 %1174 }
 0x308   :  { %v2818_v56 = vsel %vm1239_vm3, %v1551_v4, %v1244_v43  ;;  %v1250_v54 = vsel %vm1239_vm3, %v1233_v61, 0.0  ;;  %v1223_v33 = vsel %vm1222_vm2, %v2639_v36, %v1175_v42 }
 0x309   :  { %v1941_v29 = vpop.eup %1940  ;;  %v1603_v12 = vmul.f32 1.442695, %v2818_v56  ;;  %v1461_v5 = vmul.f32 %v1424_v50, %v1250_v54  ;;  %v1541_v19 = vmul.f32 %v1509_v27, %v1250_v54  ;;  %v1240_v51 = vsel %vm1239_vm3, %v1223_v33, 0.0 }
 0x30a   :  { %v1704_v8 = vadd.f32 -1.0, %v1941_v29  ;;  %v1191_v31 = vpop.permute.xlu1 %1190  ;;  %v1451_v37 = vmul.f32 %v2749_v55, %v1240_v51  ;;  %v1531_v63 = vmul.f32 %v1469_v14, %v1240_v51  ;;  %vm1583_vm7 = vcmp.gt.f32.partialorder %v2818_v56, 0.0 }
 0x30b   :  { %1946 = vpow2.f32 %v1603_v12  ;;  %v1557_v2 = vsel %vm1222_vm2, %v1461_v5, %v1541_v19  ;;  %v1181_v38 = vpop.permute.xlu0 %1180  ;;  %v1231_v50 = vsel %vm1222_vm2, %v2664_v32, %v1191_v31 }
 0x30c   :  { %v1645_v30 = vsel %vm1581_vm4, %v1565_v41, %v1704_v8  ;;  %v2828_v36 = vsel %vm1239_vm3, %v1557_v2, %v1250_v54  ;;  %v1226_v27 = vsel %vm1222_vm2, %v2641_v25, %v1181_v38  ;;  %v1547_v60 = vsel %vm1222_vm2, %v1451_v37, %v1531_v63 }
 0x30d   :  { %v1943_v15 = vpop.eup %1942  ;;  %1661 = vst [vmem:[#allocation13 + $0x10] sm:$0xff] %v1645_v30  ;;  %v1615_v57 = vmul.f32 1.442695, %v2828_v36  ;;  %v1248_v55 = vsel %vm1239_vm3, %v1231_v50, 0.0  ;;  %v2838_v41 = vsel %vm1239_vm3, %v1547_v60, %v1240_v51  ;;  %v1243_v43 = vsel %vm1239_vm3, %v1226_v27, 0.0 }
 0x30e   :  { %v1703_v14 = vadd.f32 -1.0, %v1943_v15  ;;  %v1459_v9 = vmul.f32 %v2771_v1, %v1248_v55  ;;  %v1539_v20 = vmul.f32 %v2775_v45, %v1248_v55  ;;  %v2842_v32 = vpop.permute.xlu1 %1202  ;;  %v1595_v25 = vmul.f32 1.442695, %v2838_v41 }
 0x30f   :  { %1948 = vpow2.f32 %v1615_v57  ;;  %v1189_v13 = vpop.permute.xlu0 %1188  ;;  %v1454_v47 = vmul.f32 %v2756_v22, %v1243_v43  ;;  %v1534_v4 = vmul.f32 %v2779_v17, %v1243_v43  ;;  %vm1589_vm8 = vcmp.gt.f32.partialorder %v2828_v36, 0.0 }
 0x310   :  { %v1644_v62 = vsel %vm1580_vm5, %v1564_v6, %v1703_v14  ;;  %v1555_v34 = vsel %vm1222_vm2, %v1459_v9, %v1539_v20  ;;  %1950 = vpow2.f32 %v1595_v25  ;;  %v1230_v45 = vsel %vm1222_vm2, %v2651_v0, %v1189_v13 }
 0x311   :  { %v1945_v61 = vpop.eup %1944  ;;  %1660 = vst [vmem:[#allocation13 + $0x8] sm:$0xff] %v1644_v62  ;;  %v2850_v1 = vsel %vm1239_vm3, %v1555_v34, %v1248_v55  ;;  %v1550_v6 = vsel %vm1222_vm2, %v1454_v47, %v1534_v4  ;;  %v1247_v17 = vsel %vm1239_vm3, %v1230_v45, 0.0  ;;  %vm1579_vm9 = vcmp.gt.f32.partialorder %v2838_v41, 0.0 }
 0x312   :  { %v1708_v42 = vadd.f32 -1.0, %v1945_v61  ;;  %v1611_v54 = vmul.f32 1.442695, %v2850_v1  ;;  %v1199_v33 = vpop.permute.xlu1 %1198  ;;  %v2858_v22 = vsel %vm1239_vm3, %v1550_v6, %v1243_v43  ;;  %v1458_v8 = vmul.f32 %v2761_v3, %v1247_v17 }
 0x313   :  { %v1235_v29 = vsel %vm1222_vm2, %v2677_v44, %v1199_v33  ;;  %v1185_v12 = vpop.permute.xlu0 %1184  ;;  %v1601_v0 = vmul.f32 1.442695, %v2858_v22  ;;  %v1538_v51 = vmul.f32 %v2787_v59, %v1247_v17  ;;  %vm1587_vm10 = vcmp.gt.f32.partialorder %v2850_v1, 0.0 }
 0x314   :  { %v1649_v5 = vsel %vm1585_vm6, %v2810_v21, %v1708_v42  ;;  %1952 = vpow2.f32 %v1611_v54  ;;  %v1252_v31 = vsel %vm1239_vm3, %v1235_v29, 0.0  ;;  %v1228_v2 = vsel %vm1222_vm2, %v2653_v28, %v1185_v12 }
 0x315   :  { %v1947_v19 = vpop.eup %1946  ;;  %1665 = vst [vmem:[#allocation13 + $0x30] sm:$0xff] %v1649_v5  ;;  %1954 = vpow2.f32 %v1601_v0  ;;  %v1463_v44 = vmul.f32 %v2773_v39, %v1252_v31  ;;  %v1543_v21 = vmul.f32 %v2781_v49, %v1252_v31  ;;  %v1554_v63 = vsel %vm1222_vm2, %v1458_v8, %v1538_v51 }
 0x316   :  { %v1706_v37 = vadd.f32 -1.0, %v1947_v19  ;;  %v1245_v38 = vsel %vm1239_vm3, %v1228_v2, 0.0  ;;  %v2877_v30 = vsel %vm1239_vm3, %v1554_v63, %v1247_v17  ;;  %vm1582_vm11 = vcmp.gt.f32.partialorder %v2858_v22, 0.0 }
 0x317   :  { %v1197_v3 = vpop.permute.xlu0 %1196  ;;  %v1559_v28 = vsel %vm1222_vm2, %v1463_v44, %v1543_v21  ;;  %v1456_v50 = vmul.f32 %v2759_v58, %v1245_v38  ;;  %v1609_v39 = vmul.f32 1.442695, %v2877_v30  ;;  %v1536_v15 = vmul.f32 %v2783_v24, %v1245_v38 }
 0x318   :  { %v1647_v59 = vsel %vm1583_vm7, %v2818_v56, %v1706_v37  ;;  %v2883_v49 = vsel %vm1239_vm3, %v1559_v28, %v1252_v31  ;;  %v1234_v56 = vsel %vm1222_vm2, %v2666_v35, %v1197_v3  ;;  %vm1586_vm12 = vcmp.gt.f32.partialorder %v2877_v30, 0.0 }
 0x319   :  { %v1949_v27 = vpop.eup %1948  ;;  %1663 = vst [vmem:[#allocation13 + $0x20] sm:$0xff] %v1647_v59  ;;  %v1619_v60 = vmul.f32 1.442695, %v2883_v49  ;;  %1956 = vpow2.f32 %v1609_v39  ;;  %v1552_v58 = vsel %vm1222_vm2, %v1456_v50, %v1536_v15  ;;  %v1251_v14 = vsel %vm1239_vm3, %v1234_v56, 0.0 }
 0x31a   :  { %v1712_v57 = vadd.f32 -1.0, %v1949_v27  ;;  %v1951_v55 = vpop.eup %1950  ;;  %v2894_v24 = vsel %vm1239_vm3, %v1552_v58, %v1245_v38  ;;  %v1462_v43 = vmul.f32 %v2765_v23, %v1251_v14  ;;  %v1542_v13 = vmul.f32 %v2800_v11, %v1251_v14 }
 0x31b   :  { %v1193_v9 = vpop.permute.xlu0 %1192  ;;  %v1702_v25 = vadd.f32 -1.0, %v1951_v55  ;;  %1958 = vpow2.f32 %v1619_v60  ;;  %v1605_v35 = vmul.f32 1.442695, %v2894_v24  ;;  %vm1591_vm13 = vcmp.gt.f32.partialorder %v2883_v49, 0.0 }
 0x31c   :  { %v1653_v20 = vsel %vm1589_vm8, %v2828_v36, %v1712_v57  ;;  %v1237_v36 = vsel %vm1222_vm2, %v2674_v26, %v2842_v32  ;;  %v1232_v47 = vsel %vm1222_vm2, %v2668_v16, %v1193_v9  ;;  %v1558_v61 = vsel %vm1222_vm2, %v1462_v43, %v1542_v13 }
 0x31d   :  { %1669 = vst [vmem:[#allocation13 + $0x50] sm:$0xff] %v1653_v20  ;;  %v1643_v34 = vsel %vm1579_vm9, %v2838_v41, %v1702_v25  ;;  %1960 = vpow2.f32 %v1605_v35  ;;  %v1249_v45 = vsel %vm1239_vm3, %v1232_v47, 0.0  ;;  %v1574_v11 = vsel %vm1239_vm3, %v1558_v61, %v1251_v14 }
 0x31e   :  { %v1953_v62 = vpop.eup %1952  ;;  %1659 = vst [vmem:[#allocation13] sm:$0xff] %v1643_v34  ;;  %v1460_v41 = vmul.f32 %v2763_v40, %v1249_v45  ;;  %v1540_v26 = vmul.f32 %v2793_v53, %v1249_v45  ;;  %v1617_v54 = vmul.f32 1.442695, %v1574_v11  ;;  %v1254_v17 = vsel %vm1239_vm3, %v1237_v36, 0.0 }
 0x31f   :  { %v1710_v4 = vadd.f32 -1.0, %v1953_v62  ;;  %v1205_v23 = vpop.permute.xlu0 %1204  ;;  %v1955_v42 = vpop.eup %1954  ;;  %vm1584_vm14 = vcmp.gt.f32.partialorder %v2894_v24, 0.0  ;;  %vm1590_vm15 = vcmp.gt.f32.partialorder %v1574_v11, 0.0 }
 0x320   :  { %v1705_v16 = vadd.f32 -1.0, %v1955_v42  ;;  %v1238_v6 = vsel %vm1222_vm2, %v2681_v46, %v1205_v23  ;;  %v1556_v33 = vsel %vm1222_vm2, %v1460_v41, %v1540_v26  ;;  %1962 = vpow2.f32 %v1617_v54 }
 0x321   :  { %v1651_v32 = vsel %vm1587_vm10, %v2850_v1, %v1710_v4  ;;  %v1572_v40 = vsel %vm1239_vm3, %v1556_v33, %v1249_v45  ;;  %v1255_v0 = vsel %vm1239_vm3, %v1238_v6, 0.0 }
 0x322   :  { %1667 = vst [vmem:[#allocation13 + $0x40] sm:$0xff] %v1651_v32  ;;  %v1646_v29 = vsel %vm1582_vm11, %v2858_v22, %v1705_v16  ;;  %v1613_v1 = vmul.f32 1.442695, %v1572_v40  ;;  %v1465_v22 = vmul.f32 %v2777_v18, %v1254_v17  ;;  %v1466_v63 = vmul.f32 %v2769_v48, %v1255_v0 }
 0x323   :  { %v1201_v53 = vpop.permute.xlu0 %1200  ;;  %v1525_v12 = vpop.permute.xlu1 %1524  ;;  %1662 = vst [vmem:[#allocation13 + $0x18] sm:$0xff] %v1646_v29  ;;  %vm1588_vm0 = vcmp.gt.f32.partialorder %v1572_v40, 0.0 }
 0x324   :  { %v1236_v5 = vsel %vm1222_vm2, %v2683_v52, %v1201_v53  ;;  %v1545_v46 = vmul.f32 %v1525_v12, %v1254_v17  ;;  %v1957_v19 = vpop.eup %1956  ;;  %1964 = vpow2.f32 %v1613_v1 }
 0x325   :  { %v1253_v8 = vsel %vm1239_vm3, %v1236_v5, 0.0  ;;  %v1959_v51 = vpop.eup %1958  ;;  %v1709_v31 = vadd.f32 -1.0, %v1957_v19 }
 0x326   :  { %v1464_v2 = vmul.f32 %v2767_v7, %v1253_v8  ;;  %v1544_v37 = vmul.f32 %v2807_v10, %v1253_v8  ;;  %v1714_v52 = vadd.f32 -1.0, %v1959_v51  ;;  %v1561_v44 = vsel %vm1222_vm2, %v1465_v22, %v1545_v46 }
 0x327   :  { %v1529_v21 = vpop.permute.xlu0 %1528  ;;  %v1650_v38 = vsel %vm1586_vm12, %v2877_v30, %v1709_v31  ;;  %v1577_v18 = vsel %vm1239_vm3, %v1561_v44, %v1254_v17  ;;  %v1961_v28 = vpop.eup %1960 }
 0x328   :  { %v1560_v3 = vsel %vm1222_vm2, %v1464_v2, %v1544_v37  ;;  %v1546_v59 = vmul.f32 %v1529_v21, %v1255_v0  ;;  %1666 = vst [vmem:[#allocation13 + $0x38] sm:$0xff] %v1650_v38  ;;  %v1655_v7 = vsel %vm1591_vm13, %v2883_v49, %v1714_v52  ;;  %v1623_v50 = vmul.f32 1.442695, %v1577_v18 }
 0x329   :  { %v1576_v10 = vsel %vm1239_vm3, %v1560_v3, %v1253_v8  ;;  %1671 = vst [vmem:[#allocation13 + $0x60] sm:$0xff] %v1655_v7  ;;  %v1707_v27 = vadd.f32 -1.0, %v1961_v28  ;;  %vm1593_vm1 = vcmp.gt.f32.partialorder %v1577_v18, 0.0 }
 0x32a   :  { %v1621_v39 = vmul.f32 1.442695, %v1576_v10  ;;  %v1562_v15 = vsel %vm1222_vm2, %v1466_v63, %v1546_v59  ;;  %1966 = vpow2.f32 %v1623_v50  ;;  %v1963_v60 = vpop.eup %1962  ;;  %vm1592_vm2 = vcmp.gt.f32.partialorder %v1576_v10, 0.0 }
 0x32b   :  { %v1578_v48 = vsel %vm1239_vm3, %v1562_v15, %v1255_v0  ;;  %v1648_v30 = vsel %vm1584_vm14, %v2894_v24, %v1707_v27  ;;  %v1713_v49 = vadd.f32 -1.0, %v1963_v60 }
 0x32c   :  { %1968 = vpow2.f32 %v1621_v39  ;;  %v1625_v57 = vmul.f32 1.442695, %v1578_v48  ;;  %1664 = vst [vmem:[#allocation13 + $0x28] sm:$0xff] %v1648_v30  ;;  %vm1594_vm3 = vcmp.gt.f32.partialorder %v1578_v48, 0.0 }
 0x32d   :  { %v1654_v55 = vsel %vm1590_vm15, %v1574_v11, %v1713_v49 }
 0x32e   :  { %1970 = vpow2.f32 %v1625_v57  ;;  %v1965_v56 = vpop.eup %1964  ;;  %1670 = vst [vmem:[#allocation13 + $0x58] sm:$0xff] %v1654_v55 }
 0x32f   :  { %v1711_v58 = vadd.f32 -1.0, %v1965_v56 }
 0x331   :  { %v1652_v14 = vsel %vm1588_vm0, %v1572_v40, %v1711_v58 }
 0x332   :  { %1668 = vst [vmem:[#allocation13 + $0x48] sm:$0xff] %v1652_v14 }
 0x334   :  { %v1967_v9 = vpop.eup %1966 }
 0x335   :  { %v1716_v25 = vadd.f32 -1.0, %v1967_v9 }
 0x336   :  { %v1969_v20 = vpop.eup %1968 }
 0x337   :  { %v1715_v35 = vadd.f32 -1.0, %v1969_v20  ;;  %v1657_v43 = vsel %vm1593_vm1, %v1577_v18, %v1716_v25 }
 0x338   :  { %v1971_v24 = vpop.eup %1970  ;;  %1673 = vst [vmem:[#allocation13 + $0x70] sm:$0xff] %v1657_v43 }
 0x339   :  { %v1656_v13 = vsel %vm1592_vm2, %v1576_v10, %v1715_v35  ;;  %v1717_v62 = vadd.f32 -1.0, %v1971_v24 }
 0x33a   :  { %1672 = vst [vmem:[#allocation13 + $0x68] sm:$0xff] %v1656_v13 }
 0x33b   :  { %v1658_v34 = vsel %vm1594_vm3, %v1578_v48, %v1717_v62 }
 0x33c   :  { %1674 = vst [vmem:[#allocation13 + $0x78] sm:$0xff] %v1658_v34 }
 0x33d   :  { %2093 = shalt.err (!%p2090_p2)
}
 0x33e   :  { %s2094_s9 = scalar_lea.hbm %s2960_s5, 2048 }
 0x33f   :  { %p2095_p3 = scmp.ne.s32.totalorder %s2960_s5, %s2094_s9  ;;  %p2098_p4 = scmp.lt.u32.totalorder %s2094_s9, %s2960_s5 }
 0x341   :  { %p2100_p5 = pnand %p2098_p4, %p2095_p3 }
 0x343   :  { %2103 = shalt.err (!%p2100_p5)
}
 0x344   :  { %1686 = dma.vmem_to_hbm [thread:$0]  %s1681_s29, 2048, %s2960_s5, [#allocation6], %s2115_s16, %s2115_s16, %s2116_s17  }
 0x345   :  { %2110 = dma.done.wait [#allocation6], 2048  }
 0x346   :  { %2111 = vsyncadd [#allocation6], 4294965248 }
 0x347   :  { %1690 = vsyncpa [#allocation5], 1 }
 0x348   :  { %1691 = vsyncpa [#allocation8], 1 }
 0x349   :  { %1692 = vsyncpa [#allocation11], 1 }
 0x34a   :  { %1693 = vsyncpa [#allocation6], 1 }

// kernel: gat_forward.7
= control target key start
LH: loop header
LB: loop body
LE: loop exit
PB: predicated region body
PF: predicated region fallthrough
CT: control target
= control target key end

     0   :  { %10 = vsyncpa [#allocation5], 0  ;;  %s1552_s0 = inlined_call_operand.hbm [shape: bf16[128,128], index: 0, kind: input, shape index: {}]   ;;  %s1553_s1 = inlined_call_operand.hbm [shape: f32[1,128], index: 1, kind: input, shape index: {}]   ;;  %s1554_s2 = inlined_call_operand.hbm [shape: f32[128,1], index: 2, kind: input, shape index: {}]   ;;  %s1555_s3 = inlined_call_operand.hbm [shape: f32[128,1], index: 3, kind: input, shape index: {}]   ;;  %s1556_s4 = inlined_call_operand.hbm [shape: s8[128,128], index: 4, kind: input, shape index: {}]   ;;  %s1557_s5 = inlined_call_operand.hbm [shape: f32[128,128], index: 5, kind: output, shape index: {}]  }
   0x1   :  { %11 = vsyncpa [#allocation8], 0 }
   0x2   :  { %12 = vsyncpa [#allocation11], 0 }
   0x3   :  { %13 = vsyncpa [#allocation6], 0  ;;  %s1316_s18 = smov [#allocation7]   ;;  %s1176_s22 = scalar_lea.hbm %s1553_s1, 16 }
   0x4   :  { %s32_s19 = sshll.u32 %s1316_s18, 4  ;;  %p1177_p0 = scmp.ne.s32.totalorder %s1553_s1, %s1176_s22  ;;  %s33_s19 = int_to_ptr.vmem [resolvable:$true] %s32_s19 }
   0x5   :  { %p1180_p1 = scmp.lt.u32.totalorder %s1176_s22, %s1553_s1 }
   0x7   :  { %p1182_p2 = pnand %p1180_p1, %p1177_p0 }
   0x9   :  { %1185 = shalt.err (!%p1182_p2)
}
   0xa   :  { %s1186_s27 = scalar_lea.vmem %s33_s19, 16  ;;  %s1190_s28 = scalar_lea.vmem %s33_s19, 32 }
   0xb   :  { %p1187_p3 = scmp.ne.s32.totalorder %s33_s19, %s1186_s27  ;;  %p1191_p4 = scmp.lt.s32.totalorder %s33_s19, %s33_s19 }
   0xc   :  { %p1192_p5 = scmp.lt.s32.totalorder %s1190_s28, %s1186_s27 }
   0xe   :  { %p1193_p6 = por %p1192_p5, %p1191_p4 }
  0x10   :  { %p1194_p7 = pnand %p1193_p6, %p1187_p3 }
  0x12   :  { %1197 = shalt.err (!%p1194_p7)
}
  0x13   :  { %35 = dma.hbm_to_vmem [thread:$0]  %s1553_s1, 16, %s33_s19, [#allocation8]  }
  0x14   :  { %s1317_s6 = smov [#allocation10]   ;;  %s1318_s8 = smov [#allocation4]  }
  0x15   :  { %s53_s7 = sshll.u32 %s1317_s6, 4  ;;  %s19_s9 = sshll.u32 %s1318_s8, 4  ;;  %s54_s7 = int_to_ptr.vmem [resolvable:$true] %s53_s7  ;;  %s20_s9 = int_to_ptr.vmem [resolvable:$true] %s19_s9 }
  0x16   :  { %s1198_s12 = scalar_lea.hbm %s1555_s3, 2048 }
  0x17   :  { %p1199_p8 = scmp.ne.s32.totalorder %s1555_s3, %s1198_s12  ;;  %p1202_p9 = scmp.lt.u32.totalorder %s1198_s12, %s1555_s3 }
  0x19   :  { %p1204_p10 = pnand %p1202_p9, %p1199_p8 }
  0x1b   :  { %1207 = shalt.err (!%p1204_p10)
}
  0x1c   :  { %s1208_s1 = scalar_lea.vmem %s54_s7, 2048  ;;  %p1213_p12 = scmp.lt.s32.totalorder %s54_s7, %s54_s7 }
  0x1d   :  { %p1209_p11 = scmp.ne.s32.totalorder %s54_s7, %s1208_s1  ;;  %p1214_p13 = scmp.lt.s32.totalorder %s1208_s1, %s1208_s1 }
  0x1f   :  { %p1215_p0 = por %p1214_p13, %p1213_p12 }
  0x21   :  { %p1216_p1 = pnand %p1215_p0, %p1209_p11 }
  0x23   :  { %1219 = shalt.err (!%p1216_p1)
}
  0x24   :  { %s1319_s17 = smov 128   ;;  %s1320_s18 = smov 8  }
  0x25   :  { %59 = dma.hbm_to_vmem [thread:$0]  %s1555_s3, 2048, %s54_s7, [#allocation11], %s1319_s17, %s1319_s17, %s1320_s18  }
  0x26   :  { %s1220_s23 = scalar_lea.hbm %s1552_s0, 1024 }
  0x27   :  { %p1221_p2 = scmp.ne.s32.totalorder %s1552_s0, %s1220_s23  ;;  %p1224_p3 = scmp.lt.u32.totalorder %s1220_s23, %s1552_s0 }
  0x29   :  { %p1226_p4 = pnand %p1224_p3, %p1221_p2 }
  0x2b   :  { %1229 = shalt.err (!%p1226_p4)
}
  0x2c   :  { %s1230_s28 = scalar_lea.vmem %s20_s9, 1024  ;;  %p1235_p6 = scmp.lt.s32.totalorder %s20_s9, %s20_s9 }
  0x2d   :  { %p1231_p5 = scmp.ne.s32.totalorder %s20_s9, %s1230_s28  ;;  %p1236_p7 = scmp.lt.s32.totalorder %s1230_s28, %s1230_s28 }
  0x2f   :  { %p1237_p8 = por %p1236_p7, %p1235_p6 }
  0x31   :  { %p1238_p9 = pnand %p1237_p8, %p1231_p5 }
  0x33   :  { %1241 = shalt.err (!%p1238_p9)
}
  0x34   :  { %s1321_s3 = smov 64   ;;  %s1322_s29 = smov 4  }
  0x35   :  { %25 = dma.hbm_to_vmem [thread:$0]  %s1552_s0, 1024, %s20_s9, [#allocation5], %s1321_s3, %s1321_s3, %s1322_s29  }
  0x36   :  { %s1323_s7 = smov [#allocation9]   ;;  %s1324_s10 = smov [#allocation12]  }
  0x37   :  { %s41_s8 = sshll.u32 %s1323_s7, 4  ;;  %s65_s11 = sshll.u32 %s1324_s10, 4  ;;  %s42_s8 = int_to_ptr.vmem [resolvable:$true] %s41_s8  ;;  %s66_s11 = int_to_ptr.vmem [resolvable:$true] %s65_s11 }
  0x38   :  { %s1242_s14 = scalar_lea.hbm %s1554_s2, 2048 }
  0x39   :  { %p1243_p10 = scmp.ne.s32.totalorder %s1554_s2, %s1242_s14  ;;  %p1246_p11 = scmp.lt.u32.totalorder %s1242_s14, %s1554_s2 }
  0x3b   :  { %p1248_p12 = pnand %p1246_p11, %p1243_p10 }
  0x3d   :  { %1251 = shalt.err (!%p1248_p12)
}
  0x3e   :  { %s1252_s0 = scalar_lea.vmem %s42_s8, 2048  ;;  %p1257_p0 = scmp.lt.s32.totalorder %s42_s8, %s42_s8 }
  0x3f   :  { %p1253_p13 = scmp.ne.s32.totalorder %s42_s8, %s1252_s0  ;;  %p1258_p1 = scmp.lt.s32.totalorder %s1252_s0, %s1252_s0 }
  0x41   :  { %p1259_p2 = por %p1258_p1, %p1257_p0 }
  0x43   :  { %p1260_p3 = pnand %p1259_p2, %p1253_p13 }
  0x45   :  { %1263 = shalt.err (!%p1260_p3)
}
  0x46   :  { %47 = dma.hbm_to_vmem [thread:$0]  %s1554_s2, 2048, %s42_s8, [#allocation8], %s1319_s17, %s1319_s17, %s1320_s18  }
  0x47   :  { %s1264_s23 = scalar_lea.hbm %s1556_s4, 512 }
  0x48   :  { %p1265_p4 = scmp.ne.s32.totalorder %s1556_s4, %s1264_s23  ;;  %p1268_p5 = scmp.lt.u32.totalorder %s1264_s23, %s1556_s4 }
  0x4a   :  { %p1270_p6 = pnand %p1268_p5, %p1265_p4 }
  0x4c   :  { %1273 = shalt.err (!%p1270_p6)
}
  0x4d   :  { %s1274_s28 = scalar_lea.vmem %s66_s11, 512  ;;  %p1279_p8 = scmp.lt.s32.totalorder %s66_s11, %s66_s11 }
  0x4e   :  { %p1275_p7 = scmp.ne.s32.totalorder %s66_s11, %s1274_s28  ;;  %p1280_p9 = scmp.lt.s32.totalorder %s1274_s28, %s1274_s28 }
  0x50   :  { %p1281_p10 = por %p1280_p9, %p1279_p8 }
  0x52   :  { %p1282_p11 = pnand %p1281_p10, %p1275_p7 }
  0x54   :  { %1285 = shalt.err (!%p1282_p11)
}
  0x55   :  { %71 = dma.hbm_to_vmem [thread:$0]  %s1556_s4, 512, %s66_s11, [#allocation11], %s1319_s17, %s1319_s17, %s1320_s18  }
  0x56   :  { %1308 = dma.done.wait [#allocation5], 1024  }
  0x57   :  { %1309 = vsyncadd [#allocation5], 4294966272 }
  0x58   :  { %1310 = dma.done.wait [#allocation8], 2064  }
  0x59   :  { %1311 = vsyncadd [#allocation8], 4294965232 }
  0x5a   :  { %1312 = dma.done.wait [#allocation11], 2560  }
  0x5b   :  { %1313 = vsyncadd [#allocation11], 4294964736  ;;  %v1325_v0 = vmov 0   ;;  %v169_v1 = vld [vmem:[#allocation9 + $0x40] sm:$0xff]  ;;  %v170_v3 = vld [vmem:[#allocation9 + $0x48] sm:$0xff]  ;;  %vm92_vm0 = vcmask 7168  }
  0x5c   :  { %1103 = vset.pattern.permute.xlu1 %v1325_v0  ;;  %1102 = vset.pattern.permute.xlu0 %v1325_v0  ;;  %v161_v2 = vld [vmem:[#allocation9] sm:$0xff]  ;;  %v162_v4 = vld [vmem:[#allocation9 + $0x8] sm:$0xff]  ;;  %v164_v5 = vld [vmem:[#allocation9 + $0x18] sm:$0xff]  ;;  %v1326_v41 = vmov 0.0   ;;  %vm738_vm1 = vcmask 31744   ;;  %s1327_s4 = smov [#allocation13]  }
  0x5d   :  { %236 = vperm.xlu1 %1103, %v169_v1   ;;  %196 = vperm.xlu0 %1102, %v161_v2   ;;  %v163_v6 = vld [vmem:[#allocation9 + $0x10] sm:$0xff]  ;;  %v172_v7 = vld [vmem:[#allocation9 + $0x58] sm:$0xff]  ;;  %v178_v10 = vld [vmem:[#allocation10 + $0x8] sm:$0xff]  ;;  %94 = vst.msk [vmem:[#allocation2 + $0x8] sm:$0xff] %vm92_vm0, %v1326_v41  ;;  %s1003_s29 = sshll.u32 %s1327_s4, 4  ;;  %s1004_s29 = int_to_ptr.vmem [resolvable:$true] %s1003_s29 }
  0x5e   :  { %v171_v8 = vld [vmem:[#allocation9 + $0x50] sm:$0xff]  ;;  %v1104_v9 = vld [vmem:[#allocation4] sm:$0xff]   ;;  %v1105_v12 = vld [vmem:[#allocation4 + $0x8] sm:$0xff]   ;;  %93 = vst.msk [vmem:[#allocation2] sm:$0xff] %vm92_vm0, %v1326_v41  ;;  %s1286_s30 = scalar_lea.vmem %s1004_s29, 2048  ;;  %p1291_p13 = scmp.lt.s32.totalorder %s1004_s29, %s1004_s29 }
  0x5f   :  { %v177_v11 = vld [vmem:[#allocation10] sm:$0xff]  ;;  %1042 = vmatprep.subr.bf16.mxu0 %v1104_v9  ;;  %1074 = vmatprep.subr.bf16.mxu1 %v1104_v9  ;;  %v186_v13 = vld [vmem:[#allocation10 + $0x48] sm:$0xff]  ;;  %v180_v16 = vld [vmem:[#allocation10 + $0x18] sm:$0xff]  ;;  %95 = vst.msk [vmem:[#allocation2 + $0x10] sm:$0xff] %vm92_vm0, %v1326_v41  ;;  %p1287_p12 = scmp.ne.s32.totalorder %s1004_s29, %s1286_s30  ;;  %p1292_p0 = scmp.lt.s32.totalorder %s1286_s30, %s1286_s30 }
  0x60   :  { %1043 = vmatpush3.bf16.msra.mxu0 %v1104_v9  ;;  %1082 = vmatpush3.bf16.msra.mxu1 %v1104_v9  ;;  %v185_v14 = vld [vmem:[#allocation10 + $0x40] sm:$0xff]  ;;  %v1106_v15 = vld [vmem:[#allocation4 + $0x10] sm:$0xff]   ;;  %v1107_v18 = vld [vmem:[#allocation4 + $0x18] sm:$0xff]   ;;  %96 = vst.msk [vmem:[#allocation2 + $0x18] sm:$0xff] %vm92_vm0, %v1326_v41 }
  0x61   :  { %241 = vperm.xlu1 %1103, %v170_v3   ;;  %201 = vperm.xlu0 %1102, %v162_v4   ;;  %v179_v17 = vld [vmem:[#allocation10 + $0x10] sm:$0xff]  ;;  %v188_v19 = vld [vmem:[#allocation10 + $0x58] sm:$0xff]  ;;  %v166_v22 = vld [vmem:[#allocation9 + $0x28] sm:$0xff]  ;;  %97 = vst.msk [vmem:[#allocation2 + $0x20] sm:$0xff] %vm92_vm0, %v1326_v41  ;;  %p1293_p1 = por %p1292_p0, %p1291_p13 }
  0x62   :  { %1044 = vmatprep.subr.bf16.mxu0 %v1105_v12  ;;  %1075 = vmatprep.subr.bf16.mxu1 %v1105_v12  ;;  %v187_v20 = vld [vmem:[#allocation10 + $0x50] sm:$0xff]  ;;  %v1108_v21 = vld [vmem:[#allocation4 + $0x20] sm:$0xff]   ;;  %v1109_v24 = vld [vmem:[#allocation4 + $0x28] sm:$0xff]   ;;  %98 = vst.msk [vmem:[#allocation2 + $0x28] sm:$0xff] %vm92_vm0, %v1326_v41 }
  0x63   :  { %v165_v23 = vld [vmem:[#allocation9 + $0x20] sm:$0xff]  ;;  %v174_v25 = vld [vmem:[#allocation9 + $0x68] sm:$0xff]  ;;  %v168_v28 = vld [vmem:[#allocation9 + $0x38] sm:$0xff]  ;;  %99 = vst.msk [vmem:[#allocation2 + $0x30] sm:$0xff] %vm92_vm0, %v1326_v41  ;;  %p1294_p2 = pnand %p1293_p1, %p1287_p12 }
  0x64   :  { %1045 = vmatpush3.bf16.msra.mxu0 %v1105_v12  ;;  %1083 = vmatpush3.bf16.msra.mxu1 %v1105_v12  ;;  %v173_v26 = vld [vmem:[#allocation9 + $0x60] sm:$0xff]  ;;  %v1110_v27 = vld [vmem:[#allocation4 + $0x30] sm:$0xff]   ;;  %v1111_v30 = vld [vmem:[#allocation4 + $0x38] sm:$0xff]   ;;  %100 = vst.msk [vmem:[#allocation2 + $0x38] sm:$0xff] %vm92_vm0, %v1326_v41 }
  0x65   :  { %211 = vperm.xlu1 %1103, %v164_v5   ;;  %206 = vperm.xlu0 %1102, %v163_v6   ;;  %v167_v29 = vld [vmem:[#allocation9 + $0x30] sm:$0xff]  ;;  %v176_v31 = vld [vmem:[#allocation9 + $0x78] sm:$0xff]  ;;  %v182_v33 = vld [vmem:[#allocation10 + $0x28] sm:$0xff]  ;;  %101 = vst.msk [vmem:[#allocation2 + $0x40] sm:$0xff] %vm92_vm0, %v1326_v41 }
  0x66   :  { %1046 = vmatprep.subr.bf16.mxu0 %v1106_v15  ;;  %1076 = vmatprep.subr.bf16.mxu1 %v1106_v15  ;;  %v175_v32 = vld [vmem:[#allocation9 + $0x70] sm:$0xff]  ;;  %v181_v34 = vld [vmem:[#allocation10 + $0x20] sm:$0xff]  ;;  %v190_v35 = vld [vmem:[#allocation10 + $0x68] sm:$0xff]  ;;  %102 = vst.msk [vmem:[#allocation2 + $0x48] sm:$0xff] %vm92_vm0, %v1326_v41 }
  0x67   :  { %v189_v36 = vld [vmem:[#allocation10 + $0x60] sm:$0xff]  ;;  %v184_v37 = vld [vmem:[#allocation10 + $0x38] sm:$0xff]  ;;  %v183_v38 = vld [vmem:[#allocation10 + $0x30] sm:$0xff]  ;;  %103 = vst.msk [vmem:[#allocation2 + $0x50] sm:$0xff] %vm92_vm0, %v1326_v41 }
  0x68   :  { %1047 = vmatpush3.bf16.msra.mxu0 %v1106_v15  ;;  %1084 = vmatpush3.bf16.msra.mxu1 %v1106_v15  ;;  %v192_v39 = vld [vmem:[#allocation10 + $0x78] sm:$0xff]  ;;  %v191_v40 = vld [vmem:[#allocation10 + $0x70] sm:$0xff]  ;;  %104 = vst.msk [vmem:[#allocation2 + $0x58] sm:$0xff] %vm92_vm0, %v1326_v41  ;;  %105 = vst.msk [vmem:[#allocation2 + $0x60] sm:$0xff] %vm92_vm0, %v1326_v41 }
  0x69   :  { %251 = vperm.xlu1 %1103, %v172_v7   ;;  %246 = vperm.xlu0 %1102, %v171_v8   ;;  %106 = vst.msk [vmem:[#allocation2 + $0x68] sm:$0xff] %vm92_vm0, %v1326_v41  ;;  %107 = vst.msk [vmem:[#allocation2 + $0x70] sm:$0xff] %vm92_vm0, %v1326_v41  ;;  %v1443_v44 = vld [vmem:[#allocation7] ss:$0 sm:$0xff]  ;;  %v125_v15 = vld [vmem:[#allocation12] sm:$0xff] }
  0x6a   :  { %1048 = vmatprep.subr.bf16.mxu0 %v1107_v18  ;;  %1077 = vmatprep.subr.bf16.mxu1 %v1107_v18  ;;  %108 = vst.msk [vmem:[#allocation2 + $0x78] sm:$0xff] %vm92_vm0, %v1326_v41 }
  0x6c   :  { %1049 = vmatpush3.bf16.msra.mxu0 %v1107_v18  ;;  %1085 = vmatpush3.bf16.msra.mxu1 %v1107_v18 }
  0x6d   :  { %335 = vperm.xlu1 %1103, %v178_v10   ;;  %330 = vperm.xlu0 %1102, %v177_v11  }
  0x6e   :  { %1050 = vmatprep.subr.bf16.mxu0 %v1108_v21  ;;  %1078 = vmatprep.subr.bf16.mxu1 %v1108_v21 }
  0x70   :  { %1051 = vmatpush3.bf16.msra.mxu0 %v1108_v21  ;;  %1086 = vmatpush3.bf16.msra.mxu1 %v1108_v21 }
  0x71   :  { %375 = vperm.xlu1 %1103, %v186_v13   ;;  %370 = vperm.xlu0 %1102, %v185_v14  }
  0x72   :  { %1052 = vmatprep.subr.bf16.mxu0 %v1109_v24  ;;  %1079 = vmatprep.subr.bf16.mxu1 %v1109_v24 }
  0x74   :  { %1053 = vmatpush3.bf16.msra.mxu0 %v1109_v24  ;;  %1087 = vmatpush3.bf16.msra.mxu1 %v1109_v24  ;;  %v130_v24 = vunpack.c.1.s8 %v125_v15 }
  0x75   :  { %345 = vperm.xlu1 %1103, %v180_v16   ;;  %340 = vperm.xlu0 %1102, %v179_v17  }
  0x76   :  { %1054 = vmatprep.subr.bf16.mxu0 %v1110_v27  ;;  %1080 = vmatprep.subr.bf16.mxu1 %v1110_v27 }
  0x78   :  { %1055 = vmatpush3.bf16.msra.mxu0 %v1110_v27  ;;  %1088 = vmatpush3.bf16.msra.mxu1 %v1110_v27 }
  0x79   :  { %385 = vperm.xlu1 %1103, %v188_v19   ;;  %380 = vperm.xlu0 %1102, %v187_v20  }
  0x7a   :  { %1056 = vmatprep.subr.bf16.mxu0 %v1111_v30  ;;  %1081 = vmatprep.subr.bf16.mxu1 %v1111_v30 }
  0x7c   :  { %1057 = vmatpush3.bf16.msra.mxu0 %v1111_v30  ;;  %1089 = vmatpush3.bf16.msra.mxu1 %v1111_v30 }
  0x7d   :  { %221 = vperm.xlu1 %1103, %v166_v22   ;;  %216 = vperm.xlu0 %1102, %v165_v23  }
  0x81   :  { %261 = vperm.xlu1 %1103, %v174_v25   ;;  %256 = vperm.xlu0 %1102, %v173_v26   ;;  %v129_v25 = vunpack.c.0.s8 %v125_v15 }
  0x85   :  { %231 = vperm.xlu1 %1103, %v168_v28   ;;  %226 = vperm.xlu0 %1102, %v167_v29   ;;  %v127_v28 = vld [vmem:[#allocation12 + $0x10] sm:$0xff] }
  0x89   :  { %271 = vperm.xlu1 %1103, %v176_v31   ;;  %266 = vperm.xlu0 %1102, %v175_v32  }
  0x8d   :  { %355 = vperm.xlu1 %1103, %v182_v33   ;;  %350 = vperm.xlu0 %1102, %v181_v34  }
  0x91   :  { %395 = vperm.xlu1 %1103, %v190_v35   ;;  %390 = vperm.xlu0 %1102, %v189_v36   ;;  %v146_v35 = vcvt.s32.f32 %v130_v24  ;;  %v145_v36 = vcvt.s32.f32 %v129_v25 }
  0x95   :  { %365 = vperm.xlu1 %1103, %v184_v37   ;;  %360 = vperm.xlu0 %1102, %v183_v38   ;;  %v138_v37 = vunpack.c.1.s8 %v127_v28 }
  0x99   :  { %405 = vperm.xlu1 %1103, %v192_v39   ;;  %400 = vperm.xlu0 %1102, %v191_v40   ;;  %v137_v40 = vunpack.c.0.s8 %v127_v28 }
  0xdc   :  { %v237_v42 = vpop.permute.xlu1 %236  ;;  %v197_v43 = vpop.permute.xlu0 %196 }
  0xdd   :  { %v280_v47 = vadd.f32 %v1443_v44, %v197_v43  ;;  %v288_v51 = vadd.f32 %v1443_v44, %v237_v42 }
  0xdf   :  { %v296_v53 = vmul.f32 0.01, %v280_v47  ;;  %v304_v57 = vmul.f32 0.01, %v288_v51 }
  0xe0   :  { %v242_v45 = vpop.permute.xlu1 %241  ;;  %v202_v46 = vpop.permute.xlu0 %201 }
  0xe1   :  { %v281_v48 = vadd.f32 %v1443_v44, %v202_v46  ;;  %v289_v52 = vadd.f32 %v1443_v44, %v242_v45  ;;  %v312_v62 = vmax.f32 %v280_v47, %v296_v53  ;;  %v320_v6 = vmax.f32 %v288_v51, %v304_v57 }
  0xe2   :  { %v131_v53 = vunpack.c.2.s8 %v125_v15 }
  0xe3   :  { %v297_v54 = vmul.f32 0.01, %v281_v48  ;;  %v305_v58 = vmul.f32 0.01, %v289_v52 }
  0xe4   :  { %v212_v49 = vpop.permute.xlu1 %211  ;;  %v207_v50 = vpop.permute.xlu0 %206 }
  0xe5   :  { %v283_v59 = vadd.f32 %v1443_v44, %v212_v49  ;;  %v282_v60 = vadd.f32 %v1443_v44, %v207_v50  ;;  %v313_v61 = vmax.f32 %v281_v48, %v297_v54  ;;  %v321_v5 = vmax.f32 %v289_v52, %v305_v58 }
  0xe6   :  { %v154_v49 = vcvt.s32.f32 %v138_v37  ;;  %v132_v50 = vunpack.c.3.s8 %v125_v15  ;;  %v153_v52 = vcvt.s32.f32 %v137_v40 }
  0xe7   :  { %v299_v3 = vmul.f32 0.01, %v283_v59  ;;  %v298_v7 = vmul.f32 0.01, %v282_v60 }
  0xe8   :  { %v252_v55 = vpop.permute.xlu1 %251  ;;  %v247_v56 = vpop.permute.xlu0 %246 }
  0xe9   :  { %v291_v4 = vadd.f32 %v1443_v44, %v252_v55  ;;  %v290_v8 = vadd.f32 %v1443_v44, %v247_v56  ;;  %v315_v17 = vmax.f32 %v283_v59, %v299_v3  ;;  %v314_v21 = vmax.f32 %v282_v60, %v298_v7 }
  0xea   :  { %v148_v60 = vcvt.s32.f32 %v132_v50 }
  0xeb   :  { %v307_v16 = vmul.f32 0.01, %v291_v4  ;;  %v306_v18 = vmul.f32 0.01, %v290_v8 }
  0xec   :  { %v336_v63 = vpop.permute.xlu1 %335  ;;  %v331_v0 = vpop.permute.xlu0 %330 }
  0xed   :  { %v409_v1 = vsub.f32 %v313_v61, %v336_v63  ;;  %v408_v2 = vsub.f32 %v312_v62, %v331_v0  ;;  %v323_v31 = vmax.f32 %v291_v4, %v307_v16  ;;  %v322_v32 = vmax.f32 %v290_v8, %v306_v18 }
  0xee   :  { %v140_v61 = vunpack.c.3.s8 %v127_v28  ;;  %v147_v63 = vcvt.s32.f32 %v131_v53  ;;  %v139_v0 = vunpack.c.2.s8 %v127_v28 }
  0xef   :  { %v426_v9 = vmul.f32 1.442695, %v409_v1  ;;  %v424_v10 = vmul.f32 1.442695, %v408_v2 }
  0xf0   :  { %v376_v11 = vpop.permute.xlu1 %375  ;;  %v371_v12 = vpop.permute.xlu0 %370 }
  0xf1   :  { %1112 = vpow2.f32 %v426_v9  ;;  %v417_v13 = vsub.f32 %v321_v5, %v376_v11  ;;  %v416_v14 = vsub.f32 %v320_v6, %v371_v12  ;;  %v156_v9 = vcvt.s32.f32 %v140_v61 }
  0xf2   :  { %1114 = vpow2.f32 %v424_v10  ;;  %v155_v11 = vcvt.s32.f32 %v139_v0 }
  0xf3   :  { %v442_v19 = vmul.f32 1.442695, %v417_v13  ;;  %v440_v20 = vmul.f32 1.442695, %v416_v14 }
  0xf4   :  { %v346_v22 = vpop.permute.xlu1 %345  ;;  %v341_v23 = vpop.permute.xlu0 %340 }
  0xf5   :  { %1116 = vpow2.f32 %v442_v19  ;;  %v411_v26 = vsub.f32 %v315_v17, %v346_v22  ;;  %v410_v27 = vsub.f32 %v314_v21, %v341_v23 }
  0xf6   :  { %1118 = vpow2.f32 %v440_v20 }
  0xf7   :  { %v430_v29 = vmul.f32 1.442695, %v411_v26  ;;  %v428_v30 = vmul.f32 1.442695, %v410_v27 }
  0xf8   :  { %v386_v33 = vpop.permute.xlu1 %385  ;;  %v381_v34 = vpop.permute.xlu0 %380 }
  0xf9   :  { %1120 = vpow2.f32 %v430_v29  ;;  %v419_v38 = vsub.f32 %v323_v31, %v386_v33  ;;  %v418_v39 = vsub.f32 %v322_v32, %v381_v34 }
  0xfa   :  { %1122 = vpow2.f32 %v428_v30 }
  0xfb   :  { %v1113_v41 = vpop.eup %1112  ;;  %v446_v42 = vmul.f32 1.442695, %v419_v38  ;;  %v444_v43 = vmul.f32 1.442695, %v418_v39 }
  0xfc   :  { %v1115_v45 = vpop.eup %1114  ;;  %v222_v46 = vpop.permute.xlu1 %221  ;;  %v457_v48 = vmul.f32 %v1113_v41, %v146_v35 }
  0xfd   :  { %v217_v47 = vpop.permute.xlu0 %216  ;;  %1124 = vpow2.f32 %v446_v42  ;;  %v456_v51 = vmul.f32 %v1115_v45, %v145_v36  ;;  %v285_v2 = vadd.f32 %v1443_v44, %v222_v46 }
  0xfe   :  { %1126 = vpow2.f32 %v444_v43  ;;  %474 = vadd.xlane.f32.xlu1 %v457_v48  ;;  %v284_v3 = vadd.f32 %v1443_v44, %v217_v47  ;;  %v126_v47 = vld [vmem:[#allocation12 + $0x8] sm:$0xff] }
  0xff   :  { %v1117_v54 = vpop.eup %1116  ;;  %472 = vadd.xlane.f32.xlu0 %v456_v51  ;;  %v504_v55 = vpack.c.bf16 %v457_v48, %v456_v51  ;;  %v301_v15 = vmul.f32 0.01, %v285_v2 }
 0x100   :  { %v1119_v56 = vpop.eup %1118  ;;  %v262_v57 = vpop.permute.xlu1 %261  ;;  %v1453_v59 = vmul.f32 %v1117_v54, %v154_v49  ;;  %v300_v16 = vmul.f32 0.01, %v284_v3 }
 0x101   :  { %v257_v58 = vpop.permute.xlu0 %256  ;;  %1058 = vmatprep.mubr.bf16.mxu0 %v504_v55  ;;  %v1455_v62 = vmul.f32 %v1119_v56, %v153_v52  ;;  %v293_v12 = vadd.f32 %v1443_v44, %v262_v57  ;;  %v317_v27 = vmax.f32 %v285_v2, %v301_v15  ;;  %v133_v56 = vunpack.c.0.s8 %v126_v47 }
 0x102   :  { %v292_v13 = vadd.f32 %v1443_v44, %v257_v58  ;;  %v316_v28 = vmax.f32 %v284_v3, %v300_v16  ;;  %v134_v57 = vunpack.c.1.s8 %v126_v47  ;;  %v136_v16 = vunpack.c.3.s8 %v126_v47 }
 0x103   :  { %v1121_v1 = vpop.eup %1120  ;;  %v508_v4 = vpack.c.bf16 %v1453_v59, %v1455_v62  ;;  %v309_v23 = vmul.f32 0.01, %v293_v12 }
 0x104   :  { %v1123_v5 = vpop.eup %1122  ;;  %v232_v6 = vpop.permute.xlu1 %231  ;;  %v459_v8 = vmul.f32 %v1121_v1, %v148_v60  ;;  %v308_v24 = vmul.f32 0.01, %v292_v13  ;;  %v128_v60 = vld [vmem:[#allocation12 + $0x18] sm:$0xff] }
 0x105   :  { %v227_v7 = vpop.permute.xlu0 %226  ;;  %1066 = vmatprep.mubr.bf16.mxu1 %v508_v4  ;;  %v458_v10 = vmul.f32 %v1123_v5, %v147_v63  ;;  %v287_v25 = vadd.f32 %v1443_v44, %v232_v6  ;;  %v325_v36 = vmax.f32 %v293_v12, %v309_v23  ;;  %v149_v4 = vcvt.s32.f32 %v133_v56 }
 0x106   :  { %v286_v26 = vadd.f32 %v1443_v44, %v227_v7  ;;  %v324_v37 = vmax.f32 %v292_v13, %v308_v24  ;;  %v150_v5 = vcvt.s32.f32 %v134_v57  ;;  %v142_v6 = vunpack.c.1.s8 %v128_v60 }
 0x107   :  { %v1125_v14 = vpop.eup %1124  ;;  %v505_v17 = vpack.c.bf16 %v459_v8, %v458_v10  ;;  %476 = vadd.xlane.f32.xlu0 %v458_v10  ;;  %v303_v34 = vmul.f32 0.01, %v287_v25 }
 0x108   :  { %v1127_v18 = vpop.eup %1126  ;;  %v272_v19 = vpop.permute.xlu1 %271  ;;  %v1463_v21 = vmul.f32 %v1125_v14, %v156_v9  ;;  %v302_v38 = vmul.f32 0.01, %v286_v26  ;;  %v141_v9 = vunpack.c.0.s8 %v128_v60  ;;  %v158_v15 = vcvt.s32.f32 %v142_v6 }
 0x109   :  { %v267_v20 = vpop.permute.xlu0 %266  ;;  %1059 = vmatmul.mubr.bf16.vlgmr.msra.gmra.mrb[0].mxu0 %v505_v17  ;;  %v1465_v22 = vmul.f32 %v1127_v18, %v155_v11  ;;  %v295_v35 = vadd.f32 %v1443_v44, %v272_v19  ;;  %v319_v49 = vmax.f32 %v287_v25, %v303_v34  ;;  %v135_v19 = vunpack.c.2.s8 %v126_v47 }
 0x10a   :  { %v294_v39 = vadd.f32 %v1443_v44, %v267_v20  ;;  %v318_v53 = vmax.f32 %v286_v26, %v302_v38  ;;  %v157_v18 = vcvt.s32.f32 %v141_v9  ;;  %v152_v26 = vcvt.s32.f32 %v136_v16  ;;  %v679_v9 = vld [vmem:[#allocation2 + $0x30] sm:$0xff]  ;;  %v681_v16 = vld [vmem:[#allocation2 + $0x40] sm:$0xff] }
 0x10b   :  { %478 = vadd.xlane.f32.xlu0 %v459_v8  ;;  %v509_v29 = vpack.c.bf16 %v1463_v21, %v1465_v22  ;;  %v311_v48 = vmul.f32 0.01, %v295_v35 }
 0x10c   :  { %v356_v30 = vpop.permute.xlu1 %355  ;;  %v310_v50 = vmul.f32 0.01, %v294_v39 }
 0x10d   :  { %v351_v31 = vpop.permute.xlu0 %350  ;;  %v413_v32 = vsub.f32 %v317_v27, %v356_v30  ;;  %1067 = vmatmul.mubr.bf16.vlgmr.msra.gmra.mrb[0].mxu1 %v509_v29  ;;  %v327_v0 = vmax.f32 %v295_v35, %v311_v48  ;;  %v144_v27 = vunpack.c.3.s8 %v128_v60  ;;  %v151_v29 = vcvt.s32.f32 %v135_v19 }
 0x10e   :  { %v412_v33 = vsub.f32 %v316_v28, %v351_v31  ;;  %v326_v1 = vmax.f32 %v294_v39, %v310_v50  ;;  %v143_v30 = vunpack.c.2.s8 %v128_v60 }
 0x10f   :  { %v434_v40 = vmul.f32 1.442695, %v413_v32  ;;  %v160_v35 = vcvt.s32.f32 %v144_v27  ;;  %v683_v27 = vld [vmem:[#allocation2 + $0x50] sm:$0xff] }
 0x110   :  { %v432_v41 = vmul.f32 1.442695, %v412_v33  ;;  %v396_v42 = vpop.permute.xlu1 %395 }
 0x111   :  { %v391_v43 = vpop.permute.xlu0 %390  ;;  %1128 = vpow2.f32 %v434_v40  ;;  %v421_v45 = vsub.f32 %v325_v36, %v396_v42 }
 0x112   :  { %v420_v46 = vsub.f32 %v324_v37, %v391_v43  ;;  %1130 = vpow2.f32 %v432_v41  ;;  %v159_v37 = vcvt.s32.f32 %v143_v30 }
 0x113   :  { %v450_v51 = vmul.f32 1.442695, %v421_v45  ;;  %v674_v45 = vld [vmem:[#allocation2 + $0x8] sm:$0xff] }
 0x114   :  { %v448_v52 = vmul.f32 1.442695, %v420_v46  ;;  %v366_v54 = vpop.permute.xlu1 %365  ;;  %v673_v46 = vld [vmem:[#allocation2] sm:$0xff] }
 0x115   :  { %v361_v55 = vpop.permute.xlu0 %360  ;;  %1132 = vpow2.f32 %v450_v51  ;;  %v415_v44 = vsub.f32 %v319_v49, %v366_v54 }
 0x116   :  { %v414_v58 = vsub.f32 %v318_v53, %v361_v55  ;;  %1134 = vpow2.f32 %v448_v52  ;;  %v676_v52 = vld [vmem:[#allocation2 + $0x18] sm:$0xff] }
 0x117   :  { %v438_v61 = vmul.f32 1.442695, %v415_v44 }
 0x118   :  { %v436_v63 = vmul.f32 1.442695, %v414_v58  ;;  %v406_v2 = vpop.permute.xlu1 %405 }
 0x119   :  { %v401_v3 = vpop.permute.xlu0 %400  ;;  %1136 = vpow2.f32 %v438_v61  ;;  %v423_v7 = vsub.f32 %v327_v0, %v406_v2  ;;  %v678_v0 = vld [vmem:[#allocation2 + $0x28] sm:$0xff] }
 0x11a   :  { %v422_v8 = vsub.f32 %v326_v1, %v401_v3  ;;  %1138 = vpow2.f32 %v436_v63  ;;  %v677_v1 = vld [vmem:[#allocation2 + $0x20] sm:$0xff] }
 0x11b   :  { %v1129_v10 = vpop.eup %1128  ;;  %v454_v11 = vmul.f32 1.442695, %v423_v7 }
 0x11c   :  { %v452_v12 = vmul.f32 1.442695, %v422_v8  ;;  %v1131_v13 = vpop.eup %1130  ;;  %v461_v14 = vmul.f32 %v1129_v10, %v150_v5  ;;  %v680_v8 = vld [vmem:[#allocation2 + $0x38] sm:$0xff] }
 0x11d   :  { %1140 = vpow2.f32 %v454_v11  ;;  %v460_v17 = vmul.f32 %v1131_v13, %v149_v4 }
 0x11e   :  { %1142 = vpow2.f32 %v452_v12  ;;  %482 = vadd.xlane.f32.xlu0 %v461_v14 }
 0x11f   :  { %v1133_v20 = vpop.eup %1132  ;;  %480 = vadd.xlane.f32.xlu1 %v460_v17  ;;  %v506_v23 = vpack.c.bf16 %v461_v14, %v460_v17  ;;  %v682_v14 = vld [vmem:[#allocation2 + $0x48] sm:$0xff] }
 0x120   :  { %v1135_v24 = vpop.eup %1134  ;;  %v469_v25 = vmul.f32 %v1133_v20, %v158_v15 }
 0x121   :  { %1062 = vmatprep.mubr.bf16.mxu0 %v506_v23  ;;  %v468_v28 = vmul.f32 %v1135_v24, %v157_v18 }
 0x123   :  { %v1137_v31 = vpop.eup %1136  ;;  %v510_v32 = vpack.c.bf16 %v469_v25, %v468_v28 }
 0x124   :  { %v1139_v33 = vpop.eup %1138  ;;  %v463_v34 = vmul.f32 %v1137_v31, %v152_v26  ;;  %v684_v26 = vld [vmem:[#allocation2 + $0x58] sm:$0xff] }
 0x125   :  { %1070 = vmatprep.mubr.bf16.mxu1 %v510_v32  ;;  %v462_v36 = vmul.f32 %v1139_v33, %v151_v29  ;;  %v686_v32 = vld [vmem:[#allocation2 + $0x68] sm:$0xff] }
 0x126   :  { %486 = vadd.xlane.f32.xlu0 %v463_v34 }
 0x127   :  { %v1141_v38 = vpop.eup %1140  ;;  %484 = vadd.xlane.f32.xlu1 %v462_v36  ;;  %v507_v39 = vpack.c.bf16 %v463_v34, %v462_v36  ;;  %v685_v34 = vld [vmem:[#allocation2 + $0x60] sm:$0xff] }
 0x128   :  { %v1143_v40 = vpop.eup %1142  ;;  %v471_v41 = vmul.f32 %v1141_v38, %v160_v35 }
 0x129   :  { %1063 = vmatmul.mubr.bf16.gmra.mrb[4].mxu0 %v507_v39  ;;  %v470_v42 = vmul.f32 %v1143_v40, %v159_v37 }
 0x12a   :  { %490 = vadd.xlane.f32.xlu0 %v1453_v59  ;;  %v675_v59 = vld [vmem:[#allocation2 + $0x10] sm:$0xff] }
 0x12b   :  { %488 = vadd.xlane.f32.xlu1 %v1455_v62  ;;  %v511_v43 = vpack.c.bf16 %v471_v41, %v470_v42 }
 0x12d   :  { %1071 = vmatmul.mubr.bf16.gmra.mrb[4].mxu1 %v511_v43 }
 0x12e   :  { %494 = vadd.xlane.f32.xlu0 %v1463_v21 }
 0x12f   :  { %492 = vadd.xlane.f32.xlu1 %v1465_v22 }
 0x132   :  { %498 = vadd.xlane.f32.xlu0 %v469_v25 }
 0x133   :  { %496 = vadd.xlane.f32.xlu1 %v468_v28 }
 0x136   :  { %502 = vadd.xlane.f32.xlu0 %v471_v41 }
 0x137   :  { %500 = vadd.xlane.f32.xlu1 %v470_v42  ;;  %v688_v42 = vld [vmem:[#allocation2 + $0x78] sm:$0xff] }
 0x18b   :  { %v475_v47 = vpop.xlane.xlu1 %474 }
 0x18c   :  { %v690_v48 = vadd.f32 %v674_v45, %v475_v47  ;;  %v473_v49 = vpop.xlane.xlu0 %472 }
 0x18d   :  { %v689_v50 = vadd.f32 %v673_v46, %v473_v49  ;;  %v687_v46 = vld [vmem:[#allocation2 + $0x70] sm:$0xff] }
 0x18e   :  { %707 = vst.msk [vmem:[#allocation2 + $0x8] sm:$0xff] %vm92_vm0, %v690_v48 }
 0x18f   :  { %706 = vst.msk [vmem:[#allocation2] sm:$0xff] %vm92_vm0, %v689_v50 }
 0x194   :  { %v477_v62 = vpop.xlane.xlu0 %476 }
 0x195   :  { %v691_v51 = vadd.f32 %v675_v59, %v477_v62  ;;  %v791_v21 = vld [vmem:[#allocation2 + $0x8] sm:$0xff] }
 0x196   :  { %v807_v22 = vmax.f32 %v791_v21, 1e-20  ;;  %v790_v53 = vld [vmem:[#allocation2] sm:$0xff] }
 0x197   :  { %708 = vst.msk [vmem:[#allocation2 + $0x10] sm:$0xff] %vm92_vm0, %v691_v51  ;;  %v806_v54 = vmax.f32 %v790_v53, 1e-20 }
 0x198   :  { %v479_v55 = vpop.xlane.xlu0 %478  ;;  %1144 = vrcp.f32 %v807_v22 }
 0x199   :  { %v692_v56 = vadd.f32 %v676_v52, %v479_v55  ;;  %1146 = vrcp.f32 %v806_v54 }
 0x19b   :  { %709 = vst.msk [vmem:[#allocation2 + $0x18] sm:$0xff] %vm92_vm0, %v692_v56 }
 0x19e   :  { %v792_v57 = vld [vmem:[#allocation2 + $0x10] sm:$0xff] }
 0x19f   :  { %v808_v44 = vmax.f32 %v792_v57, 1e-20 }
 0x1a1   :  { %1148 = vrcp.f32 %v808_v44 }
 0x1a2   :  { %v1145_v58 = vpop.eup %1144  ;;  %v793_v60 = vld [vmem:[#allocation2 + $0x18] sm:$0xff] }
 0x1a3   :  { %v1147_v61 = vpop.eup %1146  ;;  %877 = vperm.xlu0 %1102, %v1145_v58   ;;  %v809_v63 = vmax.f32 %v793_v60, 1e-20 }
 0x1a4   :  { %872 = vperm.xlu1 %1103, %v1147_v61  }
 0x1a5   :  { %1150 = vrcp.f32 %v809_v63 }
 0x1ab   :  { %v1149_v2 = vpop.eup %1148  ;;  %v483_v3 = vpop.xlane.xlu0 %482 }
 0x1ac   :  { %v481_v4 = vpop.xlane.xlu1 %480  ;;  %v694_v5 = vadd.f32 %v678_v0, %v483_v3  ;;  %882 = vperm.xlu1 %1103, %v1149_v2  }
 0x1ad   :  { %v693_v6 = vadd.f32 %v677_v1, %v481_v4 }
 0x1ae   :  { %711 = vst.msk [vmem:[#allocation2 + $0x28] sm:$0xff] %vm92_vm0, %v694_v5 }
 0x1af   :  { %v1151_v7 = vpop.eup %1150  ;;  %710 = vst.msk [vmem:[#allocation2 + $0x20] sm:$0xff] %vm92_vm0, %v693_v6 }
 0x1b0   :  { %887 = vperm.xlu1 %1103, %v1151_v7  }
 0x1b3   :  { %v487_v10 = vpop.xlane.xlu0 %486 }
 0x1b4   :  { %v485_v11 = vpop.xlane.xlu1 %484  ;;  %v696_v12 = vadd.f32 %v680_v8, %v487_v10 }
 0x1b5   :  { %v695_v13 = vadd.f32 %v679_v9, %v485_v11  ;;  %v795_v15 = vld [vmem:[#allocation2 + $0x28] sm:$0xff] }
 0x1b6   :  { %713 = vst.msk [vmem:[#allocation2 + $0x38] sm:$0xff] %vm92_vm0, %v696_v12  ;;  %v794_v17 = vld [vmem:[#allocation2 + $0x20] sm:$0xff]  ;;  %v811_v18 = vmax.f32 %v795_v15, 1e-20 }
 0x1b7   :  { %712 = vst.msk [vmem:[#allocation2 + $0x30] sm:$0xff] %vm92_vm0, %v695_v13  ;;  %v491_v19 = vpop.xlane.xlu0 %490  ;;  %v810_v20 = vmax.f32 %v794_v17, 1e-20 }
 0x1b8   :  { %v489_v23 = vpop.xlane.xlu1 %488  ;;  %v698_v24 = vadd.f32 %v682_v14, %v491_v19  ;;  %1152 = vrcp.f32 %v811_v18 }
 0x1b9   :  { %v697_v25 = vadd.f32 %v681_v16, %v489_v23  ;;  %1154 = vrcp.f32 %v810_v20 }
 0x1ba   :  { %715 = vst.msk [vmem:[#allocation2 + $0x48] sm:$0xff] %vm92_vm0, %v698_v24 }
 0x1bb   :  { %714 = vst.msk [vmem:[#allocation2 + $0x40] sm:$0xff] %vm92_vm0, %v697_v25  ;;  %v495_v28 = vpop.xlane.xlu0 %494 }
 0x1bc   :  { %v493_v29 = vpop.xlane.xlu1 %492  ;;  %v700_v30 = vadd.f32 %v684_v26, %v495_v28 }
 0x1bd   :  { %v699_v31 = vadd.f32 %v683_v27, %v493_v29  ;;  %v797_v33 = vld [vmem:[#allocation2 + $0x38] sm:$0xff] }
 0x1be   :  { %717 = vst.msk [vmem:[#allocation2 + $0x58] sm:$0xff] %vm92_vm0, %v700_v30  ;;  %v796_v35 = vld [vmem:[#allocation2 + $0x30] sm:$0xff]  ;;  %v813_v36 = vmax.f32 %v797_v33, 1e-20 }
 0x1bf   :  { %716 = vst.msk [vmem:[#allocation2 + $0x50] sm:$0xff] %vm92_vm0, %v699_v31  ;;  %v499_v37 = vpop.xlane.xlu0 %498  ;;  %v812_v38 = vmax.f32 %v796_v35, 1e-20 }
 0x1c0   :  { %v497_v39 = vpop.xlane.xlu1 %496  ;;  %v702_v40 = vadd.f32 %v686_v32, %v499_v37  ;;  %1156 = vrcp.f32 %v813_v36 }
 0x1c1   :  { %v701_v41 = vadd.f32 %v685_v34, %v497_v39  ;;  %1158 = vrcp.f32 %v812_v38  ;;  %v799_v43 = vld [vmem:[#allocation2 + $0x48] sm:$0xff] }
 0x1c2   :  { %v1153_v45 = vpop.eup %1152  ;;  %719 = vst.msk [vmem:[#allocation2 + $0x68] sm:$0xff] %vm92_vm0, %v702_v40  ;;  %v798_v47 = vld [vmem:[#allocation2 + $0x40] sm:$0xff]  ;;  %v815_v48 = vmax.f32 %v799_v43, 1e-20 }
 0x1c3   :  { %v1155_v49 = vpop.eup %1154  ;;  %718 = vst.msk [vmem:[#allocation2 + $0x60] sm:$0xff] %vm92_vm0, %v701_v41  ;;  %v503_v50 = vpop.xlane.xlu0 %502  ;;  %897 = vperm.xlu1 %1103, %v1153_v45   ;;  %v814_v59 = vmax.f32 %v798_v47, 1e-20 }
 0x1c4   :  { %v501_v62 = vpop.xlane.xlu1 %500  ;;  %v704_v51 = vadd.f32 %v688_v42, %v503_v50  ;;  %892 = vperm.xlu0 %1102, %v1155_v49   ;;  %1160 = vrcp.f32 %v815_v48 }
 0x1c5   :  { %v703_v21 = vadd.f32 %v687_v46, %v501_v62  ;;  %1162 = vrcp.f32 %v814_v59  ;;  %v801_v52 = vld [vmem:[#allocation2 + $0x58] sm:$0xff] }
 0x1c6   :  { %721 = vst.msk [vmem:[#allocation2 + $0x78] sm:$0xff] %vm92_vm0, %v704_v51  ;;  %v800_v22 = vld [vmem:[#allocation2 + $0x50] sm:$0xff]  ;;  %v817_v53 = vmax.f32 %v801_v52, 1e-20 }
 0x1c7   :  { %720 = vst.msk [vmem:[#allocation2 + $0x70] sm:$0xff] %vm92_vm0, %v703_v21  ;;  %v816_v54 = vmax.f32 %v800_v22, 1e-20 }
 0x1c8   :  { %1164 = vrcp.f32 %v817_v53 }
 0x1c9   :  { %1166 = vrcp.f32 %v816_v54  ;;  %v803_v55 = vld [vmem:[#allocation2 + $0x68] sm:$0xff] }
 0x1ca   :  { %v1157_v56 = vpop.eup %1156  ;;  %v802_v57 = vld [vmem:[#allocation2 + $0x60] sm:$0xff]  ;;  %v819_v44 = vmax.f32 %v803_v55, 1e-20 }
 0x1cb   :  { %v1159_v58 = vpop.eup %1158  ;;  %907 = vperm.xlu1 %1103, %v1157_v56   ;;  %v818_v60 = vmax.f32 %v802_v57, 1e-20 }
 0x1cc   :  { %902 = vperm.xlu0 %1102, %v1159_v58   ;;  %1168 = vrcp.f32 %v819_v44 }
 0x1cd   :  { %1170 = vrcp.f32 %v818_v60  ;;  %v805_v61 = vld [vmem:[#allocation2 + $0x78] sm:$0xff] }
 0x1ce   :  { %v1161_v63 = vpop.eup %1160  ;;  %v804_v0 = vld [vmem:[#allocation2 + $0x70] sm:$0xff]  ;;  %v821_v1 = vmax.f32 %v805_v61, 1e-20 }
 0x1cf   :  { %v1163_v2 = vpop.eup %1162  ;;  %917 = vperm.xlu1 %1103, %v1161_v63   ;;  %v820_v3 = vmax.f32 %v804_v0, 1e-20 }
 0x1d0   :  { %912 = vperm.xlu0 %1102, %v1163_v2   ;;  %1172 = vrcp.f32 %v821_v1 }
 0x1d1   :  { %1174 = vrcp.f32 %v820_v3 }
 0x1d2   :  { %v1165_v4 = vpop.eup %1164 }
 0x1d3   :  { %v1167_v5 = vpop.eup %1166  ;;  %927 = vperm.xlu1 %1103, %v1165_v4  }
 0x1d4   :  { %922 = vperm.xlu0 %1102, %v1167_v5  }
 0x1d6   :  { %v1169_v6 = vpop.eup %1168 }
 0x1d7   :  { %v1171_v7 = vpop.eup %1170  ;;  %937 = vperm.xlu1 %1103, %v1169_v6  }
 0x1d8   :  { %932 = vperm.xlu0 %1102, %v1171_v7  }
 0x1da   :  { %v1173_v8 = vpop.eup %1172 }
 0x1db   :  { %v1175_v9 = vpop.eup %1174  ;;  %947 = vperm.xlu1 %1103, %v1173_v8  }
 0x1dc   :  { %v1060_v10 = vpop.f32.mrb[0].mxu0  ;;  %942 = vperm.xlu0 %1102, %v1175_v9  }
 0x1dd   :  { %v610_v11 = vpop.f32.mrb[1].mxu0  ;;  %v741_v36 = vsel %vm738_vm1, %v1060_v10, 0.0 }
 0x1de   :  { %v1061_v12 = vpop.f32.mrb[2].mxu0  ;;  %v739_v30 = vsel %vm738_vm1, %v610_v11, 0.0 }
 0x1df   :  { %v613_v13 = vpop.f32.mrb[3].mxu0  ;;  %v742_v40 = vsel %vm738_vm1, %v1061_v12, 0.0 }
 0x1e0   :  { %v1493_v14 = vpop.f32.mrb[0].mxu1  ;;  %v740_v28 = vsel %vm738_vm1, %v613_v13, 0.0 }
 0x1e1   :  { %v642_v15 = vpop.f32.mrb[1].mxu1  ;;  %v749_v4 = vsel %vm738_vm1, %v1493_v14, 0.0 }
 0x1e2   :  { %v1069_v16 = vpop.f32.mrb[2].mxu1  ;;  %v747_v58 = vsel %vm738_vm1, %v642_v15, 0.0 }
 0x1e3   :  { %v645_v17 = vpop.f32.mrb[3].mxu1  ;;  %v750_v1 = vsel %vm738_vm1, %v1069_v16, 0.0 }
 0x1e4   :  { %v748_v56 = vsel %vm738_vm1, %v645_v17, 0.0 }
 0x1fc   :  { %v1064_v18 = vpop.f32.mrb[4].mxu0 }
 0x1fd   :  { %v626_v19 = vpop.f32.mrb[5].mxu0  ;;  %v745_v52 = vsel %vm738_vm1, %v1064_v18, 0.0 }
 0x1fe   :  { %v1065_v20 = vpop.f32.mrb[6].mxu0  ;;  %v743_v47 = vsel %vm738_vm1, %v626_v19, 0.0 }
 0x1ff   :  { %v629_v23 = vpop.f32.mrb[7].mxu0  ;;  %v746_v51 = vsel %vm738_vm1, %v1065_v20, 0.0 }
 0x200   :  { %v1495_v24 = vpop.f32.mrb[4].mxu1  ;;  %v744_v45 = vsel %vm738_vm1, %v629_v23, 0.0 }
 0x201   :  { %v1497_v25 = vpop.f32.mrb[5].mxu1  ;;  %v753_v20 = vsel %vm738_vm1, %v1495_v24, 0.0 }
 0x202   :  { %v1499_v26 = vpop.f32.mrb[6].mxu1  ;;  %v751_v12 = vsel %vm738_vm1, %v1497_v25, 0.0 }
 0x203   :  { %v661_v27 = vpop.f32.mrb[7].mxu1  ;;  %v754_v17 = vsel %vm738_vm1, %v1499_v26, 0.0 }
 0x204   :  { %v752_v9 = vsel %vm738_vm1, %v661_v27, 0.0 }
 0x222   :  { %v878_v29 = vpop.permute.xlu0 %877 }
 0x223   :  { %v951_v31 = vmul.f32 %v878_v29, %v740_v28  ;;  %v873_v32 = vpop.permute.xlu1 %872 }
 0x224   :  { %v950_v33 = vmul.f32 %v873_v32, %v739_v30 }
 0x225   :  { %v967_v34 = vsel %vm738_vm1, %v951_v31, %v740_v28 }
 0x226   :  { %983 = vst [vmem:[#allocation13 + $0x8] sm:$0xff] %v967_v34  ;;  %v966_v35 = vsel %vm738_vm1, %v950_v33, %v739_v30 }
 0x227   :  { %982 = vst [vmem:[#allocation13] sm:$0xff] %v966_v35 }
 0x22b   :  { %v883_v37 = vpop.permute.xlu1 %882 }
 0x22c   :  { %v952_v38 = vmul.f32 %v883_v37, %v741_v36 }
 0x22e   :  { %v968_v39 = vsel %vm738_vm1, %v952_v38, %v741_v36 }
 0x22f   :  { %984 = vst [vmem:[#allocation13 + $0x10] sm:$0xff] %v968_v39  ;;  %v888_v41 = vpop.permute.xlu1 %887 }
 0x230   :  { %v953_v42 = vmul.f32 %v888_v41, %v742_v40 }
 0x232   :  { %v969_v43 = vsel %vm738_vm1, %v953_v42, %v742_v40 }
 0x233   :  { %985 = vst [vmem:[#allocation13 + $0x18] sm:$0xff] %v969_v43 }
 0x242   :  { %v898_v46 = vpop.permute.xlu1 %897 }
 0x243   :  { %v893_v48 = vpop.permute.xlu0 %892  ;;  %v955_v49 = vmul.f32 %v898_v46, %v744_v45 }
 0x244   :  { %v954_v50 = vmul.f32 %v893_v48, %v743_v47 }
 0x245   :  { %v971_v59 = vsel %vm738_vm1, %v955_v49, %v744_v45 }
 0x246   :  { %v970_v62 = vsel %vm738_vm1, %v954_v50, %v743_v47  ;;  %987 = vst [vmem:[#allocation13 + $0x28] sm:$0xff] %v971_v59 }
 0x247   :  { %986 = vst [vmem:[#allocation13 + $0x20] sm:$0xff] %v970_v62 }
 0x24a   :  { %v908_v21 = vpop.permute.xlu1 %907 }
 0x24b   :  { %v903_v22 = vpop.permute.xlu0 %902  ;;  %v957_v53 = vmul.f32 %v908_v21, %v746_v51 }
 0x24c   :  { %v956_v54 = vmul.f32 %v903_v22, %v745_v52 }
 0x24d   :  { %v973_v55 = vsel %vm738_vm1, %v957_v53, %v746_v51 }
 0x24e   :  { %v972_v57 = vsel %vm738_vm1, %v956_v54, %v745_v52  ;;  %989 = vst [vmem:[#allocation13 + $0x38] sm:$0xff] %v973_v55  ;;  %v918_v44 = vpop.permute.xlu1 %917 }
 0x24f   :  { %988 = vst [vmem:[#allocation13 + $0x30] sm:$0xff] %v972_v57  ;;  %v913_v60 = vpop.permute.xlu0 %912  ;;  %v959_v61 = vmul.f32 %v918_v44, %v748_v56 }
 0x250   :  { %v958_v63 = vmul.f32 %v913_v60, %v747_v58 }
 0x251   :  { %v975_v0 = vsel %vm738_vm1, %v959_v61, %v748_v56 }
 0x252   :  { %v974_v2 = vsel %vm738_vm1, %v958_v63, %v747_v58  ;;  %991 = vst [vmem:[#allocation13 + $0x48] sm:$0xff] %v975_v0  ;;  %v928_v3 = vpop.permute.xlu1 %927 }
 0x253   :  { %990 = vst [vmem:[#allocation13 + $0x40] sm:$0xff] %v974_v2  ;;  %v923_v5 = vpop.permute.xlu0 %922  ;;  %v961_v6 = vmul.f32 %v928_v3, %v750_v1 }
 0x254   :  { %v960_v7 = vmul.f32 %v923_v5, %v749_v4 }
 0x255   :  { %v977_v8 = vsel %vm738_vm1, %v961_v6, %v750_v1 }
 0x256   :  { %v976_v10 = vsel %vm738_vm1, %v960_v7, %v749_v4  ;;  %993 = vst [vmem:[#allocation13 + $0x58] sm:$0xff] %v977_v8  ;;  %v938_v11 = vpop.permute.xlu1 %937 }
 0x257   :  { %992 = vst [vmem:[#allocation13 + $0x50] sm:$0xff] %v976_v10  ;;  %v933_v13 = vpop.permute.xlu0 %932  ;;  %v963_v15 = vmul.f32 %v938_v11, %v752_v9 }
 0x258   :  { %v962_v16 = vmul.f32 %v933_v13, %v751_v12 }
 0x259   :  { %v979_v14 = vsel %vm738_vm1, %v963_v15, %v752_v9 }
 0x25a   :  { %v978_v18 = vsel %vm738_vm1, %v962_v16, %v751_v12  ;;  %995 = vst [vmem:[#allocation13 + $0x68] sm:$0xff] %v979_v14  ;;  %v948_v19 = vpop.permute.xlu1 %947 }
 0x25b   :  { %994 = vst [vmem:[#allocation13 + $0x60] sm:$0xff] %v978_v18  ;;  %v943_v23 = vpop.permute.xlu0 %942  ;;  %v965_v25 = vmul.f32 %v948_v19, %v754_v17 }
 0x25c   :  { %v964_v27 = vmul.f32 %v943_v23, %v753_v20 }
 0x25d   :  { %v981_v28 = vsel %vm738_vm1, %v965_v25, %v754_v17 }
 0x25e   :  { %v980_v29 = vsel %vm738_vm1, %v964_v27, %v753_v20  ;;  %997 = vst [vmem:[#allocation13 + $0x78] sm:$0xff] %v981_v28 }
 0x25f   :  { %996 = vst [vmem:[#allocation13 + $0x70] sm:$0xff] %v980_v29 }
 0x260   :  { %1297 = shalt.err (!%p1294_p2)
}
 0x261   :  { %s1298_s8 = scalar_lea.hbm %s1557_s5, 2048 }
 0x262   :  { %p1299_p3 = scmp.ne.s32.totalorder %s1557_s5, %s1298_s8  ;;  %p1302_p4 = scmp.lt.u32.totalorder %s1298_s8, %s1557_s5 }
 0x264   :  { %p1304_p5 = pnand %p1302_p4, %p1299_p3 }
 0x266   :  { %1307 = shalt.err (!%p1304_p5)
}
 0x267   :  { %1009 = dma.vmem_to_hbm [thread:$0]  %s1004_s29, 2048, %s1557_s5, [#allocation6], %s1319_s17, %s1319_s17, %s1320_s18  }
 0x268   :  { %1314 = dma.done.wait [#allocation6], 2048  }
 0x269   :  { %1315 = vsyncadd [#allocation6], 4294965248 }
 0x26a   :  { %1013 = vsyncpa [#allocation5], 1 }
 0x26b   :  { %1014 = vsyncpa [#allocation8], 1 }
 0x26c   :  { %1015 = vsyncpa [#allocation11], 1 }
 0x26d   :  { %1016 = vsyncpa [#allocation6], 1 }

</bundles_post_ra>
